<compile_context>
chip_gen: v6e
topology: v6e:2x2x1
jax: 0.10.0
libtpu: 0.0.40
codegen_flags: <defaults>
</compile_context>

<pallas_src>
import math

import numpy as np

import jax
import jax.numpy as jnp
from jax.experimental import pallas as pl
from jax.experimental.pallas import tpu as pltpu

# ---- small synthetic ViT config (consistent with the module's structure) ----
PATCH = 8            # patch_size
IMG = 16             # img_size  (input spatial == img_size -> no interpolation)
IN_CH = 3            # RGB input
EMBED = 32           # embed_dim
NUM_LAYERS = 4       # num_layers
NUM_HEADS = 4
HEAD_DIM = EMBED // NUM_HEADS
MLP_DIM = 4 * EMBED
LN_EPS = 1e-6
EXTRACT_LAYERS = [NUM_LAYERS - 4, NUM_LAYERS - 3, NUM_LAYERS - 2, NUM_LAYERS - 1]

WEIGHT_NAMES = ("ln1_w", "ln1_b", "w_q", "b_q", "w_k", "b_k", "w_v", "b_v",
                "w_o", "b_o", "ln2_w", "ln2_b", "w_1", "b_1", "w_2", "b_2")


# ----------------------- static structural constants --------------------------
def attention_constants(B, S, H, Hd):
    """Trace-time numpy 0/1 matrices used by the fused kernel.

      place   [B*S,  B*N ] : token row (b, t) <- patch-embed row (b, t-1) for t>=1
      clsm    [B*S,  D   ] : 1 on CLS rows (t == 0)
      postile [B*S,  S   ] : row (b, t) <- positional-embedding row t
      expand  [B*H*S, B*S] : attention key row (b, h, j) <- token row (b, j)
      hmask   [B*H*S, D  ] : 1 on lanes belonging to head h of key row (b, h, j)
      blksum  [H*S,  H*S ] : block-diagonal ones; p @ blksum = per-head softmax denom
    """
    D = H * Hd
    N = S - 1
    BS, BN, HS = B * S, B * N, H * S

    r = np.arange(BS)[:, None]
    c = np.arange(BN)[None, :]
    place = ((r // S == c // N) & (r % S == (c % N) + 1)).astype(np.float32)
    clsm = ((r % S) == 0).astype(np.float32) * np.ones((1, D), np.float32)
    postile = ((r % S) == np.arange(S)[None, :]).astype(np.float32)

    re = np.arange(B * HS)[:, None]
    ce = np.arange(BS)[None, :]
    expand = ((re // HS == ce // S) & (re % S == ce % S)).astype(np.float32)
    d = np.arange(D)[None, :]
    hmask = (((re % HS) // S) == (d // Hd)).astype(np.float32)

    rb = np.arange(HS)[:, None]
    cb = np.arange(HS)[None, :]
    blksum = ((rb // S) == (cb // S)).astype(np.float32)
    return place, clsm, postile, expand, hmask, blksum


# -------------------------- fused Pallas kernel ------------------------------
def vit_fused_kernel(patches_ref, place_ref, clsmask_ref, postile_ref,
                     expand_ref, hmask_ref, blksum_ref,
                     wp_ref, bp_ref, cls_ref, pos_ref,
                     ln1w_ref, ln1b_ref, wq_ref, bq_ref, wk_ref, bk_ref,
                     wv_ref, bv_ref, wo_ref, bo_ref,
                     ln2w_ref, ln2b_ref, w1_ref, b1_ref, w2_ref, b2_ref,
                     out_ref):
    """Whole ViT forward (small config) in one kernel invocation.

    out_ref[l] holds layer l's raw post-block tokens, [B*S, D] (all layers are
    extract layers; timm's forward hook on blocks.{l} fires before the final norm).
    """
    L, BS, D = out_ref.shape
    S = pos_ref.shape[0]
    B = BS // S
    HS = NUM_HEADS * S
    f32 = jnp.float32

    # ---- prologue: patch embed + CLS token + positional embedding ----
    emb = jnp.dot(patches_ref[...], wp_ref[...], preferred_element_type=f32) + bp_ref[...]
    pos = jnp.dot(postile_ref[...], pos_ref[...], preferred_element_type=f32)
    x = (jnp.dot(place_ref[...], emb, preferred_element_type=f32)
         + clsmask_ref[...] * cls_ref[...]
         + pos)                                                   # [B*S, D]

    expand = expand_ref[...]    # [B*H*S, B*S]
    hmask = hmask_ref[...]      # [B*H*S, D]
    blksum = blksum_ref[...]    # [H*S, H*S]

    def layer_norm(v, w, b):
        mu = jnp.mean(v, axis=-1, keepdims=True)
        var = jnp.mean(jnp.square(v - mu), axis=-1, keepdims=True)
        return (v - mu) * jax.lax.rsqrt(var + LN_EPS) * w + b

    # Static unroll over layers: one kernel invocation, static ref[l] weight views,
    # token state carried in values (never written back to HBM between layers).
    for l in range(L):
        # --- multi-head self-attention (pre-norm) ---
        xn = layer_norm(x, ln1w_ref[l], ln1b_ref[l])
        q = jnp.dot(xn, wq_ref[l], preferred_element_type=f32) + bq_ref[l]  # scale pre-folded
        k = jnp.dot(xn, wk_ref[l], preferred_element_type=f32) + bk_ref[l]
        v = jnp.dot(xn, wv_ref[l], preferred_element_type=f32) + bv_ref[l]

        # Head batching without lane slices / concats / transposes: key/value rows
        # are expanded to (b, h, key) via a constant 0/1 matmul, lanes outside head
        # h zeroed, so two single-batch-dim einsums cover all heads at once.
        k_exp = (jnp.dot(expand, k, preferred_element_type=f32) * hmask).reshape(B, HS, D)
        v_exp = (jnp.dot(expand, v, preferred_element_type=f32) * hmask).reshape(B, HS, D)
        q3 = q.reshape(B, S, D)

        s = jnp.einsum("bqd,bkd->bqk", q3, k_exp,
                       preferred_element_type=f32)                # [B, S, H*S]
        s = s - jnp.max(s, axis=-1, keepdims=True)   # row max: valid per-head stabilizer
        p = jnp.exp(s).reshape(BS, HS)
        denom = jnp.dot(p, blksum, preferred_element_type=f32)    # per-head block sums
        p = (p * pl.reciprocal(denom, approx=True)).reshape(B, S, HS)
        attn = jnp.einsum("bqk,bkd->bqd", p, v_exp,
                          preferred_element_type=f32).reshape(BS, D)   # heads already concatenated
        x = x + jnp.dot(attn, wo_ref[l], preferred_element_type=f32) + bo_ref[l]

        # --- MLP (exact erf GELU: matches torch.nn.GELU default) ---
        xn2 = layer_norm(x, ln2w_ref[l], ln2b_ref[l])
        h1 = jnp.dot(xn2, w1_ref[l], preferred_element_type=f32) + b1_ref[l]
        h1 = 0.5 * h1 * (1.0 + jax.lax.erf(h1 * (1.0 / math.sqrt(2.0))))
        x = x + jnp.dot(h1, w2_ref[l], preferred_element_type=f32) + b2_ref[l]

        out_ref[l, :, :] = x      # this layer's extracted feature


def run_fused_vit(patches, consts, params, B, S):
    L, D = NUM_LAYERS, EMBED
    inputs = ([patches] + list(consts)
              + [params["patch_wmat"], params["patch_b"],
                 params["cls_token"], params["pos_embed"]]
              + [params["stacked"][k] for k in WEIGHT_NAMES])
    vmem = lambda: pl.BlockSpec(memory_space=pltpu.MemorySpace.VMEM)
    return pl.pallas_call(
        vit_fused_kernel,
        out_shape=jax.ShapeDtypeStruct((L, B * S, D), jnp.float32),
        in_specs=[vmem() for _ in inputs],
        out_specs=vmem(),
    )(*inputs)


# ----------------------------- forward wrapper --------------------------------
@jax.jit
def vit_forward(x, params):
    """Returns list of spatial features [B, D, H/P, W/P] for each extract layer."""
    B, C, H, W = x.shape
    Hp, Wp = H // PATCH, W // PATCH
    N = Hp * Wp
    S = N + 1

    # Only the patch unfold (reshape/transpose) stays in XLA; the embed matmul,
    # CLS concat and pos add are folded into the kernel prologue.
    patches = x.reshape(B, C, Hp, PATCH, Wp, PATCH)
    patches = patches.transpose(0, 2, 4, 1, 3, 5).reshape(B * N, C * PATCH * PATCH)

    consts = attention_constants(B, S, NUM_HEADS, HEAD_DIM)
    feats = run_fused_vit(patches, consts, params, B, S)      # [L, B*S, D]
    feats = feats.reshape(NUM_LAYERS, B, S, EMBED)

    out = []
    for l in EXTRACT_LAYERS:
        # sequence_to_spatial with include_cls_token=True: drop CLS, reshape to NCHW.
        f = feats[l, :, 1:, :]
        out.append(f.reshape(B, Hp, Wp, EMBED).transpose(0, 3, 1, 2))
        # TODO(synk): bilinear interpolate_features fallback when input size != img_size.
    return out


# ---------------------------- param init --------------------------------------
def init_params(key):
    keys = iter(jax.random.split(key, 3 + 4 * NUM_LAYERS))

    def nrm(shape, scale=0.02):
        return (scale * jax.random.normal(next(keys), shape)).astype(jnp.float32)

    n_tokens = 1 + (IMG // PATCH) ** 2
    patch_w = nrm((EMBED, IN_CH, PATCH, PATCH))
    params = {
        # Conv2d(kernel=stride=PATCH) folded to a [C*P*P, D] matmul weight at init.
        "patch_wmat": patch_w.reshape(EMBED, IN_CH * PATCH * PATCH).T,
        "patch_b": jnp.zeros((1, EMBED), jnp.float32),
        "cls_token": nrm((1, EMBED)),
        "pos_embed": nrm((n_tokens, EMBED)),
    }

    scale = float(HEAD_DIM) ** -0.5
    blocks = []
    for _ in range(NUM_LAYERS):
        w_qkv = nrm((EMBED, 3 * EMBED))
        b_qkv = jnp.zeros((1, 3 * EMBED), jnp.float32)
        blocks.append({
            "ln1_w": jnp.ones((1, EMBED), jnp.float32),
            "ln1_b": jnp.zeros((1, EMBED), jnp.float32),
            # 1/sqrt(head_dim) folded into the Q projection (one-time transform).
            "w_q": w_qkv[:, :EMBED] * scale,
            "b_q": b_qkv[:, :EMBED] * scale,
            "w_k": w_qkv[:, EMBED:2 * EMBED],
            "b_k": b_qkv[:, EMBED:2 * EMBED],
            "w_v": w_qkv[:, 2 * EMBED:],
            "b_v": b_qkv[:, 2 * EMBED:],
            "w_o": nrm((EMBED, EMBED)),
            "b_o": jnp.zeros((1, EMBED), jnp.float32),
            "ln2_w": jnp.ones((1, EMBED), jnp.float32),
            "ln2_b": jnp.zeros((1, EMBED), jnp.float32),
            "w_1": nrm((EMBED, MLP_DIM)),
            "b_1": jnp.zeros((1, MLP_DIM), jnp.float32),
            "w_2": nrm((MLP_DIM, EMBED)),
            "b_2": jnp.zeros((1, EMBED), jnp.float32),
        })
    # Stack per-layer weights along a leading layer axis for the fused kernel.
    params["stacked"] = {k: jnp.stack([bp[k] for bp in blocks], axis=0)
                         for k in blocks[0]}
    return params


# ------------------------------- main ------------------------------------------
if __name__ == "__main__":
    key = jax.random.PRNGKey(0)
    k_param, k_input = jax.random.split(key)
    params = init_params(k_param)
    x = jax.random.normal(k_input, (2, IN_CH, IMG, IMG), dtype=jnp.float32)  # NCHW

    feats = vit_forward(x, params)
    feats = jax.block_until_ready(feats)

    expected = (2, EMBED, IMG // PATCH, IMG // PATCH)
    assert len(feats) == len(EXTRACT_LAYERS)
    for f in feats:
        assert f.shape == expected, f.shape
        assert bool(jnp.all(jnp.isfinite(f)))
    print("KERNEL_OK")
</pallas_src>

<mosaic_0001>
module attributes {stable_mosaic.version = 11 : i64} {
  func.func @vit_fused_kernel(%arg0: memref<8x192xf32, #tpu.memory_space<vmem>>, %arg1: memref<10x8xf32, #tpu.memory_space<vmem>>, %arg2: memref<10x32xf32, #tpu.memory_space<vmem>>, %arg3: memref<10x5xf32, #tpu.memory_space<vmem>>, %arg4: memref<40x10xf32, #tpu.memory_space<vmem>>, %arg5: memref<40x32xf32, #tpu.memory_space<vmem>>, %arg6: memref<20x20xf32, #tpu.memory_space<vmem>>, %arg7: memref<192x32xf32, #tpu.memory_space<vmem>>, %arg8: memref<1x32xf32, #tpu.memory_space<vmem>>, %arg9: memref<1x32xf32, #tpu.memory_space<vmem>>, %arg10: memref<5x32xf32, #tpu.memory_space<vmem>>, %arg11: memref<4x1x32xf32, #tpu.memory_space<vmem>>, %arg12: memref<4x1x32xf32, #tpu.memory_space<vmem>>, %arg13: memref<4x32x32xf32, #tpu.memory_space<vmem>>, %arg14: memref<4x1x32xf32, #tpu.memory_space<vmem>>, %arg15: memref<4x32x32xf32, #tpu.memory_space<vmem>>, %arg16: memref<4x1x32xf32, #tpu.memory_space<vmem>>, %arg17: memref<4x32x32xf32, #tpu.memory_space<vmem>>, %arg18: memref<4x1x32xf32, #tpu.memory_space<vmem>>, %arg19: memref<4x32x32xf32, #tpu.memory_space<vmem>>, %arg20: memref<4x1x32xf32, #tpu.memory_space<vmem>>, %arg21: memref<4x1x32xf32, #tpu.memory_space<vmem>>, %arg22: memref<4x1x32xf32, #tpu.memory_space<vmem>>, %arg23: memref<4x32x128xf32, #tpu.memory_space<vmem>>, %arg24: memref<4x1x128xf32, #tpu.memory_space<vmem>>, %arg25: memref<4x128x32xf32, #tpu.memory_space<vmem>>, %arg26: memref<4x1x32xf32, #tpu.memory_space<vmem>>, %arg27: memref<4x10x32xf32, #tpu.memory_space<vmem>>) attributes {dimension_semantics = [], scalar_prefetch = 0 : i64, scratch_operands = 0 : i64, tpu.core_type = #tpu.core_type<tc>} {
    %c0 = arith.constant 0 : index
    %c0_0 = arith.constant 0 : index
    %0 = vector.load %arg0[%c0, %c0_0] : memref<8x192xf32, #tpu.memory_space<vmem>>, vector<8x192xf32>
    %c0_1 = arith.constant 0 : index
    %c0_2 = arith.constant 0 : index
    %1 = vector.load %arg7[%c0_1, %c0_2] : memref<192x32xf32, #tpu.memory_space<vmem>>, vector<192x32xf32>
    %cst = arith.constant dense<0.000000e+00> : vector<8x32xf32>
    %2 = tpu.matmul %0, %1, %cst {dimension_numbers = #tpu.dot_dimension_numbers<[1], [0], [0], [1], [0, 0, 1, 1], [], []>} : vector<8x192xf32>, vector<192x32xf32>, vector<8x32xf32> -> vector<8x32xf32>
    %c0_3 = arith.constant 0 : index
    %c0_4 = arith.constant 0 : index
    %3 = vector.load %arg8[%c0_3, %c0_4] : memref<1x32xf32, #tpu.memory_space<vmem>>, vector<1x32xf32>
    %4 = vector.broadcast %3 : vector<1x32xf32> to vector<8x32xf32>
    %5 = arith.addf %2, %4 : vector<8x32xf32>
    %c0_5 = arith.constant 0 : index
    %c0_6 = arith.constant 0 : index
    %6 = vector.load %arg3[%c0_5, %c0_6] : memref<10x5xf32, #tpu.memory_space<vmem>>, vector<10x5xf32>
    %c0_7 = arith.constant 0 : index
    %c0_8 = arith.constant 0 : index
    %7 = vector.load %arg10[%c0_7, %c0_8] : memref<5x32xf32, #tpu.memory_space<vmem>>, vector<5x32xf32>
    %cst_9 = arith.constant dense<0.000000e+00> : vector<10x32xf32>
    %8 = tpu.matmul %6, %7, %cst_9 {dimension_numbers = #tpu.dot_dimension_numbers<[1], [0], [0], [1], [0, 0, 1, 1], [], []>} : vector<10x5xf32>, vector<5x32xf32>, vector<10x32xf32> -> vector<10x32xf32>
    %c0_10 = arith.constant 0 : index
    %c0_11 = arith.constant 0 : index
    %9 = vector.load %arg1[%c0_10, %c0_11] : memref<10x8xf32, #tpu.memory_space<vmem>>, vector<10x8xf32>
    %cst_12 = arith.constant dense<0.000000e+00> : vector<10x32xf32>
    %10 = tpu.matmul %9, %5, %cst_12 {dimension_numbers = #tpu.dot_dimension_numbers<[1], [0], [0], [1], [0, 0, 1, 1], [], []>} : vector<10x8xf32>, vector<8x32xf32>, vector<10x32xf32> -> vector<10x32xf32>
    %c0_13 = arith.constant 0 : index
    %c0_14 = arith.constant 0 : index
    %11 = vector.load %arg2[%c0_13, %c0_14] : memref<10x32xf32, #tpu.memory_space<vmem>>, vector<10x32xf32>
    %c0_15 = arith.constant 0 : index
    %c0_16 = arith.constant 0 : index
    %12 = vector.load %arg9[%c0_15, %c0_16] : memref<1x32xf32, #tpu.memory_space<vmem>>, vector<1x32xf32>
    %13 = vector.broadcast %12 : vector<1x32xf32> to vector<10x32xf32>
    %14 = arith.mulf %11, %13 : vector<10x32xf32>
    %15 = arith.addf %10, %14 : vector<10x32xf32>
    %16 = arith.addf %15, %8 : vector<10x32xf32>
    %c0_17 = arith.constant 0 : index
    %c0_18 = arith.constant 0 : index
    %17 = vector.load %arg4[%c0_17, %c0_18] : memref<40x10xf32, #tpu.memory_space<vmem>>, vector<40x10xf32>
    %c0_19 = arith.constant 0 : index
    %c0_20 = arith.constant 0 : index
    %18 = vector.load %arg5[%c0_19, %c0_20] : memref<40x32xf32, #tpu.memory_space<vmem>>, vector<40x32xf32>
    %c0_21 = arith.constant 0 : index
    %c0_22 = arith.constant 0 : index
    %19 = vector.load %arg6[%c0_21, %c0_22] : memref<20x20xf32, #tpu.memory_space<vmem>>, vector<20x20xf32>
    %c0_23 = arith.constant 0 : index
    %c0_24 = arith.constant 0 : index
    %c0_25 = arith.constant 0 : index
    %20 = vector.load %arg11[%c0_23, %c0_24, %c0_25] : memref<4x1x32xf32, #tpu.memory_space<vmem>>, vector<1x1x32xf32>
    %21 = vector.shape_cast %20 : vector<1x1x32xf32> to vector<1x32xf32>
    %c0_26 = arith.constant 0 : index
    %c0_27 = arith.constant 0 : index
    %c0_28 = arith.constant 0 : index
    %22 = vector.load %arg12[%c0_26, %c0_27, %c0_28] : memref<4x1x32xf32, #tpu.memory_space<vmem>>, vector<1x1x32xf32>
    %23 = vector.shape_cast %22 : vector<1x1x32xf32> to vector<1x32xf32>
    %cst_29 = arith.constant dense<0.000000e+00> : vector<10xf32>
    %24 = vector.multi_reduction <add>, %16, %cst_29 [1] : vector<10x32xf32> to vector<10xf32>
    %25 = vector.shape_cast %24 : vector<10xf32> to vector<10x1xf32>
    %cst_30 = arith.constant 3.200000e+01 : f32
    %26 = vector.broadcast %cst_30 : f32 to vector<10x1xf32>
    %27 = arith.divf %25, %26 : vector<10x1xf32>
    %28 = vector.broadcast %27 : vector<10x1xf32> to vector<10x32xf32>
    %29 = arith.subf %16, %28 : vector<10x32xf32>
    %30 = arith.mulf %29, %29 : vector<10x32xf32>
    %cst_31 = arith.constant dense<0.000000e+00> : vector<10xf32>
    %31 = vector.multi_reduction <add>, %30, %cst_31 [1] : vector<10x32xf32> to vector<10xf32>
    %32 = vector.shape_cast %31 : vector<10xf32> to vector<10x1xf32>
    %cst_32 = arith.constant 3.200000e+01 : f32
    %33 = vector.broadcast %cst_32 : f32 to vector<10x1xf32>
    %34 = arith.divf %32, %33 : vector<10x1xf32>
    %35 = vector.broadcast %27 : vector<10x1xf32> to vector<10x32xf32>
    %36 = arith.subf %16, %35 : vector<10x32xf32>
    %cst_33 = arith.constant 9.99999997E-7 : f32
    %37 = vector.broadcast %cst_33 : f32 to vector<10x1xf32>
    %38 = arith.addf %34, %37 : vector<10x1xf32>
    %39 = math.rsqrt %38 : vector<10x1xf32>
    %40 = vector.broadcast %39 : vector<10x1xf32> to vector<10x32xf32>
    %41 = arith.mulf %36, %40 : vector<10x32xf32>
    %42 = vector.broadcast %21 : vector<1x32xf32> to vector<10x32xf32>
    %43 = arith.mulf %41, %42 : vector<10x32xf32>
    %44 = vector.broadcast %23 : vector<1x32xf32> to vector<10x32xf32>
    %45 = arith.addf %43, %44 : vector<10x32xf32>
    %c0_34 = arith.constant 0 : index
    %c0_35 = arith.constant 0 : index
    %c0_36 = arith.constant 0 : index
    %46 = vector.load %arg13[%c0_34, %c0_35, %c0_36] : memref<4x32x32xf32, #tpu.memory_space<vmem>>, vector<1x32x32xf32>
    %47 = vector.shape_cast %46 : vector<1x32x32xf32> to vector<32x32xf32>
    %cst_37 = arith.constant dense<0.000000e+00> : vector<10x32xf32>
    %48 = tpu.matmul %45, %47, %cst_37 {dimension_numbers = #tpu.dot_dimension_numbers<[1], [0], [0], [1], [0, 0, 1, 1], [], []>} : vector<10x32xf32>, vector<32x32xf32>, vector<10x32xf32> -> vector<10x32xf32>
    %c0_38 = arith.constant 0 : index
    %c0_39 = arith.constant 0 : index
    %c0_40 = arith.constant 0 : index
    %49 = vector.load %arg14[%c0_38, %c0_39, %c0_40] : memref<4x1x32xf32, #tpu.memory_space<vmem>>, vector<1x1x32xf32>
    %50 = vector.shape_cast %49 : vector<1x1x32xf32> to vector<1x32xf32>
    %51 = vector.broadcast %50 : vector<1x32xf32> to vector<10x32xf32>
    %52 = arith.addf %48, %51 : vector<10x32xf32>
    %c0_41 = arith.constant 0 : index
    %c0_42 = arith.constant 0 : index
    %c0_43 = arith.constant 0 : index
    %53 = vector.load %arg15[%c0_41, %c0_42, %c0_43] : memref<4x32x32xf32, #tpu.memory_space<vmem>>, vector<1x32x32xf32>
    %54 = vector.shape_cast %53 : vector<1x32x32xf32> to vector<32x32xf32>
    %cst_44 = arith.constant dense<0.000000e+00> : vector<10x32xf32>
    %55 = tpu.matmul %45, %54, %cst_44 {dimension_numbers = #tpu.dot_dimension_numbers<[1], [0], [0], [1], [0, 0, 1, 1], [], []>} : vector<10x32xf32>, vector<32x32xf32>, vector<10x32xf32> -> vector<10x32xf32>
    %c0_45 = arith.constant 0 : index
    %c0_46 = arith.constant 0 : index
    %c0_47 = arith.constant 0 : index
    %56 = vector.load %arg16[%c0_45, %c0_46, %c0_47] : memref<4x1x32xf32, #tpu.memory_space<vmem>>, vector<1x1x32xf32>
    %57 = vector.shape_cast %56 : vector<1x1x32xf32> to vector<1x32xf32>
    %58 = vector.broadcast %57 : vector<1x32xf32> to vector<10x32xf32>
    %59 = arith.addf %55, %58 : vector<10x32xf32>
    %c0_48 = arith.constant 0 : index
    %c0_49 = arith.constant 0 : index
    %c0_50 = arith.constant 0 : index
    %60 = vector.load %arg17[%c0_48, %c0_49, %c0_50] : memref<4x32x32xf32, #tpu.memory_space<vmem>>, vector<1x32x32xf32>
    %61 = vector.shape_cast %60 : vector<1x32x32xf32> to vector<32x32xf32>
    %cst_51 = arith.constant dense<0.000000e+00> : vector<10x32xf32>
    %62 = tpu.matmul %45, %61, %cst_51 {dimension_numbers = #tpu.dot_dimension_numbers<[1], [0], [0], [1], [0, 0, 1, 1], [], []>} : vector<10x32xf32>, vector<32x32xf32>, vector<10x32xf32> -> vector<10x32xf32>
    %c0_52 = arith.constant 0 : index
    %c0_53 = arith.constant 0 : index
    %c0_54 = arith.constant 0 : index
    %63 = vector.load %arg18[%c0_52, %c0_53, %c0_54] : memref<4x1x32xf32, #tpu.memory_space<vmem>>, vector<1x1x32xf32>
    %64 = vector.shape_cast %63 : vector<1x1x32xf32> to vector<1x32xf32>
    %65 = vector.broadcast %64 : vector<1x32xf32> to vector<10x32xf32>
    %66 = arith.addf %62, %65 : vector<10x32xf32>
    %cst_55 = arith.constant dense<0.000000e+00> : vector<40x32xf32>
    %67 = tpu.matmul %17, %59, %cst_55 {dimension_numbers = #tpu.dot_dimension_numbers<[1], [0], [0], [1], [0, 0, 1, 1], [], []>} : vector<40x10xf32>, vector<10x32xf32>, vector<40x32xf32> -> vector<40x32xf32>
    %68 = arith.mulf %67, %18 : vector<40x32xf32>
    %69 = vector.shape_cast %68 : vector<40x32xf32> to vector<2x20x32xf32>
    %cst_56 = arith.constant dense<0.000000e+00> : vector<40x32xf32>
    %70 = tpu.matmul %17, %66, %cst_56 {dimension_numbers = #tpu.dot_dimension_numbers<[1], [0], [0], [1], [0, 0, 1, 1], [], []>} : vector<40x10xf32>, vector<10x32xf32>, vector<40x32xf32> -> vector<40x32xf32>
    %71 = arith.mulf %70, %18 : vector<40x32xf32>
    %72 = vector.shape_cast %71 : vector<40x32xf32> to vector<2x20x32xf32>
    %73 = vector.shape_cast %52 : vector<10x32xf32> to vector<2x5x32xf32>
    "tpu.trace_start"() <{level = 10 : i32, message = "bqd,bkd->bqk"}> : () -> ()
    %cst_57 = arith.constant dense<0.000000e+00> : vector<2x5x20xf32>
    %74 = tpu.matmul %73, %69, %cst_57 {dimension_numbers = #tpu.dot_dimension_numbers<[2], [2], [1], [1], [0, 0, 0, 1, 1, 1], [0], [0]>} : vector<2x5x32xf32>, vector<2x20x32xf32>, vector<2x5x20xf32> -> vector<2x5x20xf32>
    "tpu.trace_stop"() : () -> ()
    %cst_58 = arith.constant dense<0xFF800000> : vector<2x5xf32>
    %75 = vector.multi_reduction <maximumf>, %74, %cst_58 [2] : vector<2x5x20xf32> to vector<2x5xf32>
    %76 = vector.shape_cast %75 : vector<2x5xf32> to vector<2x5x1xf32>
    %77 = vector.broadcast %76 : vector<2x5x1xf32> to vector<2x5x20xf32>
    %78 = arith.subf %74, %77 : vector<2x5x20xf32>
    %79 = math.exp %78 : vector<2x5x20xf32>
    %80 = vector.shape_cast %79 : vector<2x5x20xf32> to vector<10x20xf32>
    %cst_59 = arith.constant dense<0.000000e+00> : vector<10x20xf32>
    %81 = tpu.matmul %80, %19, %cst_59 {dimension_numbers = #tpu.dot_dimension_numbers<[1], [0], [0], [1], [0, 0, 1, 1], [], []>} : vector<10x20xf32>, vector<20x20xf32>, vector<10x20xf32> -> vector<10x20xf32>
    %82 = tpu.reciprocal %81 {approx = true} : vector<10x20xf32> -> vector<10x20xf32>
    %83 = arith.mulf %80, %82 : vector<10x20xf32>
    %84 = vector.shape_cast %83 : vector<10x20xf32> to vector<2x5x20xf32>
    "tpu.trace_start"() <{level = 10 : i32, message = "bqk,bkd->bqd"}> : () -> ()
    %cst_60 = arith.constant dense<0.000000e+00> : vector<2x5x32xf32>
    %85 = tpu.matmul %84, %72, %cst_60 {dimension_numbers = #tpu.dot_dimension_numbers<[2], [1], [1], [2], [0, 0, 0, 1, 1, 2], [0], [0]>} : vector<2x5x20xf32>, vector<2x20x32xf32>, vector<2x5x32xf32> -> vector<2x5x32xf32>
    "tpu.trace_stop"() : () -> ()
    %86 = vector.shape_cast %85 : vector<2x5x32xf32> to vector<10x32xf32>
    %c0_61 = arith.constant 0 : index
    %c0_62 = arith.constant 0 : index
    %c0_63 = arith.constant 0 : index
    %87 = vector.load %arg19[%c0_61, %c0_62, %c0_63] : memref<4x32x32xf32, #tpu.memory_space<vmem>>, vector<1x32x32xf32>
    %88 = vector.shape_cast %87 : vector<1x32x32xf32> to vector<32x32xf32>
    %cst_64 = arith.constant dense<0.000000e+00> : vector<10x32xf32>
    %89 = tpu.matmul %86, %88, %cst_64 {dimension_numbers = #tpu.dot_dimension_numbers<[1], [0], [0], [1], [0, 0, 1, 1], [], []>} : vector<10x32xf32>, vector<32x32xf32>, vector<10x32xf32> -> vector<10x32xf32>
    %90 = arith.addf %16, %89 : vector<10x32xf32>
    %c0_65 = arith.constant 0 : index
    %c0_66 = arith.constant 0 : index
    %c0_67 = arith.constant 0 : index
    %91 = vector.load %arg20[%c0_65, %c0_66, %c0_67] : memref<4x1x32xf32, #tpu.memory_space<vmem>>, vector<1x1x32xf32>
    %92 = vector.shape_cast %91 : vector<1x1x32xf32> to vector<1x32xf32>
    %93 = vector.broadcast %92 : vector<1x32xf32> to vector<10x32xf32>
    %94 = arith.addf %90, %93 : vector<10x32xf32>
    %c0_68 = arith.constant 0 : index
    %c0_69 = arith.constant 0 : index
    %c0_70 = arith.constant 0 : index
    %95 = vector.load %arg21[%c0_68, %c0_69, %c0_70] : memref<4x1x32xf32, #tpu.memory_space<vmem>>, vector<1x1x32xf32>
    %96 = vector.shape_cast %95 : vector<1x1x32xf32> to vector<1x32xf32>
    %c0_71 = arith.constant 0 : index
    %c0_72 = arith.constant 0 : index
    %c0_73 = arith.constant 0 : index
    %97 = vector.load %arg22[%c0_71, %c0_72, %c0_73] : memref<4x1x32xf32, #tpu.memory_space<vmem>>, vector<1x1x32xf32>
    %98 = vector.shape_cast %97 : vector<1x1x32xf32> to vector<1x32xf32>
    %cst_74 = arith.constant dense<0.000000e+00> : vector<10xf32>
    %99 = vector.multi_reduction <add>, %94, %cst_74 [1] : vector<10x32xf32> to vector<10xf32>
    %100 = vector.shape_cast %99 : vector<10xf32> to vector<10x1xf32>
    %cst_75 = arith.constant 3.200000e+01 : f32
    %101 = vector.broadcast %cst_75 : f32 to vector<10x1xf32>
    %102 = arith.divf %100, %101 : vector<10x1xf32>
    %103 = vector.broadcast %102 : vector<10x1xf32> to vector<10x32xf32>
    %104 = arith.subf %94, %103 : vector<10x32xf32>
    %105 = arith.mulf %104, %104 : vector<10x32xf32>
    %cst_76 = arith.constant dense<0.000000e+00> : vector<10xf32>
    %106 = vector.multi_reduction <add>, %105, %cst_76 [1] : vector<10x32xf32> to vector<10xf32>
    %107 = vector.shape_cast %106 : vector<10xf32> to vector<10x1xf32>
    %cst_77 = arith.constant 3.200000e+01 : f32
    %108 = vector.broadcast %cst_77 : f32 to vector<10x1xf32>
    %109 = arith.divf %107, %108 : vector<10x1xf32>
    %110 = vector.broadcast %102 : vector<10x1xf32> to vector<10x32xf32>
    %111 = arith.subf %94, %110 : vector<10x32xf32>
    %cst_78 = arith.constant 9.99999997E-7 : f32
    %112 = vector.broadcast %cst_78 : f32 to vector<10x1xf32>
    %113 = arith.addf %109, %112 : vector<10x1xf32>
    %114 = math.rsqrt %113 : vector<10x1xf32>
    %115 = vector.broadcast %114 : vector<10x1xf32> to vector<10x32xf32>
    %116 = arith.mulf %111, %115 : vector<10x32xf32>
    %117 = vector.broadcast %96 : vector<1x32xf32> to vector<10x32xf32>
    %118 = arith.mulf %116, %117 : vector<10x32xf32>
    %119 = vector.broadcast %98 : vector<1x32xf32> to vector<10x32xf32>
    %120 = arith.addf %118, %119 : vector<10x32xf32>
    %c0_79 = arith.constant 0 : index
    %c0_80 = arith.constant 0 : index
    %c0_81 = arith.constant 0 : index
    %121 = vector.load %arg23[%c0_79, %c0_80, %c0_81] : memref<4x32x128xf32, #tpu.memory_space<vmem>>, vector<1x32x128xf32>
    %122 = vector.shape_cast %121 : vector<1x32x128xf32> to vector<32x128xf32>
    %cst_82 = arith.constant dense<0.000000e+00> : vector<10x128xf32>
    %123 = tpu.matmul %120, %122, %cst_82 {dimension_numbers = #tpu.dot_dimension_numbers<[1], [0], [0], [1], [0, 0, 1, 1], [], []>} : vector<10x32xf32>, vector<32x128xf32>, vector<10x128xf32> -> vector<10x128xf32>
    %c0_83 = arith.constant 0 : index
    %c0_84 = arith.constant 0 : index
    %c0_85 = arith.constant 0 : index
    %124 = vector.load %arg24[%c0_83, %c0_84, %c0_85] : memref<4x1x128xf32, #tpu.memory_space<vmem>>, vector<1x1x128xf32>
    %125 = vector.shape_cast %124 : vector<1x1x128xf32> to vector<1x128xf32>
    %126 = vector.broadcast %125 : vector<1x128xf32> to vector<10x128xf32>
    %127 = arith.addf %123, %126 : vector<10x128xf32>
    %cst_86 = arith.constant 5.000000e-01 : f32
    %128 = vector.broadcast %cst_86 : f32 to vector<10x128xf32>
    %129 = arith.mulf %128, %127 : vector<10x128xf32>
    %cst_87 = arith.constant 0.707106769 : f32
    %130 = vector.broadcast %cst_87 : f32 to vector<10x128xf32>
    %131 = arith.mulf %127, %130 : vector<10x128xf32>
    %132 = math.erf %131 : vector<10x128xf32>
    %cst_88 = arith.constant 1.000000e+00 : f32
    %133 = vector.broadcast %cst_88 : f32 to vector<10x128xf32>
    %134 = arith.addf %133, %132 : vector<10x128xf32>
    %135 = arith.mulf %129, %134 : vector<10x128xf32>
    %c0_89 = arith.constant 0 : index
    %c0_90 = arith.constant 0 : index
    %c0_91 = arith.constant 0 : index
    %136 = vector.load %arg25[%c0_89, %c0_90, %c0_91] : memref<4x128x32xf32, #tpu.memory_space<vmem>>, vector<1x128x32xf32>
    %137 = vector.shape_cast %136 : vector<1x128x32xf32> to vector<128x32xf32>
    %cst_92 = arith.constant dense<0.000000e+00> : vector<10x32xf32>
    %138 = tpu.matmul %135, %137, %cst_92 {dimension_numbers = #tpu.dot_dimension_numbers<[1], [0], [0], [1], [0, 0, 1, 1], [], []>} : vector<10x128xf32>, vector<128x32xf32>, vector<10x32xf32> -> vector<10x32xf32>
    %139 = arith.addf %94, %138 : vector<10x32xf32>
    %c0_93 = arith.constant 0 : index
    %c0_94 = arith.constant 0 : index
    %c0_95 = arith.constant 0 : index
    %140 = vector.load %arg26[%c0_93, %c0_94, %c0_95] : memref<4x1x32xf32, #tpu.memory_space<vmem>>, vector<1x1x32xf32>
    %141 = vector.shape_cast %140 : vector<1x1x32xf32> to vector<1x32xf32>
    %142 = vector.broadcast %141 : vector<1x32xf32> to vector<10x32xf32>
    %143 = arith.addf %139, %142 : vector<10x32xf32>
    %c0_96 = arith.constant 0 : index
    %c0_97 = arith.constant 0 : index
    %c0_98 = arith.constant 0 : index
    %144 = vector.load %arg27[%c0_96, %c0_97, %c0_98] : memref<4x10x32xf32, #tpu.memory_space<vmem>>, vector<1x10x32xf32>
    %145 = vector.shape_cast %144 : vector<1x10x32xf32> to vector<10x32xf32>
    %146 = vector.shape_cast %143 : vector<10x32xf32> to vector<1x10x32xf32>
    tpu.vector_store %arg27[%c0_96, %c0_97, %c0_98], %146 {strides = array<i32>} : memref<4x10x32xf32, #tpu.memory_space<vmem>>, vector<1x10x32xf32>,
    %c1 = arith.constant 1 : index
    %c0_99 = arith.constant 0 : index
    %c0_100 = arith.constant 0 : index
    %147 = vector.load %arg11[%c1, %c0_99, %c0_100] : memref<4x1x32xf32, #tpu.memory_space<vmem>>, vector<1x1x32xf32>
    %148 = vector.shape_cast %147 : vector<1x1x32xf32> to vector<1x32xf32>
    %c1_101 = arith.constant 1 : index
    %c0_102 = arith.constant 0 : index
    %c0_103 = arith.constant 0 : index
    %149 = vector.load %arg12[%c1_101, %c0_102, %c0_103] : memref<4x1x32xf32, #tpu.memory_space<vmem>>, vector<1x1x32xf32>
    %150 = vector.shape_cast %149 : vector<1x1x32xf32> to vector<1x32xf32>
    %cst_104 = arith.constant dense<0.000000e+00> : vector<10xf32>
    %151 = vector.multi_reduction <add>, %143, %cst_104 [1] : vector<10x32xf32> to vector<10xf32>
    %152 = vector.shape_cast %151 : vector<10xf32> to vector<10x1xf32>
    %cst_105 = arith.constant 3.200000e+01 : f32
    %153 = vector.broadcast %cst_105 : f32 to vector<10x1xf32>
    %154 = arith.divf %152, %153 : vector<10x1xf32>
    %155 = vector.broadcast %154 : vector<10x1xf32> to vector<10x32xf32>
    %156 = arith.subf %143, %155 : vector<10x32xf32>
    %157 = arith.mulf %156, %156 : vector<10x32xf32>
    %cst_106 = arith.constant dense<0.000000e+00> : vector<10xf32>
    %158 = vector.multi_reduction <add>, %157, %cst_106 [1] : vector<10x32xf32> to vector<10xf32>
    %159 = vector.shape_cast %158 : vector<10xf32> to vector<10x1xf32>
    %cst_107 = arith.constant 3.200000e+01 : f32
    %160 = vector.broadcast %cst_107 : f32 to vector<10x1xf32>
    %161 = arith.divf %159, %160 : vector<10x1xf32>
    %162 = vector.broadcast %154 : vector<10x1xf32> to vector<10x32xf32>
    %163 = arith.subf %143, %162 : vector<10x32xf32>
    %cst_108 = arith.constant 9.99999997E-7 : f32
    %164 = vector.broadcast %cst_108 : f32 to vector<10x1xf32>
    %165 = arith.addf %161, %164 : vector<10x1xf32>
    %166 = math.rsqrt %165 : vector<10x1xf32>
    %167 = vector.broadcast %166 : vector<10x1xf32> to vector<10x32xf32>
    %168 = arith.mulf %163, %167 : vector<10x32xf32>
    %169 = vector.broadcast %148 : vector<1x32xf32> to vector<10x32xf32>
    %170 = arith.mulf %168, %169 : vector<10x32xf32>
    %171 = vector.broadcast %150 : vector<1x32xf32> to vector<10x32xf32>
    %172 = arith.addf %170, %171 : vector<10x32xf32>
    %c1_109 = arith.constant 1 : index
    %c0_110 = arith.constant 0 : index
    %c0_111 = arith.constant 0 : index
    %173 = vector.load %arg13[%c1_109, %c0_110, %c0_111] : memref<4x32x32xf32, #tpu.memory_space<vmem>>, vector<1x32x32xf32>
    %174 = vector.shape_cast %173 : vector<1x32x32xf32> to vector<32x32xf32>
    %cst_112 = arith.constant dense<0.000000e+00> : vector<10x32xf32>
    %175 = tpu.matmul %172, %174, %cst_112 {dimension_numbers = #tpu.dot_dimension_numbers<[1], [0], [0], [1], [0, 0, 1, 1], [], []>} : vector<10x32xf32>, vector<32x32xf32>, vector<10x32xf32> -> vector<10x32xf32>
    %c1_113 = arith.constant 1 : index
    %c0_114 = arith.constant 0 : index
    %c0_115 = arith.constant 0 : index
    %176 = vector.load %arg14[%c1_113, %c0_114, %c0_115] : memref<4x1x32xf32, #tpu.memory_space<vmem>>, vector<1x1x32xf32>
    %177 = vector.shape_cast %176 : vector<1x1x32xf32> to vector<1x32xf32>
    %178 = vector.broadcast %177 : vector<1x32xf32> to vector<10x32xf32>
    %179 = arith.addf %175, %178 : vector<10x32xf32>
    %c1_116 = arith.constant 1 : index
    %c0_117 = arith.constant 0 : index
    %c0_118 = arith.constant 0 : index
    %180 = vector.load %arg15[%c1_116, %c0_117, %c0_118] : memref<4x32x32xf32, #tpu.memory_space<vmem>>, vector<1x32x32xf32>
    %181 = vector.shape_cast %180 : vector<1x32x32xf32> to vector<32x32xf32>
    %cst_119 = arith.constant dense<0.000000e+00> : vector<10x32xf32>
    %182 = tpu.matmul %172, %181, %cst_119 {dimension_numbers = #tpu.dot_dimension_numbers<[1], [0], [0], [1], [0, 0, 1, 1], [], []>} : vector<10x32xf32>, vector<32x32xf32>, vector<10x32xf32> -> vector<10x32xf32>
    %c1_120 = arith.constant 1 : index
    %c0_121 = arith.constant 0 : index
    %c0_122 = arith.constant 0 : index
    %183 = vector.load %arg16[%c1_120, %c0_121, %c0_122] : memref<4x1x32xf32, #tpu.memory_space<vmem>>, vector<1x1x32xf32>
    %184 = vector.shape_cast %183 : vector<1x1x32xf32> to vector<1x32xf32>
    %185 = vector.broadcast %184 : vector<1x32xf32> to vector<10x32xf32>
    %186 = arith.addf %182, %185 : vector<10x32xf32>
    %c1_123 = arith.constant 1 : index
    %c0_124 = arith.constant 0 : index
    %c0_125 = arith.constant 0 : index
    %187 = vector.load %arg17[%c1_123, %c0_124, %c0_125] : memref<4x32x32xf32, #tpu.memory_space<vmem>>, vector<1x32x32xf32>
    %188 = vector.shape_cast %187 : vector<1x32x32xf32> to vector<32x32xf32>
    %cst_126 = arith.constant dense<0.000000e+00> : vector<10x32xf32>
    %189 = tpu.matmul %172, %188, %cst_126 {dimension_numbers = #tpu.dot_dimension_numbers<[1], [0], [0], [1], [0, 0, 1, 1], [], []>} : vector<10x32xf32>, vector<32x32xf32>, vector<10x32xf32> -> vector<10x32xf32>
    %c1_127 = arith.constant 1 : index
    %c0_128 = arith.constant 0 : index
    %c0_129 = arith.constant 0 : index
    %190 = vector.load %arg18[%c1_127, %c0_128, %c0_129] : memref<4x1x32xf32, #tpu.memory_space<vmem>>, vector<1x1x32xf32>
    %191 = vector.shape_cast %190 : vector<1x1x32xf32> to vector<1x32xf32>
    %192 = vector.broadcast %191 : vector<1x32xf32> to vector<10x32xf32>
    %193 = arith.addf %189, %192 : vector<10x32xf32>
    %cst_130 = arith.constant dense<0.000000e+00> : vector<40x32xf32>
    %194 = tpu.matmul %17, %186, %cst_130 {dimension_numbers = #tpu.dot_dimension_numbers<[1], [0], [0], [1], [0, 0, 1, 1], [], []>} : vector<40x10xf32>, vector<10x32xf32>, vector<40x32xf32> -> vector<40x32xf32>
    %195 = arith.mulf %194, %18 : vector<40x32xf32>
    %196 = vector.shape_cast %195 : vector<40x32xf32> to vector<2x20x32xf32>
    %cst_131 = arith.constant dense<0.000000e+00> : vector<40x32xf32>
    %197 = tpu.matmul %17, %193, %cst_131 {dimension_numbers = #tpu.dot_dimension_numbers<[1], [0], [0], [1], [0, 0, 1, 1], [], []>} : vector<40x10xf32>, vector<10x32xf32>, vector<40x32xf32> -> vector<40x32xf32>
    %198 = arith.mulf %197, %18 : vector<40x32xf32>
    %199 = vector.shape_cast %198 : vector<40x32xf32> to vector<2x20x32xf32>
    %200 = vector.shape_cast %179 : vector<10x32xf32> to vector<2x5x32xf32>
    "tpu.trace_start"() <{level = 10 : i32, message = "bqd,bkd->bqk"}> : () -> ()
    %cst_132 = arith.constant dense<0.000000e+00> : vector<2x5x20xf32>
    %201 = tpu.matmul %200, %196, %cst_132 {dimension_numbers = #tpu.dot_dimension_numbers<[2], [2], [1], [1], [0, 0, 0, 1, 1, 1], [0], [0]>} : vector<2x5x32xf32>, vector<2x20x32xf32>, vector<2x5x20xf32> -> vector<2x5x20xf32>
    "tpu.trace_stop"() : () -> ()
    %cst_133 = arith.constant dense<0xFF800000> : vector<2x5xf32>
    %202 = vector.multi_reduction <maximumf>, %201, %cst_133 [2] : vector<2x5x20xf32> to vector<2x5xf32>
    %203 = vector.shape_cast %202 : vector<2x5xf32> to vector<2x5x1xf32>
    %204 = vector.broadcast %203 : vector<2x5x1xf32> to vector<2x5x20xf32>
    %205 = arith.subf %201, %204 : vector<2x5x20xf32>
    %206 = math.exp %205 : vector<2x5x20xf32>
    %207 = vector.shape_cast %206 : vector<2x5x20xf32> to vector<10x20xf32>
    %cst_134 = arith.constant dense<0.000000e+00> : vector<10x20xf32>
    %208 = tpu.matmul %207, %19, %cst_134 {dimension_numbers = #tpu.dot_dimension_numbers<[1], [0], [0], [1], [0, 0, 1, 1], [], []>} : vector<10x20xf32>, vector<20x20xf32>, vector<10x20xf32> -> vector<10x20xf32>
    %209 = tpu.reciprocal %208 {approx = true} : vector<10x20xf32> -> vector<10x20xf32>
    %210 = arith.mulf %207, %209 : vector<10x20xf32>
    %211 = vector.shape_cast %210 : vector<10x20xf32> to vector<2x5x20xf32>
    "tpu.trace_start"() <{level = 10 : i32, message = "bqk,bkd->bqd"}> : () -> ()
    %cst_135 = arith.constant dense<0.000000e+00> : vector<2x5x32xf32>
    %212 = tpu.matmul %211, %199, %cst_135 {dimension_numbers = #tpu.dot_dimension_numbers<[2], [1], [1], [2], [0, 0, 0, 1, 1, 2], [0], [0]>} : vector<2x5x20xf32>, vector<2x20x32xf32>, vector<2x5x32xf32> -> vector<2x5x32xf32>
    "tpu.trace_stop"() : () -> ()
    %213 = vector.shape_cast %212 : vector<2x5x32xf32> to vector<10x32xf32>
    %c1_136 = arith.constant 1 : index
    %c0_137 = arith.constant 0 : index
    %c0_138 = arith.constant 0 : index
    %214 = vector.load %arg19[%c1_136, %c0_137, %c0_138] : memref<4x32x32xf32, #tpu.memory_space<vmem>>, vector<1x32x32xf32>
    %215 = vector.shape_cast %214 : vector<1x32x32xf32> to vector<32x32xf32>
    %cst_139 = arith.constant dense<0.000000e+00> : vector<10x32xf32>
    %216 = tpu.matmul %213, %215, %cst_139 {dimension_numbers = #tpu.dot_dimension_numbers<[1], [0], [0], [1], [0, 0, 1, 1], [], []>} : vector<10x32xf32>, vector<32x32xf32>, vector<10x32xf32> -> vector<10x32xf32>
    %217 = arith.addf %143, %216 : vector<10x32xf32>
    %c1_140 = arith.constant 1 : index
    %c0_141 = arith.constant 0 : index
    %c0_142 = arith.constant 0 : index
    %218 = vector.load %arg20[%c1_140, %c0_141, %c0_142] : memref<4x1x32xf32, #tpu.memory_space<vmem>>, vector<1x1x32xf32>
    %219 = vector.shape_cast %218 : vector<1x1x32xf32> to vector<1x32xf32>
    %220 = vector.broadcast %219 : vector<1x32xf32> to vector<10x32xf32>
    %221 = arith.addf %217, %220 : vector<10x32xf32>
    %c1_143 = arith.constant 1 : index
    %c0_144 = arith.constant 0 : index
    %c0_145 = arith.constant 0 : index
    %222 = vector.load %arg21[%c1_143, %c0_144, %c0_145] : memref<4x1x32xf32, #tpu.memory_space<vmem>>, vector<1x1x32xf32>
    %223 = vector.shape_cast %222 : vector<1x1x32xf32> to vector<1x32xf32>
    %c1_146 = arith.constant 1 : index
    %c0_147 = arith.constant 0 : index
    %c0_148 = arith.constant 0 : index
    %224 = vector.load %arg22[%c1_146, %c0_147, %c0_148] : memref<4x1x32xf32, #tpu.memory_space<vmem>>, vector<1x1x32xf32>
    %225 = vector.shape_cast %224 : vector<1x1x32xf32> to vector<1x32xf32>
    %cst_149 = arith.constant dense<0.000000e+00> : vector<10xf32>
    %226 = vector.multi_reduction <add>, %221, %cst_149 [1] : vector<10x32xf32> to vector<10xf32>
    %227 = vector.shape_cast %226 : vector<10xf32> to vector<10x1xf32>
    %cst_150 = arith.constant 3.200000e+01 : f32
    %228 = vector.broadcast %cst_150 : f32 to vector<10x1xf32>
    %229 = arith.divf %227, %228 : vector<10x1xf32>
    %230 = vector.broadcast %229 : vector<10x1xf32> to vector<10x32xf32>
    %231 = arith.subf %221, %230 : vector<10x32xf32>
    %232 = arith.mulf %231, %231 : vector<10x32xf32>
    %cst_151 = arith.constant dense<0.000000e+00> : vector<10xf32>
    %233 = vector.multi_reduction <add>, %232, %cst_151 [1] : vector<10x32xf32> to vector<10xf32>
    %234 = vector.shape_cast %233 : vector<10xf32> to vector<10x1xf32>
    %cst_152 = arith.constant 3.200000e+01 : f32
    %235 = vector.broadcast %cst_152 : f32 to vector<10x1xf32>
    %236 = arith.divf %234, %235 : vector<10x1xf32>
    %237 = vector.broadcast %229 : vector<10x1xf32> to vector<10x32xf32>
    %238 = arith.subf %221, %237 : vector<10x32xf32>
    %cst_153 = arith.constant 9.99999997E-7 : f32
    %239 = vector.broadcast %cst_153 : f32 to vector<10x1xf32>
    %240 = arith.addf %236, %239 : vector<10x1xf32>
    %241 = math.rsqrt %240 : vector<10x1xf32>
    %242 = vector.broadcast %241 : vector<10x1xf32> to vector<10x32xf32>
    %243 = arith.mulf %238, %242 : vector<10x32xf32>
    %244 = vector.broadcast %223 : vector<1x32xf32> to vector<10x32xf32>
    %245 = arith.mulf %243, %244 : vector<10x32xf32>
    %246 = vector.broadcast %225 : vector<1x32xf32> to vector<10x32xf32>
    %247 = arith.addf %245, %246 : vector<10x32xf32>
    %c1_154 = arith.constant 1 : index
    %c0_155 = arith.constant 0 : index
    %c0_156 = arith.constant 0 : index
    %248 = vector.load %arg23[%c1_154, %c0_155, %c0_156] : memref<4x32x128xf32, #tpu.memory_space<vmem>>, vector<1x32x128xf32>
    %249 = vector.shape_cast %248 : vector<1x32x128xf32> to vector<32x128xf32>
    %cst_157 = arith.constant dense<0.000000e+00> : vector<10x128xf32>
    %250 = tpu.matmul %247, %249, %cst_157 {dimension_numbers = #tpu.dot_dimension_numbers<[1], [0], [0], [1], [0, 0, 1, 1], [], []>} : vector<10x32xf32>, vector<32x128xf32>, vector<10x128xf32> -> vector<10x128xf32>
    %c1_158 = arith.constant 1 : index
    %c0_159 = arith.constant 0 : index
    %c0_160 = arith.constant 0 : index
    %251 = vector.load %arg24[%c1_158, %c0_159, %c0_160] : memref<4x1x128xf32, #tpu.memory_space<vmem>>, vector<1x1x128xf32>
    %252 = vector.shape_cast %251 : vector<1x1x128xf32> to vector<1x128xf32>
    %253 = vector.broadcast %252 : vector<1x128xf32> to vector<10x128xf32>
    %254 = arith.addf %250, %253 : vector<10x128xf32>
    %cst_161 = arith.constant 5.000000e-01 : f32
    %255 = vector.broadcast %cst_161 : f32 to vector<10x128xf32>
    %256 = arith.mulf %255, %254 : vector<10x128xf32>
    %cst_162 = arith.constant 0.707106769 : f32
    %257 = vector.broadcast %cst_162 : f32 to vector<10x128xf32>
    %258 = arith.mulf %254, %257 : vector<10x128xf32>
    %259 = math.erf %258 : vector<10x128xf32>
    %cst_163 = arith.constant 1.000000e+00 : f32
    %260 = vector.broadcast %cst_163 : f32 to vector<10x128xf32>
    %261 = arith.addf %260, %259 : vector<10x128xf32>
    %262 = arith.mulf %256, %261 : vector<10x128xf32>
    %c1_164 = arith.constant 1 : index
    %c0_165 = arith.constant 0 : index
    %c0_166 = arith.constant 0 : index
    %263 = vector.load %arg25[%c1_164, %c0_165, %c0_166] : memref<4x128x32xf32, #tpu.memory_space<vmem>>, vector<1x128x32xf32>
    %264 = vector.shape_cast %263 : vector<1x128x32xf32> to vector<128x32xf32>
    %cst_167 = arith.constant dense<0.000000e+00> : vector<10x32xf32>
    %265 = tpu.matmul %262, %264, %cst_167 {dimension_numbers = #tpu.dot_dimension_numbers<[1], [0], [0], [1], [0, 0, 1, 1], [], []>} : vector<10x128xf32>, vector<128x32xf32>, vector<10x32xf32> -> vector<10x32xf32>
    %266 = arith.addf %221, %265 : vector<10x32xf32>
    %c1_168 = arith.constant 1 : index
    %c0_169 = arith.constant 0 : index
    %c0_170 = arith.constant 0 : index
    %267 = vector.load %arg26[%c1_168, %c0_169, %c0_170] : memref<4x1x32xf32, #tpu.memory_space<vmem>>, vector<1x1x32xf32>
    %268 = vector.shape_cast %267 : vector<1x1x32xf32> to vector<1x32xf32>
    %269 = vector.broadcast %268 : vector<1x32xf32> to vector<10x32xf32>
    %270 = arith.addf %266, %269 : vector<10x32xf32>
    %c1_171 = arith.constant 1 : index
    %c0_172 = arith.constant 0 : index
    %c0_173 = arith.constant 0 : index
    %271 = vector.load %arg27[%c1_171, %c0_172, %c0_173] : memref<4x10x32xf32, #tpu.memory_space<vmem>>, vector<1x10x32xf32>
    %272 = vector.shape_cast %271 : vector<1x10x32xf32> to vector<10x32xf32>
    %273 = vector.shape_cast %270 : vector<10x32xf32> to vector<1x10x32xf32>
    tpu.vector_store %arg27[%c1_171, %c0_172, %c0_173], %273 {strides = array<i32>} : memref<4x10x32xf32, #tpu.memory_space<vmem>>, vector<1x10x32xf32>,
    %c2 = arith.constant 2 : index
    %c0_174 = arith.constant 0 : index
    %c0_175 = arith.constant 0 : index
    %274 = vector.load %arg11[%c2, %c0_174, %c0_175] : memref<4x1x32xf32, #tpu.memory_space<vmem>>, vector<1x1x32xf32>
    %275 = vector.shape_cast %274 : vector<1x1x32xf32> to vector<1x32xf32>
    %c2_176 = arith.constant 2 : index
    %c0_177 = arith.constant 0 : index
    %c0_178 = arith.constant 0 : index
    %276 = vector.load %arg12[%c2_176, %c0_177, %c0_178] : memref<4x1x32xf32, #tpu.memory_space<vmem>>, vector<1x1x32xf32>
    %277 = vector.shape_cast %276 : vector<1x1x32xf32> to vector<1x32xf32>
    %cst_179 = arith.constant dense<0.000000e+00> : vector<10xf32>
    %278 = vector.multi_reduction <add>, %270, %cst_179 [1] : vector<10x32xf32> to vector<10xf32>
    %279 = vector.shape_cast %278 : vector<10xf32> to vector<10x1xf32>
    %cst_180 = arith.constant 3.200000e+01 : f32
    %280 = vector.broadcast %cst_180 : f32 to vector<10x1xf32>
    %281 = arith.divf %279, %280 : vector<10x1xf32>
    %282 = vector.broadcast %281 : vector<10x1xf32> to vector<10x32xf32>
    %283 = arith.subf %270, %282 : vector<10x32xf32>
    %284 = arith.mulf %283, %283 : vector<10x32xf32>
    %cst_181 = arith.constant dense<0.000000e+00> : vector<10xf32>
    %285 = vector.multi_reduction <add>, %284, %cst_181 [1] : vector<10x32xf32> to vector<10xf32>
    %286 = vector.shape_cast %285 : vector<10xf32> to vector<10x1xf32>
    %cst_182 = arith.constant 3.200000e+01 : f32
    %287 = vector.broadcast %cst_182 : f32 to vector<10x1xf32>
    %288 = arith.divf %286, %287 : vector<10x1xf32>
    %289 = vector.broadcast %281 : vector<10x1xf32> to vector<10x32xf32>
    %290 = arith.subf %270, %289 : vector<10x32xf32>
    %cst_183 = arith.constant 9.99999997E-7 : f32
    %291 = vector.broadcast %cst_183 : f32 to vector<10x1xf32>
    %292 = arith.addf %288, %291 : vector<10x1xf32>
    %293 = math.rsqrt %292 : vector<10x1xf32>
    %294 = vector.broadcast %293 : vector<10x1xf32> to vector<10x32xf32>
    %295 = arith.mulf %290, %294 : vector<10x32xf32>
    %296 = vector.broadcast %275 : vector<1x32xf32> to vector<10x32xf32>
    %297 = arith.mulf %295, %296 : vector<10x32xf32>
    %298 = vector.broadcast %277 : vector<1x32xf32> to vector<10x32xf32>
    %299 = arith.addf %297, %298 : vector<10x32xf32>
    %c2_184 = arith.constant 2 : index
    %c0_185 = arith.constant 0 : index
    %c0_186 = arith.constant 0 : index
    %300 = vector.load %arg13[%c2_184, %c0_185, %c0_186] : memref<4x32x32xf32, #tpu.memory_space<vmem>>, vector<1x32x32xf32>
    %301 = vector.shape_cast %300 : vector<1x32x32xf32> to vector<32x32xf32>
    %cst_187 = arith.constant dense<0.000000e+00> : vector<10x32xf32>
    %302 = tpu.matmul %299, %301, %cst_187 {dimension_numbers = #tpu.dot_dimension_numbers<[1], [0], [0], [1], [0, 0, 1, 1], [], []>} : vector<10x32xf32>, vector<32x32xf32>, vector<10x32xf32> -> vector<10x32xf32>
    %c2_188 = arith.constant 2 : index
    %c0_189 = arith.constant 0 : index
    %c0_190 = arith.constant 0 : index
    %303 = vector.load %arg14[%c2_188, %c0_189, %c0_190] : memref<4x1x32xf32, #tpu.memory_space<vmem>>, vector<1x1x32xf32>
    %304 = vector.shape_cast %303 : vector<1x1x32xf32> to vector<1x32xf32>
    %305 = vector.broadcast %304 : vector<1x32xf32> to vector<10x32xf32>
    %306 = arith.addf %302, %305 : vector<10x32xf32>
    %c2_191 = arith.constant 2 : index
    %c0_192 = arith.constant 0 : index
    %c0_193 = arith.constant 0 : index
    %307 = vector.load %arg15[%c2_191, %c0_192, %c0_193] : memref<4x32x32xf32, #tpu.memory_space<vmem>>, vector<1x32x32xf32>
    %308 = vector.shape_cast %307 : vector<1x32x32xf32> to vector<32x32xf32>
    %cst_194 = arith.constant dense<0.000000e+00> : vector<10x32xf32>
    %309 = tpu.matmul %299, %308, %cst_194 {dimension_numbers = #tpu.dot_dimension_numbers<[1], [0], [0], [1], [0, 0, 1, 1], [], []>} : vector<10x32xf32>, vector<32x32xf32>, vector<10x32xf32> -> vector<10x32xf32>
    %c2_195 = arith.constant 2 : index
    %c0_196 = arith.constant 0 : index
    %c0_197 = arith.constant 0 : index
    %310 = vector.load %arg16[%c2_195, %c0_196, %c0_197] : memref<4x1x32xf32, #tpu.memory_space<vmem>>, vector<1x1x32xf32>
    %311 = vector.shape_cast %310 : vector<1x1x32xf32> to vector<1x32xf32>
    %312 = vector.broadcast %311 : vector<1x32xf32> to vector<10x32xf32>
    %313 = arith.addf %309, %312 : vector<10x32xf32>
    %c2_198 = arith.constant 2 : index
    %c0_199 = arith.constant 0 : index
    %c0_200 = arith.constant 0 : index
    %314 = vector.load %arg17[%c2_198, %c0_199, %c0_200] : memref<4x32x32xf32, #tpu.memory_space<vmem>>, vector<1x32x32xf32>
    %315 = vector.shape_cast %314 : vector<1x32x32xf32> to vector<32x32xf32>
    %cst_201 = arith.constant dense<0.000000e+00> : vector<10x32xf32>
    %316 = tpu.matmul %299, %315, %cst_201 {dimension_numbers = #tpu.dot_dimension_numbers<[1], [0], [0], [1], [0, 0, 1, 1], [], []>} : vector<10x32xf32>, vector<32x32xf32>, vector<10x32xf32> -> vector<10x32xf32>
    %c2_202 = arith.constant 2 : index
    %c0_203 = arith.constant 0 : index
    %c0_204 = arith.constant 0 : index
    %317 = vector.load %arg18[%c2_202, %c0_203, %c0_204] : memref<4x1x32xf32, #tpu.memory_space<vmem>>, vector<1x1x32xf32>
    %318 = vector.shape_cast %317 : vector<1x1x32xf32> to vector<1x32xf32>
    %319 = vector.broadcast %318 : vector<1x32xf32> to vector<10x32xf32>
    %320 = arith.addf %316, %319 : vector<10x32xf32>
    %cst_205 = arith.constant dense<0.000000e+00> : vector<40x32xf32>
    %321 = tpu.matmul %17, %313, %cst_205 {dimension_numbers = #tpu.dot_dimension_numbers<[1], [0], [0], [1], [0, 0, 1, 1], [], []>} : vector<40x10xf32>, vector<10x32xf32>, vector<40x32xf32> -> vector<40x32xf32>
    %322 = arith.mulf %321, %18 : vector<40x32xf32>
    %323 = vector.shape_cast %322 : vector<40x32xf32> to vector<2x20x32xf32>
    %cst_206 = arith.constant dense<0.000000e+00> : vector<40x32xf32>
    %324 = tpu.matmul %17, %320, %cst_206 {dimension_numbers = #tpu.dot_dimension_numbers<[1], [0], [0], [1], [0, 0, 1, 1], [], []>} : vector<40x10xf32>, vector<10x32xf32>, vector<40x32xf32> -> vector<40x32xf32>
    %325 = arith.mulf %324, %18 : vector<40x32xf32>
    %326 = vector.shape_cast %325 : vector<40x32xf32> to vector<2x20x32xf32>
    %327 = vector.shape_cast %306 : vector<10x32xf32> to vector<2x5x32xf32>
    "tpu.trace_start"() <{level = 10 : i32, message = "bqd,bkd->bqk"}> : () -> ()
    %cst_207 = arith.constant dense<0.000000e+00> : vector<2x5x20xf32>
    %328 = tpu.matmul %327, %323, %cst_207 {dimension_numbers = #tpu.dot_dimension_numbers<[2], [2], [1], [1], [0, 0, 0, 1, 1, 1], [0], [0]>} : vector<2x5x32xf32>, vector<2x20x32xf32>, vector<2x5x20xf32> -> vector<2x5x20xf32>
    "tpu.trace_stop"() : () -> ()
    %cst_208 = arith.constant dense<0xFF800000> : vector<2x5xf32>
    %329 = vector.multi_reduction <maximumf>, %328, %cst_208 [2] : vector<2x5x20xf32> to vector<2x5xf32>
    %330 = vector.shape_cast %329 : vector<2x5xf32> to vector<2x5x1xf32>
    %331 = vector.broadcast %330 : vector<2x5x1xf32> to vector<2x5x20xf32>
    %332 = arith.subf %328, %331 : vector<2x5x20xf32>
    %333 = math.exp %332 : vector<2x5x20xf32>
    %334 = vector.shape_cast %333 : vector<2x5x20xf32> to vector<10x20xf32>
    %cst_209 = arith.constant dense<0.000000e+00> : vector<10x20xf32>
    %335 = tpu.matmul %334, %19, %cst_209 {dimension_numbers = #tpu.dot_dimension_numbers<[1], [0], [0], [1], [0, 0, 1, 1], [], []>} : vector<10x20xf32>, vector<20x20xf32>, vector<10x20xf32> -> vector<10x20xf32>
    %336 = tpu.reciprocal %335 {approx = true} : vector<10x20xf32> -> vector<10x20xf32>
    %337 = arith.mulf %334, %336 : vector<10x20xf32>
    %338 = vector.shape_cast %337 : vector<10x20xf32> to vector<2x5x20xf32>
    "tpu.trace_start"() <{level = 10 : i32, message = "bqk,bkd->bqd"}> : () -> ()
    %cst_210 = arith.constant dense<0.000000e+00> : vector<2x5x32xf32>
    %339 = tpu.matmul %338, %326, %cst_210 {dimension_numbers = #tpu.dot_dimension_numbers<[2], [1], [1], [2], [0, 0, 0, 1, 1, 2], [0], [0]>} : vector<2x5x20xf32>, vector<2x20x32xf32>, vector<2x5x32xf32> -> vector<2x5x32xf32>
    "tpu.trace_stop"() : () -> ()
    %340 = vector.shape_cast %339 : vector<2x5x32xf32> to vector<10x32xf32>
    %c2_211 = arith.constant 2 : index
    %c0_212 = arith.constant 0 : index
    %c0_213 = arith.constant 0 : index
    %341 = vector.load %arg19[%c2_211, %c0_212, %c0_213] : memref<4x32x32xf32, #tpu.memory_space<vmem>>, vector<1x32x32xf32>
    %342 = vector.shape_cast %341 : vector<1x32x32xf32> to vector<32x32xf32>
    %cst_214 = arith.constant dense<0.000000e+00> : vector<10x32xf32>
    %343 = tpu.matmul %340, %342, %cst_214 {dimension_numbers = #tpu.dot_dimension_numbers<[1], [0], [0], [1], [0, 0, 1, 1], [], []>} : vector<10x32xf32>, vector<32x32xf32>, vector<10x32xf32> -> vector<10x32xf32>
    %344 = arith.addf %270, %343 : vector<10x32xf32>
    %c2_215 = arith.constant 2 : index
    %c0_216 = arith.constant 0 : index
    %c0_217 = arith.constant 0 : index
    %345 = vector.load %arg20[%c2_215, %c0_216, %c0_217] : memref<4x1x32xf32, #tpu.memory_space<vmem>>, vector<1x1x32xf32>
    %346 = vector.shape_cast %345 : vector<1x1x32xf32> to vector<1x32xf32>
    %347 = vector.broadcast %346 : vector<1x32xf32> to vector<10x32xf32>
    %348 = arith.addf %344, %347 : vector<10x32xf32>
    %c2_218 = arith.constant 2 : index
    %c0_219 = arith.constant 0 : index
    %c0_220 = arith.constant 0 : index
    %349 = vector.load %arg21[%c2_218, %c0_219, %c0_220] : memref<4x1x32xf32, #tpu.memory_space<vmem>>, vector<1x1x32xf32>
    %350 = vector.shape_cast %349 : vector<1x1x32xf32> to vector<1x32xf32>
    %c2_221 = arith.constant 2 : index
    %c0_222 = arith.constant 0 : index
    %c0_223 = arith.constant 0 : index
    %351 = vector.load %arg22[%c2_221, %c0_222, %c0_223] : memref<4x1x32xf32, #tpu.memory_space<vmem>>, vector<1x1x32xf32>
    %352 = vector.shape_cast %351 : vector<1x1x32xf32> to vector<1x32xf32>
    %cst_224 = arith.constant dense<0.000000e+00> : vector<10xf32>
    %353 = vector.multi_reduction <add>, %348, %cst_224 [1] : vector<10x32xf32> to vector<10xf32>
    %354 = vector.shape_cast %353 : vector<10xf32> to vector<10x1xf32>
    %cst_225 = arith.constant 3.200000e+01 : f32
    %355 = vector.broadcast %cst_225 : f32 to vector<10x1xf32>
    %356 = arith.divf %354, %355 : vector<10x1xf32>
    %357 = vector.broadcast %356 : vector<10x1xf32> to vector<10x32xf32>
    %358 = arith.subf %348, %357 : vector<10x32xf32>
    %359 = arith.mulf %358, %358 : vector<10x32xf32>
    %cst_226 = arith.constant dense<0.000000e+00> : vector<10xf32>
    %360 = vector.multi_reduction <add>, %359, %cst_226 [1] : vector<10x32xf32> to vector<10xf32>
    %361 = vector.shape_cast %360 : vector<10xf32> to vector<10x1xf32>
    %cst_227 = arith.constant 3.200000e+01 : f32
    %362 = vector.broadcast %cst_227 : f32 to vector<10x1xf32>
    %363 = arith.divf %361, %362 : vector<10x1xf32>
    %364 = vector.broadcast %356 : vector<10x1xf32> to vector<10x32xf32>
    %365 = arith.subf %348, %364 : vector<10x32xf32>
    %cst_228 = arith.constant 9.99999997E-7 : f32
    %366 = vector.broadcast %cst_228 : f32 to vector<10x1xf32>
    %367 = arith.addf %363, %366 : vector<10x1xf32>
    %368 = math.rsqrt %367 : vector<10x1xf32>
    %369 = vector.broadcast %368 : vector<10x1xf32> to vector<10x32xf32>
    %370 = arith.mulf %365, %369 : vector<10x32xf32>
    %371 = vector.broadcast %350 : vector<1x32xf32> to vector<10x32xf32>
    %372 = arith.mulf %370, %371 : vector<10x32xf32>
    %373 = vector.broadcast %352 : vector<1x32xf32> to vector<10x32xf32>
    %374 = arith.addf %372, %373 : vector<10x32xf32>
    %c2_229 = arith.constant 2 : index
    %c0_230 = arith.constant 0 : index
    %c0_231 = arith.constant 0 : index
    %375 = vector.load %arg23[%c2_229, %c0_230, %c0_231] : memref<4x32x128xf32, #tpu.memory_space<vmem>>, vector<1x32x128xf32>
    %376 = vector.shape_cast %375 : vector<1x32x128xf32> to vector<32x128xf32>
    %cst_232 = arith.constant dense<0.000000e+00> : vector<10x128xf32>
    %377 = tpu.matmul %374, %376, %cst_232 {dimension_numbers = #tpu.dot_dimension_numbers<[1], [0], [0], [1], [0, 0, 1, 1], [], []>} : vector<10x32xf32>, vector<32x128xf32>, vector<10x128xf32> -> vector<10x128xf32>
    %c2_233 = arith.constant 2 : index
    %c0_234 = arith.constant 0 : index
    %c0_235 = arith.constant 0 : index
    %378 = vector.load %arg24[%c2_233, %c0_234, %c0_235] : memref<4x1x128xf32, #tpu.memory_space<vmem>>, vector<1x1x128xf32>
    %379 = vector.shape_cast %378 : vector<1x1x128xf32> to vector<1x128xf32>
    %380 = vector.broadcast %379 : vector<1x128xf32> to vector<10x128xf32>
    %381 = arith.addf %377, %380 : vector<10x128xf32>
    %cst_236 = arith.constant 5.000000e-01 : f32
    %382 = vector.broadcast %cst_236 : f32 to vector<10x128xf32>
    %383 = arith.mulf %382, %381 : vector<10x128xf32>
    %cst_237 = arith.constant 0.707106769 : f32
    %384 = vector.broadcast %cst_237 : f32 to vector<10x128xf32>
    %385 = arith.mulf %381, %384 : vector<10x128xf32>
    %386 = math.erf %385 : vector<10x128xf32>
    %cst_238 = arith.constant 1.000000e+00 : f32
    %387 = vector.broadcast %cst_238 : f32 to vector<10x128xf32>
    %388 = arith.addf %387, %386 : vector<10x128xf32>
    %389 = arith.mulf %383, %388 : vector<10x128xf32>
    %c2_239 = arith.constant 2 : index
    %c0_240 = arith.constant 0 : index
    %c0_241 = arith.constant 0 : index
    %390 = vector.load %arg25[%c2_239, %c0_240, %c0_241] : memref<4x128x32xf32, #tpu.memory_space<vmem>>, vector<1x128x32xf32>
    %391 = vector.shape_cast %390 : vector<1x128x32xf32> to vector<128x32xf32>
    %cst_242 = arith.constant dense<0.000000e+00> : vector<10x32xf32>
    %392 = tpu.matmul %389, %391, %cst_242 {dimension_numbers = #tpu.dot_dimension_numbers<[1], [0], [0], [1], [0, 0, 1, 1], [], []>} : vector<10x128xf32>, vector<128x32xf32>, vector<10x32xf32> -> vector<10x32xf32>
    %393 = arith.addf %348, %392 : vector<10x32xf32>
    %c2_243 = arith.constant 2 : index
    %c0_244 = arith.constant 0 : index
    %c0_245 = arith.constant 0 : index
    %394 = vector.load %arg26[%c2_243, %c0_244, %c0_245] : memref<4x1x32xf32, #tpu.memory_space<vmem>>, vector<1x1x32xf32>
    %395 = vector.shape_cast %394 : vector<1x1x32xf32> to vector<1x32xf32>
    %396 = vector.broadcast %395 : vector<1x32xf32> to vector<10x32xf32>
    %397 = arith.addf %393, %396 : vector<10x32xf32>
    %c2_246 = arith.constant 2 : index
    %c0_247 = arith.constant 0 : index
    %c0_248 = arith.constant 0 : index
    %398 = vector.load %arg27[%c2_246, %c0_247, %c0_248] : memref<4x10x32xf32, #tpu.memory_space<vmem>>, vector<1x10x32xf32>
    %399 = vector.shape_cast %398 : vector<1x10x32xf32> to vector<10x32xf32>
    %400 = vector.shape_cast %397 : vector<10x32xf32> to vector<1x10x32xf32>
    tpu.vector_store %arg27[%c2_246, %c0_247, %c0_248], %400 {strides = array<i32>} : memref<4x10x32xf32, #tpu.memory_space<vmem>>, vector<1x10x32xf32>,
    %c3 = arith.constant 3 : index
    %c0_249 = arith.constant 0 : index
    %c0_250 = arith.constant 0 : index
    %401 = vector.load %arg11[%c3, %c0_249, %c0_250] : memref<4x1x32xf32, #tpu.memory_space<vmem>>, vector<1x1x32xf32>
    %402 = vector.shape_cast %401 : vector<1x1x32xf32> to vector<1x32xf32>
    %c3_251 = arith.constant 3 : index
    %c0_252 = arith.constant 0 : index
    %c0_253 = arith.constant 0 : index
    %403 = vector.load %arg12[%c3_251, %c0_252, %c0_253] : memref<4x1x32xf32, #tpu.memory_space<vmem>>, vector<1x1x32xf32>
    %404 = vector.shape_cast %403 : vector<1x1x32xf32> to vector<1x32xf32>
    %cst_254 = arith.constant dense<0.000000e+00> : vector<10xf32>
    %405 = vector.multi_reduction <add>, %397, %cst_254 [1] : vector<10x32xf32> to vector<10xf32>
    %406 = vector.shape_cast %405 : vector<10xf32> to vector<10x1xf32>
    %cst_255 = arith.constant 3.200000e+01 : f32
    %407 = vector.broadcast %cst_255 : f32 to vector<10x1xf32>
    %408 = arith.divf %406, %407 : vector<10x1xf32>
    %409 = vector.broadcast %408 : vector<10x1xf32> to vector<10x32xf32>
    %410 = arith.subf %397, %409 : vector<10x32xf32>
    %411 = arith.mulf %410, %410 : vector<10x32xf32>
    %cst_256 = arith.constant dense<0.000000e+00> : vector<10xf32>
    %412 = vector.multi_reduction <add>, %411, %cst_256 [1] : vector<10x32xf32> to vector<10xf32>
    %413 = vector.shape_cast %412 : vector<10xf32> to vector<10x1xf32>
    %cst_257 = arith.constant 3.200000e+01 : f32
    %414 = vector.broadcast %cst_257 : f32 to vector<10x1xf32>
    %415 = arith.divf %413, %414 : vector<10x1xf32>
    %416 = vector.broadcast %408 : vector<10x1xf32> to vector<10x32xf32>
    %417 = arith.subf %397, %416 : vector<10x32xf32>
    %cst_258 = arith.constant 9.99999997E-7 : f32
    %418 = vector.broadcast %cst_258 : f32 to vector<10x1xf32>
    %419 = arith.addf %415, %418 : vector<10x1xf32>
    %420 = math.rsqrt %419 : vector<10x1xf32>
    %421 = vector.broadcast %420 : vector<10x1xf32> to vector<10x32xf32>
    %422 = arith.mulf %417, %421 : vector<10x32xf32>
    %423 = vector.broadcast %402 : vector<1x32xf32> to vector<10x32xf32>
    %424 = arith.mulf %422, %423 : vector<10x32xf32>
    %425 = vector.broadcast %404 : vector<1x32xf32> to vector<10x32xf32>
    %426 = arith.addf %424, %425 : vector<10x32xf32>
    %c3_259 = arith.constant 3 : index
    %c0_260 = arith.constant 0 : index
    %c0_261 = arith.constant 0 : index
    %427 = vector.load %arg13[%c3_259, %c0_260, %c0_261] : memref<4x32x32xf32, #tpu.memory_space<vmem>>, vector<1x32x32xf32>
    %428 = vector.shape_cast %427 : vector<1x32x32xf32> to vector<32x32xf32>
    %cst_262 = arith.constant dense<0.000000e+00> : vector<10x32xf32>
    %429 = tpu.matmul %426, %428, %cst_262 {dimension_numbers = #tpu.dot_dimension_numbers<[1], [0], [0], [1], [0, 0, 1, 1], [], []>} : vector<10x32xf32>, vector<32x32xf32>, vector<10x32xf32> -> vector<10x32xf32>
    %c3_263 = arith.constant 3 : index
    %c0_264 = arith.constant 0 : index
    %c0_265 = arith.constant 0 : index
    %430 = vector.load %arg14[%c3_263, %c0_264, %c0_265] : memref<4x1x32xf32, #tpu.memory_space<vmem>>, vector<1x1x32xf32>
    %431 = vector.shape_cast %430 : vector<1x1x32xf32> to vector<1x32xf32>
    %432 = vector.broadcast %431 : vector<1x32xf32> to vector<10x32xf32>
    %433 = arith.addf %429, %432 : vector<10x32xf32>
    %c3_266 = arith.constant 3 : index
    %c0_267 = arith.constant 0 : index
    %c0_268 = arith.constant 0 : index
    %434 = vector.load %arg15[%c3_266, %c0_267, %c0_268] : memref<4x32x32xf32, #tpu.memory_space<vmem>>, vector<1x32x32xf32>
    %435 = vector.shape_cast %434 : vector<1x32x32xf32> to vector<32x32xf32>
    %cst_269 = arith.constant dense<0.000000e+00> : vector<10x32xf32>
    %436 = tpu.matmul %426, %435, %cst_269 {dimension_numbers = #tpu.dot_dimension_numbers<[1], [0], [0], [1], [0, 0, 1, 1], [], []>} : vector<10x32xf32>, vector<32x32xf32>, vector<10x32xf32> -> vector<10x32xf32>
    %c3_270 = arith.constant 3 : index
    %c0_271 = arith.constant 0 : index
    %c0_272 = arith.constant 0 : index
    %437 = vector.load %arg16[%c3_270, %c0_271, %c0_272] : memref<4x1x32xf32, #tpu.memory_space<vmem>>, vector<1x1x32xf32>
    %438 = vector.shape_cast %437 : vector<1x1x32xf32> to vector<1x32xf32>
    %439 = vector.broadcast %438 : vector<1x32xf32> to vector<10x32xf32>
    %440 = arith.addf %436, %439 : vector<10x32xf32>
    %c3_273 = arith.constant 3 : index
    %c0_274 = arith.constant 0 : index
    %c0_275 = arith.constant 0 : index
    %441 = vector.load %arg17[%c3_273, %c0_274, %c0_275] : memref<4x32x32xf32, #tpu.memory_space<vmem>>, vector<1x32x32xf32>
    %442 = vector.shape_cast %441 : vector<1x32x32xf32> to vector<32x32xf32>
    %cst_276 = arith.constant dense<0.000000e+00> : vector<10x32xf32>
    %443 = tpu.matmul %426, %442, %cst_276 {dimension_numbers = #tpu.dot_dimension_numbers<[1], [0], [0], [1], [0, 0, 1, 1], [], []>} : vector<10x32xf32>, vector<32x32xf32>, vector<10x32xf32> -> vector<10x32xf32>
    %c3_277 = arith.constant 3 : index
    %c0_278 = arith.constant 0 : index
    %c0_279 = arith.constant 0 : index
    %444 = vector.load %arg18[%c3_277, %c0_278, %c0_279] : memref<4x1x32xf32, #tpu.memory_space<vmem>>, vector<1x1x32xf32>
    %445 = vector.shape_cast %444 : vector<1x1x32xf32> to vector<1x32xf32>
    %446 = vector.broadcast %445 : vector<1x32xf32> to vector<10x32xf32>
    %447 = arith.addf %443, %446 : vector<10x32xf32>
    %cst_280 = arith.constant dense<0.000000e+00> : vector<40x32xf32>
    %448 = tpu.matmul %17, %440, %cst_280 {dimension_numbers = #tpu.dot_dimension_numbers<[1], [0], [0], [1], [0, 0, 1, 1], [], []>} : vector<40x10xf32>, vector<10x32xf32>, vector<40x32xf32> -> vector<40x32xf32>
    %449 = arith.mulf %448, %18 : vector<40x32xf32>
    %450 = vector.shape_cast %449 : vector<40x32xf32> to vector<2x20x32xf32>
    %cst_281 = arith.constant dense<0.000000e+00> : vector<40x32xf32>
    %451 = tpu.matmul %17, %447, %cst_281 {dimension_numbers = #tpu.dot_dimension_numbers<[1], [0], [0], [1], [0, 0, 1, 1], [], []>} : vector<40x10xf32>, vector<10x32xf32>, vector<40x32xf32> -> vector<40x32xf32>
    %452 = arith.mulf %451, %18 : vector<40x32xf32>
    %453 = vector.shape_cast %452 : vector<40x32xf32> to vector<2x20x32xf32>
    %454 = vector.shape_cast %433 : vector<10x32xf32> to vector<2x5x32xf32>
    "tpu.trace_start"() <{level = 10 : i32, message = "bqd,bkd->bqk"}> : () -> ()
    %cst_282 = arith.constant dense<0.000000e+00> : vector<2x5x20xf32>
    %455 = tpu.matmul %454, %450, %cst_282 {dimension_numbers = #tpu.dot_dimension_numbers<[2], [2], [1], [1], [0, 0, 0, 1, 1, 1], [0], [0]>} : vector<2x5x32xf32>, vector<2x20x32xf32>, vector<2x5x20xf32> -> vector<2x5x20xf32>
    "tpu.trace_stop"() : () -> ()
    %cst_283 = arith.constant dense<0xFF800000> : vector<2x5xf32>
    %456 = vector.multi_reduction <maximumf>, %455, %cst_283 [2] : vector<2x5x20xf32> to vector<2x5xf32>
    %457 = vector.shape_cast %456 : vector<2x5xf32> to vector<2x5x1xf32>
    %458 = vector.broadcast %457 : vector<2x5x1xf32> to vector<2x5x20xf32>
    %459 = arith.subf %455, %458 : vector<2x5x20xf32>
    %460 = math.exp %459 : vector<2x5x20xf32>
    %461 = vector.shape_cast %460 : vector<2x5x20xf32> to vector<10x20xf32>
    %cst_284 = arith.constant dense<0.000000e+00> : vector<10x20xf32>
    %462 = tpu.matmul %461, %19, %cst_284 {dimension_numbers = #tpu.dot_dimension_numbers<[1], [0], [0], [1], [0, 0, 1, 1], [], []>} : vector<10x20xf32>, vector<20x20xf32>, vector<10x20xf32> -> vector<10x20xf32>
    %463 = tpu.reciprocal %462 {approx = true} : vector<10x20xf32> -> vector<10x20xf32>
    %464 = arith.mulf %461, %463 : vector<10x20xf32>
    %465 = vector.shape_cast %464 : vector<10x20xf32> to vector<2x5x20xf32>
    "tpu.trace_start"() <{level = 10 : i32, message = "bqk,bkd->bqd"}> : () -> ()
    %cst_285 = arith.constant dense<0.000000e+00> : vector<2x5x32xf32>
    %466 = tpu.matmul %465, %453, %cst_285 {dimension_numbers = #tpu.dot_dimension_numbers<[2], [1], [1], [2], [0, 0, 0, 1, 1, 2], [0], [0]>} : vector<2x5x20xf32>, vector<2x20x32xf32>, vector<2x5x32xf32> -> vector<2x5x32xf32>
    "tpu.trace_stop"() : () -> ()
    %467 = vector.shape_cast %466 : vector<2x5x32xf32> to vector<10x32xf32>
    %c3_286 = arith.constant 3 : index
    %c0_287 = arith.constant 0 : index
    %c0_288 = arith.constant 0 : index
    %468 = vector.load %arg19[%c3_286, %c0_287, %c0_288] : memref<4x32x32xf32, #tpu.memory_space<vmem>>, vector<1x32x32xf32>
    %469 = vector.shape_cast %468 : vector<1x32x32xf32> to vector<32x32xf32>
    %cst_289 = arith.constant dense<0.000000e+00> : vector<10x32xf32>
    %470 = tpu.matmul %467, %469, %cst_289 {dimension_numbers = #tpu.dot_dimension_numbers<[1], [0], [0], [1], [0, 0, 1, 1], [], []>} : vector<10x32xf32>, vector<32x32xf32>, vector<10x32xf32> -> vector<10x32xf32>
    %471 = arith.addf %397, %470 : vector<10x32xf32>
    %c3_290 = arith.constant 3 : index
    %c0_291 = arith.constant 0 : index
    %c0_292 = arith.constant 0 : index
    %472 = vector.load %arg20[%c3_290, %c0_291, %c0_292] : memref<4x1x32xf32, #tpu.memory_space<vmem>>, vector<1x1x32xf32>
    %473 = vector.shape_cast %472 : vector<1x1x32xf32> to vector<1x32xf32>
    %474 = vector.broadcast %473 : vector<1x32xf32> to vector<10x32xf32>
    %475 = arith.addf %471, %474 : vector<10x32xf32>
    %c3_293 = arith.constant 3 : index
    %c0_294 = arith.constant 0 : index
    %c0_295 = arith.constant 0 : index
    %476 = vector.load %arg21[%c3_293, %c0_294, %c0_295] : memref<4x1x32xf32, #tpu.memory_space<vmem>>, vector<1x1x32xf32>
    %477 = vector.shape_cast %476 : vector<1x1x32xf32> to vector<1x32xf32>
    %c3_296 = arith.constant 3 : index
    %c0_297 = arith.constant 0 : index
    %c0_298 = arith.constant 0 : index
    %478 = vector.load %arg22[%c3_296, %c0_297, %c0_298] : memref<4x1x32xf32, #tpu.memory_space<vmem>>, vector<1x1x32xf32>
    %479 = vector.shape_cast %478 : vector<1x1x32xf32> to vector<1x32xf32>
    %cst_299 = arith.constant dense<0.000000e+00> : vector<10xf32>
    %480 = vector.multi_reduction <add>, %475, %cst_299 [1] : vector<10x32xf32> to vector<10xf32>
    %481 = vector.shape_cast %480 : vector<10xf32> to vector<10x1xf32>
    %cst_300 = arith.constant 3.200000e+01 : f32
    %482 = vector.broadcast %cst_300 : f32 to vector<10x1xf32>
    %483 = arith.divf %481, %482 : vector<10x1xf32>
    %484 = vector.broadcast %483 : vector<10x1xf32> to vector<10x32xf32>
    %485 = arith.subf %475, %484 : vector<10x32xf32>
    %486 = arith.mulf %485, %485 : vector<10x32xf32>
    %cst_301 = arith.constant dense<0.000000e+00> : vector<10xf32>
    %487 = vector.multi_reduction <add>, %486, %cst_301 [1] : vector<10x32xf32> to vector<10xf32>
    %488 = vector.shape_cast %487 : vector<10xf32> to vector<10x1xf32>
    %cst_302 = arith.constant 3.200000e+01 : f32
    %489 = vector.broadcast %cst_302 : f32 to vector<10x1xf32>
    %490 = arith.divf %488, %489 : vector<10x1xf32>
    %491 = vector.broadcast %483 : vector<10x1xf32> to vector<10x32xf32>
    %492 = arith.subf %475, %491 : vector<10x32xf32>
    %cst_303 = arith.constant 9.99999997E-7 : f32
    %493 = vector.broadcast %cst_303 : f32 to vector<10x1xf32>
    %494 = arith.addf %490, %493 : vector<10x1xf32>
    %495 = math.rsqrt %494 : vector<10x1xf32>
    %496 = vector.broadcast %495 : vector<10x1xf32> to vector<10x32xf32>
    %497 = arith.mulf %492, %496 : vector<10x32xf32>
    %498 = vector.broadcast %477 : vector<1x32xf32> to vector<10x32xf32>
    %499 = arith.mulf %497, %498 : vector<10x32xf32>
    %500 = vector.broadcast %479 : vector<1x32xf32> to vector<10x32xf32>
    %501 = arith.addf %499, %500 : vector<10x32xf32>
    %c3_304 = arith.constant 3 : index
    %c0_305 = arith.constant 0 : index
    %c0_306 = arith.constant 0 : index
    %502 = vector.load %arg23[%c3_304, %c0_305, %c0_306] : memref<4x32x128xf32, #tpu.memory_space<vmem>>, vector<1x32x128xf32>
    %503 = vector.shape_cast %502 : vector<1x32x128xf32> to vector<32x128xf32>
    %cst_307 = arith.constant dense<0.000000e+00> : vector<10x128xf32>
    %504 = tpu.matmul %501, %503, %cst_307 {dimension_numbers = #tpu.dot_dimension_numbers<[1], [0], [0], [1], [0, 0, 1, 1], [], []>} : vector<10x32xf32>, vector<32x128xf32>, vector<10x128xf32> -> vector<10x128xf32>
    %c3_308 = arith.constant 3 : index
    %c0_309 = arith.constant 0 : index
    %c0_310 = arith.constant 0 : index
    %505 = vector.load %arg24[%c3_308, %c0_309, %c0_310] : memref<4x1x128xf32, #tpu.memory_space<vmem>>, vector<1x1x128xf32>
    %506 = vector.shape_cast %505 : vector<1x1x128xf32> to vector<1x128xf32>
    %507 = vector.broadcast %506 : vector<1x128xf32> to vector<10x128xf32>
    %508 = arith.addf %504, %507 : vector<10x128xf32>
    %cst_311 = arith.constant 5.000000e-01 : f32
    %509 = vector.broadcast %cst_311 : f32 to vector<10x128xf32>
    %510 = arith.mulf %509, %508 : vector<10x128xf32>
    %cst_312 = arith.constant 0.707106769 : f32
    %511 = vector.broadcast %cst_312 : f32 to vector<10x128xf32>
    %512 = arith.mulf %508, %511 : vector<10x128xf32>
    %513 = math.erf %512 : vector<10x128xf32>
    %cst_313 = arith.constant 1.000000e+00 : f32
    %514 = vector.broadcast %cst_313 : f32 to vector<10x128xf32>
    %515 = arith.addf %514, %513 : vector<10x128xf32>
    %516 = arith.mulf %510, %515 : vector<10x128xf32>
    %c3_314 = arith.constant 3 : index
    %c0_315 = arith.constant 0 : index
    %c0_316 = arith.constant 0 : index
    %517 = vector.load %arg25[%c3_314, %c0_315, %c0_316] : memref<4x128x32xf32, #tpu.memory_space<vmem>>, vector<1x128x32xf32>
    %518 = vector.shape_cast %517 : vector<1x128x32xf32> to vector<128x32xf32>
    %cst_317 = arith.constant dense<0.000000e+00> : vector<10x32xf32>
    %519 = tpu.matmul %516, %518, %cst_317 {dimension_numbers = #tpu.dot_dimension_numbers<[1], [0], [0], [1], [0, 0, 1, 1], [], []>} : vector<10x128xf32>, vector<128x32xf32>, vector<10x32xf32> -> vector<10x32xf32>
    %520 = arith.addf %475, %519 : vector<10x32xf32>
    %c3_318 = arith.constant 3 : index
    %c0_319 = arith.constant 0 : index
    %c0_320 = arith.constant 0 : index
    %521 = vector.load %arg26[%c3_318, %c0_319, %c0_320] : memref<4x1x32xf32, #tpu.memory_space<vmem>>, vector<1x1x32xf32>
    %522 = vector.shape_cast %521 : vector<1x1x32xf32> to vector<1x32xf32>
    %523 = vector.broadcast %522 : vector<1x32xf32> to vector<10x32xf32>
    %524 = arith.addf %520, %523 : vector<10x32xf32>
    %c3_321 = arith.constant 3 : index
    %c0_322 = arith.constant 0 : index
    %c0_323 = arith.constant 0 : index
    %525 = vector.load %arg27[%c3_321, %c0_322, %c0_323] : memref<4x10x32xf32, #tpu.memory_space<vmem>>, vector<1x10x32xf32>
    %526 = vector.shape_cast %525 : vector<1x10x32xf32> to vector<10x32xf32>
    %527 = vector.shape_cast %524 : vector<10x32xf32> to vector<1x10x32xf32>
    tpu.vector_store %arg27[%c3_321, %c0_322, %c0_323], %527 {strides = array<i32>} : memref<4x10x32xf32, #tpu.memory_space<vmem>>, vector<1x10x32xf32>,
    return
  }
}

</mosaic_0001>

<bundles_post_ra>
// kernel: vit_forward.1
= control target key start
LH: loop header
LB: loop body
LE: loop exit
PB: predicated region body
PF: predicated region fallthrough
CT: control target
= control target key end

     0   :  { %v9613_v0 = vmov 0.0   ;;  %vm119_vm0 = vcmask 523264   ;;  %vm203_vm1 = vcmask 1044480   ;;  %vm196_vm2 = vcmask 39936   ;;  %s11548_s7 = inlined_call_operand.vmem [shape: f32[192,32], index: 7, kind: input, shape index: {}]   ;;  %s11549_s0 = inlined_call_operand.vmem [shape: f32[8,192], index: 0, kind: input, shape index: {}]   ;;  %s11550_s10 = inlined_call_operand.vmem [shape: f32[5,32], index: 10, kind: input, shape index: {}]   ;;  %s11551_s3 = inlined_call_operand.vmem [shape: f32[10,5], index: 3, kind: input, shape index: {}]   ;;  %s11552_s1 = inlined_call_operand.vmem [shape: f32[10,8], index: 1, kind: input, shape index: {}]   ;;  %s11553_s8 = inlined_call_operand.vmem [shape: f32[1,32], index: 8, kind: input, shape index: {}]   ;;  %s11554_s2 = inlined_call_operand.vmem [shape: f32[10,32], index: 2, kind: input, shape index: {}]   ;;  %s11555_s9 = inlined_call_operand.vmem [shape: f32[1,32], index: 9, kind: input, shape index: {}]   ;;  %s11556_s13 = inlined_call_operand.vmem [shape: f32[4,32,32], index: 13, kind: input, shape index: {}]   ;;  %s11557_s15 = inlined_call_operand.vmem [shape: f32[4,32,32], index: 15, kind: input, shape index: {}]   ;;  %s11558_s11 = inlined_call_operand.vmem [shape: f32[4,1,32], index: 11, kind: input, shape index: {}]   ;;  %s11559_s12 = inlined_call_operand.vmem [shape: f32[4,1,32], index: 12, kind: input, shape index: {}]   ;;  %s11560_s17 = inlined_call_operand.vmem [shape: f32[4,32,32], index: 17, kind: input, shape index: {}]   ;;  %s11561_s14 = inlined_call_operand.vmem [shape: f32[4,1,32], index: 14, kind: input, shape index: {}]   ;;  %s11562_s16 = inlined_call_operand.vmem [shape: f32[4,1,32], index: 16, kind: input, shape index: {}]   ;;  %s11563_s4 = inlined_call_operand.vmem [shape: f32[40,10], index: 4, kind: input, shape index: {}]   ;;  %s11564_s18 = inlined_call_operand.vmem [shape: f32[4,1,32], index: 18, kind: input, shape index: {}]   ;;  %s11565_s5 = inlined_call_operand.vmem [shape: f32[40,32], index: 5, kind: input, shape index: {}]   ;;  %s11566_s6 = inlined_call_operand.vmem [shape: f32[20,20], index: 6, kind: input, shape index: {}]   ;;  %s11567_s19 = inlined_call_operand.vmem [shape: f32[4,32,32], index: 19, kind: input, shape index: {}]   ;;  %s11568_s20 = inlined_call_operand.vmem [shape: f32[4,1,32], index: 20, kind: input, shape index: {}]   ;;  %s11569_s23 = inlined_call_operand.vmem [shape: f32[4,32,128], index: 23, kind: input, shape index: {}]   ;;  %s11570_s25 = inlined_call_operand.vmem [shape: f32[4,128,32], index: 25, kind: input, shape index: {}]   ;;  %s11571_s21 = inlined_call_operand.vmem [shape: f32[4,1,32], index: 21, kind: input, shape index: {}]   ;;  %s11572_s22 = inlined_call_operand.vmem [shape: f32[4,1,32], index: 22, kind: input, shape index: {}]   ;;  %s11573_s24 = inlined_call_operand.vmem [shape: f32[4,1,128], index: 24, kind: input, shape index: {}]   ;;  %s11574_s26 = inlined_call_operand.vmem [shape: f32[4,1,32], index: 26, kind: input, shape index: {}]   ;;  %s11575_s27 = inlined_call_operand.vmem [shape: f32[4,10,32], index: 27, kind: output, shape index: {}]  }
   0x1   :  { %11585 = sst [smem:[#allocation2_spill]] %s11548_s7  ;;  %123 = vmatprep.subr.mxu0 %v9613_v0  ;;  %vm295_vm3 = vcmask 64512   ;;  %vm394_vm4 = vcmask 261120   ;;  %vm398_vm5 = vcmask 254976   ;;  %vm9614_vm6 = vmmov 0  }
   0x2   :  { %11586 = sst [smem:[#allocation3_spill]] %s11549_s0  ;;  %vm719_vm7 = vcmask 1041408   ;;  %vm703_vm8 = vcmask 80896   ;;  %vm1419_vm9 = vcmask 1043456   ;;  %vm1247_vm10 = vcmask 159744  }
   0x3   :  { %11587 = sst [smem:[#allocation4_spill]] %s11550_s10  ;;  %vm1414_vm11 = vcmask 162816  }
   0x4   :  { %11588 = sst [smem:[#allocation5_spill]] %s11551_s3 }
   0x5   :  { %11589 = sst [smem:[#allocation6_spill]] %s11552_s1 }
   0x6   :  { %11590 = sst [smem:[#allocation7_spill]] %s11553_s8 }
   0x7   :  { %11591 = sst [smem:[#allocation8_spill]] %s11554_s2 }
   0x8   :  { %11592 = sst [smem:[#allocation9_spill]] %s11555_s9 }
   0x9   :  { %11593 = sst [smem:[#allocation10_spill]] %s11556_s13 }
   0xa   :  { %11594 = sst [smem:[#allocation11_spill]] %s11557_s15 }
   0xb   :  { %11595 = sst [smem:[#allocation12_spill]] %s11558_s11 }
   0xc   :  { %11596 = sst [smem:[#allocation13_spill]] %s11559_s12 }
   0xd   :  { %s11597_s13 = sld [smem:[#allocation2_spill]] }
   0xe   :  { %s11598_s9 = sld [smem:[#allocation3_spill]] }
   0xf   :  { %s11599_s30 = sld [smem:[#allocation4_spill]] }
  0x10   :  { %s11600_s28 = sld [smem:[#allocation5_spill]] }
  0x11   :  { %s11601_s29 = sld [smem:[#allocation6_spill]] }
  0x12   :  { %s11602_s12 = sld [smem:[#allocation7_spill]] }
  0x13   :  { %v103_v1 = vld [vmem:[%s11597_s13 + $0x78] sm:$0xff]  ;;  %v102_v2 = vld [vmem:[%s11597_s13 + $0x70] sm:$0xff]  ;;  %v101_v3 = vld [vmem:[%s11597_s13 + $0x68] sm:$0xff]  ;;  %s11603_s15 = sld [smem:[#allocation8_spill]] }
  0x14   :  { %124 = vmatpush1.msra.mxu0 %v103_v1  ;;  %v100_v4 = vld [vmem:[%s11597_s13 + $0x60] sm:$0xff]  ;;  %v99_v5 = vld [vmem:[%s11597_s13 + $0x58] sm:$0xff]  ;;  %v98_v6 = vld [vmem:[%s11597_s13 + $0x50] sm:$0xff]  ;;  %s11605_s2 = sld [smem:[#allocation10_spill]] }
  0x15   :  { %125 = vmatprep.subr.mxu0 %v9613_v0  ;;  %v87_v7 = vld [vmem:[%s11598_s9 + $0x8] sm:$0xff]  ;;  %v96_v9 = vld [vmem:[%s11597_s13 + $0x40] sm:$0xff]  ;;  %v95_v10 = vld [vmem:[%s11597_s13 + $0x38] sm:$0xff]  ;;  %s11608_s3 = sld [smem:[#allocation13_spill]] }
  0x16   :  { %126 = vmatpush1.msra.mxu0 %v102_v2  ;;  %8102 = vmatprep.mubr.msk.f32.mxu0 %vm119_vm0, %v87_v7  ;;  %v97_v8 = vld [vmem:[%s11597_s13 + $0x48] sm:$0xff]  ;;  %v94_v11 = vld [vmem:[%s11597_s13 + $0x30] sm:$0xff]  ;;  %v92_v13 = vld [vmem:[%s11597_s13 + $0x20] sm:$0xff] }
  0x17   :  { %127 = vmatprep.subr.mxu0 %v9613_v0  ;;  %v93_v12 = vld [vmem:[%s11597_s13 + $0x28] sm:$0xff]  ;;  %v91_v14 = vld [vmem:[%s11597_s13 + $0x18] sm:$0xff]  ;;  %v90_v15 = vld [vmem:[%s11597_s13 + $0x10] sm:$0xff] }
  0x18   :  { %128 = vmatpush1.msra.mxu0 %v101_v3  ;;  %v89_v16 = vld [vmem:[%s11597_s13 + $0x8] sm:$0xff]  ;;  %v88_v17 = vld [vmem:[%s11597_s13] sm:$0xff]  ;;  %v111_v18 = vld [vmem:[%s11597_s13 + $0xb8] sm:$0xff] }
  0x19   :  { %129 = vmatprep.subr.mxu0 %v9613_v0  ;;  %v110_v19 = vld [vmem:[%s11597_s13 + $0xb0] sm:$0xff]  ;;  %v109_v20 = vld [vmem:[%s11597_s13 + $0xa8] sm:$0xff]  ;;  %v108_v21 = vld [vmem:[%s11597_s13 + $0xa0] sm:$0xff] }
  0x1a   :  { %130 = vmatpush1.msra.mxu0 %v100_v4  ;;  %v107_v22 = vld [vmem:[%s11597_s13 + $0x98] sm:$0xff]  ;;  %v106_v23 = vld [vmem:[%s11597_s13 + $0x90] sm:$0xff]  ;;  %v105_v24 = vld [vmem:[%s11597_s13 + $0x88] sm:$0xff] }
  0x1b   :  { %131 = vmatprep.subr.mxu0 %v9613_v0  ;;  %v104_v25 = vld [vmem:[%s11597_s13 + $0x80] sm:$0xff]  ;;  %v194_v29 = vld [vmem:[%s11600_s28 + $0x8] sm:$0x3]  ;;  %s11604_s13 = sld [smem:[#allocation9_spill]]  ;;  %v442_v61 = vld [vmem:[%s11605_s2 + $0x18] sm:$0xff] }
  0x1c   :  { %132 = vmatpush1.msra.mxu0 %v99_v5  ;;  %v86_v26 = vld [vmem:[%s11598_s9] sm:$0xff]  ;;  %v283_v35 = vld [vmem:[%s11601_s29 + $0x8] sm:$0x3]  ;;  %v441_v62 = vld [vmem:[%s11605_s2 + $0x10] sm:$0xff]  ;;  %s11607_s9 = sld [smem:[#allocation12_spill]] }
  0x1d   :  { %133 = vmatprep.subr.mxu0 %v9613_v0  ;;  %v195_v27 = vld [vmem:[%s11599_s30] sm:$0x1f]  ;;  %v285_v36 = vld [vmem:[%s11603_s15 + $0x8] sm:$0x3] }
  0x1e   :  { %134 = vmatpush1.msra.mxu0 %v98_v6  ;;  %v193_v28 = vld [vmem:[%s11600_s28] sm:$0xff]  ;;  %v440_v63 = vld [vmem:[%s11605_s2 + $0x8] sm:$0xff]  ;;  %s11606_s28 = sld [smem:[#allocation11_spill]] }
  0x1f   :  { %135 = vmatprep.subr.mxu0 %v9613_v0  ;;  %v282_v30 = vld [vmem:[%s11601_s29] sm:$0xff] }
  0x20   :  { %136 = vmatpush1.msra.mxu0 %v97_v8  ;;  %8798 = vmatprep.mubr.msk.f32.mxu1 %vm295_vm3, %v282_v30  ;;  %v8101_v31 = vld [vmem:[%s11602_s12] ss:$0 sm:$0xff] }
  0x21   :  { %137 = vmatprep.subr.mxu0 %v9613_v0  ;;  %v8106_v37 = vld [vmem:[%s11604_s13] ss:$0 sm:$0xff] }
  0x22   :  { %138 = vmatpush1.msra.mxu0 %v96_v9  ;;  %v284_v38 = vld [vmem:[%s11603_s15] sm:$0xff]  ;;  %v294_v39 = vmul.f32 %v8106_v37, %v285_v36 }
  0x23   :  { %139 = vmatprep.subr.mxu0 %v9613_v0  ;;  %v293_v40 = vmul.f32 %v8106_v37, %v284_v38  ;;  %v439_v1 = vld [vmem:[%s11605_s2] sm:$0xff] }
  0x24   :  { %140 = vmatpush1.msra.mxu0 %v95_v10  ;;  %v534_v2 = vld [vmem:[%s11606_s28 + $0x18] sm:$0xff]  ;;  %v8109_v10 = vld [vmem:[%s11607_s9] ss:$0 sm:$0xff] }
  0x25   :  { %141 = vmatprep.subr.mxu0 %v9613_v0 }
  0x26   :  { %142 = vmatpush1.msra.mxu0 %v94_v11 }
  0x27   :  { %143 = vmatprep.subr.mxu0 %v9613_v0 }
  0x28   :  { %144 = vmatpush1.msra.mxu0 %v93_v12  ;;  %v8110_v12 = vld [vmem:[%s11608_s3] ss:$0 sm:$0xff] }
  0x29   :  { %145 = vmatprep.subr.mxu0 %v9613_v0 }
  0x2a   :  { %146 = vmatpush1.msra.mxu0 %v92_v13 }
  0x2b   :  { %147 = vmatprep.subr.mxu0 %v9613_v0 }
  0x2c   :  { %148 = vmatpush1.msra.mxu0 %v91_v14 }
  0x2d   :  { %149 = vmatprep.subr.mxu0 %v9613_v0 }
  0x2e   :  { %150 = vmatpush1.msra.mxu0 %v90_v15 }
  0x2f   :  { %151 = vmatprep.subr.mxu0 %v9613_v0 }
  0x30   :  { %152 = vmatpush1.msra.mxu0 %v89_v16 }
  0x31   :  { %153 = vmatprep.subr.mxu0 %v9613_v0 }
  0x32   :  { %154 = vmatpush1.msra.mxu0 %v88_v17 }
  0x33   :  { %171 = vmatprep.subr.mxu0 %v9613_v0 }
  0x34   :  { %172 = vmatpush2.msra.mxu0 %v111_v18 }
  0x35   :  { %173 = vmatprep.subr.mxu0 %v9613_v0 }
  0x36   :  { %174 = vmatpush2.msra.mxu0 %v110_v19  ;;  %v533_v19 = vld [vmem:[%s11606_s28 + $0x10] sm:$0xff] }
  0x37   :  { %175 = vmatprep.subr.mxu0 %v9613_v0 }
  0x38   :  { %176 = vmatpush2.msra.mxu0 %v109_v20  ;;  %v532_v20 = vld [vmem:[%s11606_s28 + $0x8] sm:$0xff] }
  0x39   :  { %177 = vmatprep.subr.mxu0 %v9613_v0 }
  0x3a   :  { %178 = vmatpush2.msra.mxu0 %v108_v21  ;;  %v531_v21 = vld [vmem:[%s11606_s28] sm:$0xff] }
  0x3b   :  { %179 = vmatprep.subr.mxu0 %v9613_v0 }
  0x3c   :  { %180 = vmatpush2.msra.mxu0 %v107_v22  ;;  %v620_v22 = vld [vmem:[%s11560_s17 + $0x18] sm:$0xff] }
  0x3d   :  { %181 = vmatprep.subr.mxu0 %v9613_v0 }
  0x3e   :  { %182 = vmatpush2.msra.mxu0 %v106_v23  ;;  %v619_v23 = vld [vmem:[%s11560_s17 + $0x10] sm:$0xff] }
  0x3f   :  { %183 = vmatprep.subr.mxu0 %v9613_v0 }
  0x40   :  { %184 = vmatpush2.msra.mxu0 %v105_v24  ;;  %v618_v24 = vld [vmem:[%s11560_s17 + $0x8] sm:$0xff] }
  0x41   :  { %185 = vmatprep.subr.mxu0 %v9613_v0 }
  0x42   :  { %186 = vmatpush2.msra.mxu0 %v104_v25  ;;  %v617_v25 = vld [vmem:[%s11560_s17] sm:$0xff] }
  0x43   :  { %188 = vmatmul.mubr.f32.vlgmr.msra.gmra.mxu0 %v86_v26  ;;  %8791 = vmatprep.subr.msk.mxu0 %vm203_vm1, %v195_v27  ;;  %v9615_v26 = vmov 1966171168  }
  0x44   :  { %8792 = vmatpush3.msk.msra.mxu0 %vm203_vm1, %v195_v27  ;;  %8793 = vmatprep.mubr.msk.f32.mxu0 %vm196_vm2, %v193_v28  ;;  %v940_v27 = vunpack.c.l.s4 %v9615_v26  ;;  %v942_v28 = vlaneseq }
  0x46   :  { %v943_v30 = vshrl.u32 %v942_v28, 7 }
  0x47   :  { %8794 = vmatmul.mubr.msk.f32.vlgmr.msra.gmra.mxu0 %vm196_vm2, %v194_v29  ;;  %v941_v29 = vunpack.c.0.s8 %v940_v27 }
 0x103   :  { %v189_v32 = vpop.f32.mrf.mxu0 }
 0x104   :  { %v190_v33 = vadd.f32 %v8101_v31, %v189_v32  ;;  %v8111_v31 = vld [vmem:[%s11561_s14] ss:$0 sm:$0xff] }
 0x105   :  { %v191_v34 = vpop.f32.mrf.mxu0 }
 0x106   :  { %8796 = vmatprep.subr.mxu1 %v190_v33  ;;  %v9951_v34 = vsub.s32 %v941_v29, %v943_v30 }
 0x107   :  { %8797 = vmatpush3.msra.mxu1 %v190_v33  ;;  %v8795_v41 = vpop.f32.mrf.mxu0 }
 0x108   :  { %8799 = vmatmul.mubr.msk.f32.vlgmr.msra.gmra.mxu1 %vm295_vm3, %v283_v35  ;;  %8801 = vmatprep.subr.mxu1 %v442_v61 }
 0x109   :  { %v273_v46 = vpop.f32.mrf.mxu0  ;;  %8802 = vmatpush3.msra.mxu1 %v442_v61 }
 0x10a   :  { %8803 = vmatprep.subr.mxu1 %v441_v62 }
 0x10b   :  { %8804 = vmatpush3.msra.mxu1 %v441_v62 }
 0x10c   :  { %8805 = vmatprep.subr.mxu1 %v440_v63 }
 0x10d   :  { %8806 = vmatpush3.msra.mxu1 %v440_v63 }
 0x10e   :  { %8807 = vmatprep.subr.mxu1 %v439_v1 }
 0x10f   :  { %8808 = vmatpush3.msra.mxu1 %v439_v1 }
 0x110   :  { %8812 = vmatprep.subr.mxu1 %v534_v2 }
 0x1c8   :  { %v8800_v42 = vpop.f32.mrf.mxu1 }
 0x1c9   :  { %v374_v44 = vadd.f32 %v8800_v42, %v294_v39 }
 0x1ca   :  { %v368_v43 = vpop.f32.mrf.mxu1 }
 0x1cb   :  { %v369_v45 = vadd.f32 %v368_v43, %v293_v40  ;;  %v9887_v48 = vadd.f32 %v8795_v41, %v374_v44  ;;  %v8114_v40 = vld [vmem:[%s11562_s16] ss:$0 sm:$0xff] }
 0x1cd   :  { %v9885_v47 = vadd.f32 %v369_v45, %v273_v46  ;;  %v399_v50 = vsel %vm398_vm5, %v9887_v48, 0.0 }
 0x1cf   :  { %v395_v49 = vsel %vm394_vm4, %v9885_v47, 0.0 }
 0x1d0   :  { %396 = vadd.xlane.f32.xlu0 %v395_v49 }
 0x1d4   :  { %400 = vadd.xlane.f32.xlu0 %v399_v50 }
 0x259   :  { %v397_v51 = vpop.xlane.xlu0 %396 }
 0x25a   :  { %v403_v52 = vmul.f32 0.03125, %v397_v51 }
 0x25c   :  { %v405_v53 = vsub.f32 %v9885_v47, %v403_v52  ;;  %v379_v52 = vld [vmem:[%s11563_s4] sm:$0xff] }
 0x25d   :  { %v401_v54 = vpop.xlane.xlu0 %400 }
 0x25e   :  { %v404_v55 = vmul.f32 0.03125, %v401_v54  ;;  %v407_v56 = vmul.f32 %v405_v53, %v405_v53 }
 0x260   :  { %v406_v57 = vsub.f32 %v9887_v48, %v404_v55  ;;  %v409_v58 = vsel %vm394_vm4, %v407_v56, 0.0 }
 0x261   :  { %410 = vadd.xlane.f32.xlu1 %v409_v58 }
 0x262   :  { %v408_v59 = vmul.f32 %v406_v57, %v406_v57 }
 0x264   :  { %v412_v60 = vsel %vm398_vm5, %v408_v59, 0.0 }
 0x265   :  { %413 = vadd.xlane.f32.xlu1 %v412_v60  ;;  %v380_v60 = vld [vmem:[%s11563_s4 + $0x8] sm:$0xff] }
 0x2ea   :  { %v411_v3 = vpop.xlane.xlu1 %410 }
 0x2eb   :  { %v415_v4 = vmul.f32 0.03125, %v411_v3 }
 0x2ed   :  { %v417_v5 = vadd.f32 1e-06, %v415_v4 }
 0x2ee   :  { %v414_v6 = vpop.xlane.xlu1 %413 }
 0x2ef   :  { %9496 = vrsqrt.f32 %v417_v5  ;;  %v416_v7 = vmul.f32 0.03125, %v414_v6  ;;  %v381_v5 = vld [vmem:[%s11563_s4 + $0x10] sm:$0xff] }
 0x2f1   :  { %v418_v8 = vadd.f32 1e-06, %v416_v7 }
 0x2f3   :  { %9498 = vrsqrt.f32 %v418_v8 }
 0x2fc   :  { %v9497_v9 = vpop.eup %9496 }
 0x2fd   :  { %v421_v11 = vmul.f32 %v9497_v9, %v405_v53  ;;  %v382_v9 = vld [vmem:[%s11563_s4 + $0x18] sm:$0xff] }
 0x2ff   :  { %v429_v13 = vmul.f32 %v8109_v10, %v421_v11 }
 0x300   :  { %v9499_v14 = vpop.eup %9498 }
 0x301   :  { %v422_v15 = vmul.f32 %v9499_v14, %v406_v57  ;;  %v437_v16 = vadd.f32 %v8110_v12, %v429_v13  ;;  %v8117_v57 = vld [vmem:[%s11564_s18] ss:$0 sm:$0xff] }
 0x303   :  { %v430_v17 = vmul.f32 %v8109_v10, %v422_v15  ;;  %8809 = vmatprep.mubr.msk.f32.mxu1 %vm394_vm4, %v437_v16  ;;  %v383_v10 = vld [vmem:[%s11563_s4 + $0x20] sm:$0xff] }
 0x305   :  { %v438_v18 = vadd.f32 %v8110_v12, %v430_v17  ;;  %v385_v17 = vld [vmem:[%s11565_s5 + $0x8] sm:$0xff] }
 0x307   :  { %8810 = vmatmul.mubr.msk.f32.vlgmr.msra.gmra.mxu1 %vm394_vm4, %v438_v18 }
 0x308   :  { %8813 = vmatpush3.msra.mxu1 %v534_v2  ;;  %8820 = vmatprep.mubr.msk.f32.mxu1 %vm394_vm4, %v437_v16 }
 0x309   :  { %8814 = vmatprep.subr.mxu1 %v533_v19 }
 0x30a   :  { %8815 = vmatpush3.msra.mxu1 %v533_v19 }
 0x30b   :  { %8816 = vmatprep.subr.mxu1 %v532_v20 }
 0x30c   :  { %8817 = vmatpush3.msra.mxu1 %v532_v20 }
 0x30d   :  { %8818 = vmatprep.subr.mxu1 %v531_v21 }
 0x30e   :  { %8819 = vmatpush3.msra.mxu1 %v531_v21 }
 0x30f   :  { %8821 = vmatmul.mubr.msk.f32.vlgmr.msra.gmra.mxu1 %vm394_vm4, %v438_v18  ;;  %8823 = vmatprep.subr.mxu1 %v620_v22 }
 0x310   :  { %8824 = vmatpush3.msra.mxu1 %v620_v22  ;;  %8831 = vmatprep.mubr.msk.f32.mxu1 %vm394_vm4, %v437_v16  ;;  %v384_v22 = vld [vmem:[%s11565_s5] sm:$0xff] }
 0x311   :  { %8825 = vmatprep.subr.mxu1 %v619_v23 }
 0x312   :  { %8826 = vmatpush3.msra.mxu1 %v619_v23 }
 0x313   :  { %8827 = vmatprep.subr.mxu1 %v618_v24 }
 0x314   :  { %8828 = vmatpush3.msra.mxu1 %v618_v24  ;;  %v386_v24 = vld [vmem:[%s11565_s5 + $0x10] sm:$0xff] }
 0x315   :  { %8829 = vmatprep.subr.mxu1 %v617_v25 }
 0x316   :  { %8830 = vmatpush3.msra.mxu1 %v617_v25 }
 0x317   :  { %8832 = vmatmul.mubr.msk.f32.vlgmr.msra.gmra.mxu1 %vm394_vm4, %v438_v18  ;;  %8834 = vmatprep.subr.mxu1 %v9613_v0 }
 0x318   :  { %8838 = vmatprep.mubr.msk.f32.mxu1 %vm9614_vm6, %v9613_v0 }
 0x3c7   :  { %v8811_v32 = vpop.f32.mrf.mxu1 }
 0x3c8   :  { %v528_v33 = vadd.f32 %v8811_v32, %v8111_v31 }
 0x3c9   :  { %v522_v35 = vpop.f32.mrf.mxu1 }
 0x3ca   :  { %v9953_v36 = vadd.f32 %v8111_v31, %v522_v35  ;;  %v993_v37 = vrot.slane %v528_v33, %v9951_v34 }
 0x3cc   :  { %v938_v38 = vcombine.high %v9953_v36, %v9953_v36  ;;  %v994_v42 = vcombine.high %v993_v37, %v993_v37  ;;  %v1001_v53 = vrot.slane %v993_v37, %v9951_v34  ;;  %v945_v11 = vrot.slane %v9953_v36, %v9951_v34 }
 0x3ce   :  { %v952_v39 = vrot.slane %v938_v38, %v9951_v34  ;;  %v1008_v54 = vrot.slane %v994_v42, %v9951_v34  ;;  %v953_v12 = vcombine.high %v945_v11, %v945_v11  ;;  %v961_v15 = vrot.slane %v945_v11, %v9951_v34 }
 0x3cf   :  { %v8822_v41 = vpop.f32.mrf.mxu1 }
 0x3d0   :  { %v954_v43 = vcombine.high %v952_v39, %v952_v39  ;;  %v9963_v44 = vrot.slane %v952_v39, %v9951_v34  ;;  %v614_v45 = vadd.f32 %v8822_v41, %v8114_v40  ;;  %v1150_v61 = vrot.slane %v1008_v54, %v9951_v34  ;;  %v388_v39 = vld [vmem:[%s11565_s5 + $0x20] sm:$0xff]  ;;  %v387_v41 = vld [vmem:[%s11565_s5 + $0x18] sm:$0xff] }
 0x3d1   :  { %v608_v46 = vpop.f32.mrf.mxu1  ;;  %v975_v13 = vrot.slane %v953_v12, %v9951_v34 }
 0x3d2   :  { %v982_v49 = vrot.slane %v954_v43, %v9951_v34  ;;  %v984_v50 = vcombine.high %v9963_v44, %v9963_v44  ;;  %v609_v51 = vadd.f32 %v8114_v40, %v608_v46  ;;  %8835 = vmatpush3.msk.msra.mxu1 %vm719_vm7, %v614_v45  ;;  %v1165_v6 = vrot.slane %v1150_v61, %v9951_v34 }
 0x3d3   :  { %8836 = vmatprep.subr.mxu1 %v9613_v0  ;;  %v1009_v18 = vcombine.low %v961_v15, %v975_v13  ;;  %v8132_v19 = vcombine.high %v961_v15, %v975_v13  ;;  %v1031_v37 = vrot.slane %v9963_v44, %v9951_v34 }
 0x3d4   :  { %v986_v55 = vcombine.high %v982_v49, %v982_v49  ;;  %v1128_v56 = vcombine.low %v982_v49, %v984_v50  ;;  %8837 = vmatpush3.msra.mxu1 %v609_v51 }
 0x3d5   :  { %8839 = vmatmul.mubr.msk.f32.vlgmr.msra.gmra.mxu1 %vm703_vm8, %v379_v52  ;;  %8853 = vmatprep.subr.mxu1 %v9613_v0  ;;  %v1017_v25 = vrot.slane %v1009_v18, %v9951_v34  ;;  %v1024_v26 = vrot.slane %v8132_v19, %v9951_v34  ;;  %v1046_v44 = vrot.slane %v1031_v37, %v9951_v34 }
 0x3d6   :  { %v1129_v58 = vcombine.low %v986_v55, %v1001_v53  ;;  %8841 = vmatprep.mubr.msk.f32.mxu1 %vm9614_vm6, %v9613_v0  ;;  %v1136_v62 = vrot.slane %v1128_v56, %v9951_v34 }
 0x3d7   :  { %v8833_v59 = vpop.f32.mrf.mxu1  ;;  %v1032_v32 = vcombine.low %v1017_v25, %v1024_v26 }
 0x3d8   :  { %v1143_v63 = vrot.slane %v1129_v58, %v9951_v34  ;;  %v700_v1 = vadd.f32 %v8833_v59, %v8117_v57 }
 0x3d9   :  { %v694_v2 = vpop.f32.mrf.mxu1  ;;  %8842 = vmatmul.mubr.msk.f32.gmra.mxu1 %vm703_vm8, %v380_v60  ;;  %v1039_v40 = vrot.slane %v1032_v32, %v9951_v34 }
 0x3da   :  { %v1151_v3 = vcombine.low %v1136_v62, %v1143_v63  ;;  %v695_v4 = vadd.f32 %v8117_v57, %v694_v2  ;;  %8854 = vmatpush3.msk.msra.mxu1 %vm719_vm7, %v700_v1  ;;  %8844 = vmatprep.mubr.msk.f32.mxu1 %vm9614_vm6, %v9613_v0 }
 0x3db   :  { %8855 = vmatprep.subr.mxu1 %v9613_v0  ;;  %v1047_v51 = vcombine.low %v1039_v40, %v1046_v44 }
 0x3dc   :  { %v1158_v7 = vrot.slane %v1151_v3, %v9951_v34  ;;  %8856 = vmatpush3.msra.mxu1 %v695_v4 }
 0x3dd   :  { %8845 = vmatmul.mubr.msk.f32.gmra.mxu1 %vm703_vm8, %v381_v5  ;;  %8872 = vmatprep.subr.mxu1 %v9613_v0 }
 0x3de   :  { %v10000_v8 = vcombine.low %v1158_v7, %v1165_v6  ;;  %8847 = vmatprep.mubr.msk.f32.mxu1 %vm9614_vm6, %v9613_v0 }
 0x3e1   :  { %8848 = vmatmul.mubr.msk.f32.gmra.mxu1 %vm703_vm8, %v382_v9 }
 0x3e2   :  { %8850 = vmatprep.mubr.msk.f32.mxu1 %vm9614_vm6, %v9613_v0 }
 0x3e5   :  { %8851 = vmatmul.mubr.msk.f32.gmra.mxu1 %vm703_vm8, %v383_v10 }
 0x3e6   :  { %8857 = vmatprep.mubr.msk.f32.mxu1 %vm9614_vm6, %v9613_v0 }
 0x3e9   :  { %8858 = vmatmul.mubr.msk.f32.vlgmr.msra.gmra.mxu1 %vm703_vm8, %v379_v52 }
 0x3ea   :  { %8860 = vmatprep.mubr.msk.f32.mxu1 %vm9614_vm6, %v9613_v0 }
 0x3ed   :  { %8861 = vmatmul.mubr.msk.f32.gmra.mxu1 %vm703_vm8, %v380_v60 }
 0x3ee   :  { %8863 = vmatprep.mubr.msk.f32.mxu1 %vm9614_vm6, %v9613_v0 }
 0x3f1   :  { %8864 = vmatmul.mubr.msk.f32.gmra.mxu1 %vm703_vm8, %v381_v5 }
 0x3f2   :  { %8866 = vmatprep.mubr.msk.f32.mxu1 %vm9614_vm6, %v9613_v0 }
 0x3f5   :  { %8867 = vmatmul.mubr.msk.f32.gmra.mxu1 %vm703_vm8, %v382_v9 }
 0x3f6   :  { %8869 = vmatprep.mubr.msk.f32.mxu1 %vm9614_vm6, %v9613_v0 }
 0x3f9   :  { %8870 = vmatmul.mubr.msk.f32.gmra.mxu1 %vm703_vm8, %v383_v10 }
 0x3fa   :  { %8878 = vmatprep.mubr.msk.f32.mxu1 %vm9614_vm6, %v9613_v0 }
 0x495   :  { %v789_v14 = vpop.f32.mrf.mxu1 }
 0x496   :  { %v813_v28 = vmul.f32 %v789_v14, %v384_v22 }
 0x497   :  { %v8840_v16 = vpop.f32.mrf.mxu1 }
 0x498   :  { %v823_v35 = vcombine.high %v813_v28, %v813_v28 }
 0x499   :  { %v794_v20 = vpop.f32.mrf.mxu1 }
 0x49a   :  { %v814_v21 = vmul.f32 %v794_v20, %v385_v17  ;;  %v1048_v43 = vcombine.low %v813_v28, %v823_v35 }
 0x49b   :  { %v8843_v23 = vpop.f32.mrf.mxu1 }
 0x49c   :  { %v824_v29 = vcombine.high %v814_v21, %v814_v21  ;;  %v10095_v23 = vld [vmem:[%s11566_s6 + $0x8] sm:$0xff] }
 0x49d   :  { %v799_v27 = vpop.f32.mrf.mxu1 }
 0x49e   :  { %v815_v30 = vmul.f32 %v799_v27, %v386_v24  ;;  %v1049_v36 = vcombine.low %v814_v21, %v824_v29 }
 0x49f   :  { %v8846_v31 = vpop.f32.mrf.mxu1 }
 0x4a0   :  { %8873 = vmatpush3.xpose.msk.msra.mxu1 %vm394_vm4, %v815_v30  ;;  %v825_v59 = vcombine.high %v815_v30, %v815_v30 }
 0x4a1   :  { %v804_v33 = vpop.f32.mrf.mxu1  ;;  %8874 = vmatprep.subr.mxu1 %v9613_v0 }
 0x4a2   :  { %v816_v49 = vmul.f32 %v804_v33, %v387_v41 }
 0x4a3   :  { %v8849_v38 = vpop.f32.mrf.mxu1 }
 0x4a4   :  { %8875 = vmatpush3.xpose.msk.msra.mxu1 %vm394_vm4, %v1049_v36  ;;  %v826_v53 = vcombine.high %v816_v49, %v816_v49  ;;  %v1167_v62 = vcombine.low %v825_v59, %v816_v49 }
 0x4a5   :  { %v809_v42 = vpop.f32.mrf.mxu1  ;;  %8876 = vmatprep.subr.mxu1 %v9613_v0 }
 0x4a6   :  { %v817_v45 = vmul.f32 %v809_v42, %v388_v39 }
 0x4a7   :  { %v8852_v46 = vpop.f32.mrf.mxu1 }
 0x4a8   :  { %v827_v50 = vcombine.high %v817_v45, %v817_v45  ;;  %8877 = vmatpush3.xpose.msk.msra.mxu1 %vm394_vm4, %v1048_v43  ;;  %v1168_v56 = vcombine.low %v826_v53, %v817_v45 }
 0x4a9   :  { %8881 = vmatprep.subr.mxu1 %v9613_v0  ;;  %v897_v52 = vpop.f32.mrf.mxu1 }
 0x4aa   :  { %v921_v60 = vmul.f32 %v897_v52, %v384_v22  ;;  %v10090_v22 = vld [vmem:[%s11566_s6 + $0x10] sm:$0xf] }
 0x4ab   :  { %8879 = vmatmul.mubr.msk.f32.vlgmr.msra.gmra.mxu1 %vm394_vm4, %v1047_v51  ;;  %v8859_v54 = vpop.f32.mrf.mxu1  ;;  %8890 = vmatprep.subr.msk.mxu0 %vm1419_vm9, %v10090_v22 }
 0x4ac   :  { %8882 = vmatpush3.xpose.msk.msra.mxu1 %vm394_vm4, %v827_v50  ;;  %8887 = vmatprep.mubr.msk.f32.mxu1 %vm9614_vm6, %v9613_v0  ;;  %v931_v3 = vcombine.high %v921_v60, %v921_v60 }
 0x4ad   :  { %8883 = vmatprep.subr.mxu1 %v9613_v0  ;;  %v902_v55 = vpop.f32.mrf.mxu1  ;;  %8891 = vmatpush3.msk.msra.mxu0 %vm1419_vm9, %v10090_v22 }
 0x4ae   :  { %v922_v57 = vmul.f32 %v902_v55, %v385_v17  ;;  %v1637_v10 = vcombine.low %v921_v60, %v931_v3  ;;  %8892 = vmatprep.subr.mxu0 %v10095_v23 }
 0x4af   :  { %v8862_v58 = vpop.f32.mrf.mxu1  ;;  %8893 = vmatpush3.msra.mxu0 %v10095_v23 }
 0x4b0   :  { %8884 = vmatpush3.xpose.msk.msra.mxu1 %vm394_vm4, %v1168_v56  ;;  %v932_v63 = vcombine.high %v922_v57, %v922_v57 }
 0x4b1   :  { %8885 = vmatprep.subr.mxu1 %v9613_v0  ;;  %v907_v61 = vpop.f32.mrf.mxu1 }
 0x4b2   :  { %v923_v1 = vmul.f32 %v907_v61, %v386_v24  ;;  %v1638_v6 = vcombine.low %v922_v57, %v932_v63  ;;  %v10104_v24 = vld [vmem:[%s11566_s6] sm:$0xff] }
 0x4b3   :  { %v8865_v2 = vpop.f32.mrf.mxu1  ;;  %8894 = vmatprep.subr.mxu0 %v10104_v24 }
 0x4b4   :  { %8886 = vmatpush3.xpose.msk.msra.mxu1 %vm394_vm4, %v1167_v62  ;;  %v933_v4 = vcombine.high %v923_v1, %v923_v1  ;;  %8895 = vmatpush3.msra.mxu0 %v10104_v24 }
 0x4b5   :  { %8899 = vmatprep.subr.mxu1 %v9613_v0  ;;  %v912_v5 = vpop.f32.mrf.mxu1  ;;  %8908 = vmatprep.subr.mxu0 %v9613_v0 }
 0x4b6   :  { %v924_v7 = vmul.f32 %v912_v5, %v387_v41 }
 0x4b7   :  { %8888 = vmatmul.mubr.msk.f32.vlgmr.msra.gmra.mxu1 %vm394_vm4, %v10000_v8  ;;  %v8868_v9 = vpop.f32.mrf.mxu1 }
 0x4b8   :  { %8900 = vmatpush3.msk.msra.mxu1 %vm1419_vm9, %v923_v1  ;;  %v934_v11 = vcombine.high %v924_v7, %v924_v7  ;;  %v10074_v12 = vcombine.low %v933_v4, %v924_v7  ;;  %8905 = vmatprep.mubr.msk.f32.mxu1 %vm9614_vm6, %v9613_v0 }
 0x4b9   :  { %8901 = vmatprep.subr.mxu1 %v9613_v0  ;;  %v917_v13 = vpop.f32.mrf.mxu1 }
 0x4ba   :  { %8902 = vmatpush3.msra.mxu1 %v1638_v6  ;;  %v10079_v14 = vmul.f32 %v917_v13, %v388_v39 }
 0x4bb   :  { %8903 = vmatprep.subr.mxu1 %v9613_v0  ;;  %v8871_v15 = vpop.f32.mrf.mxu1 }
 0x4bc   :  { %8904 = vmatpush3.msra.mxu1 %v1637_v10  ;;  %v10083_v8 = vcombine.low %v934_v11, %v10079_v14  ;;  %v935_v5 = vcombine.high %v10079_v14, %v10079_v14 }
 0x56b   :  { %v1124_v16 = vpop.f32.mrf.mxu1 }
 0x56c   :  { %v1248_v17 = vsel %vm1247_vm10, %v1124_v16, -inf }
 0x56d   :  { %1249 = vmax.xlane.f32.xlu0 %v1248_v17  ;;  %v8880_v18 = vpop.f32.mrf.mxu1 }
 0x577   :  { %v1243_v19 = vpop.f32.mrf.mxu1 }
 0x578   :  { %v1251_v20 = vsel %vm1247_vm10, %v1243_v19, -inf }
 0x579   :  { %1252 = vmax.xlane.f32.xlu1 %v1251_v20  ;;  %v8889_v21 = vpop.f32.mrf.mxu1 }
 0x5f6   :  { %v1250_v25 = vpop.xlane.xlu0 %1249 }
 0x5f7   :  { %v1254_v26 = vsub.f32 %v1124_v16, %v1250_v25 }
 0x5f9   :  { %v1256_v27 = vmul.f32 1.442695, %v1254_v26 }
 0x5fb   :  { %9500 = vpow2.f32 %v1256_v27 }
 0x602   :  { %v1253_v28 = vpop.xlane.xlu1 %1252 }
 0x603   :  { %v1255_v29 = vsub.f32 %v1243_v19, %v1253_v28 }
 0x605   :  { %v1258_v30 = vmul.f32 1.442695, %v1255_v29 }
 0x607   :  { %9502 = vpow2.f32 %v1258_v30 }
 0x608   :  { %v9501_v31 = vpop.eup %9500 }
 0x609   :  { %v1269_v32 = vrot.slane %v9501_v31, %v9951_v34  ;;  %v1262_v35 = vcombine.high %v9501_v31, %v9501_v31 }
 0x60b   :  { %v1277_v33 = vcombine.high %v1269_v32, %v1269_v32  ;;  %v10116_v37 = vrot.slane %v1269_v32, %v9951_v34  ;;  %v1276_v38 = vrot.slane %v1262_v35, %v9951_v34 }
 0x60d   :  { %v10113_v36 = vrot.slane %v1277_v33, %v9951_v34  ;;  %v1291_v49 = vrot.slane %v1276_v38, %v9951_v34 }
 0x60f   :  { %v1350_v40 = vcombine.low %v10116_v37, %v10113_v36  ;;  %v8141_v43 = vcombine.high %v10116_v37, %v10113_v36  ;;  %v1300_v21 = vcombine.high %v10113_v36, %v10113_v36 }
 0x611   :  { %v1360_v50 = vrot.slane %v1350_v40, %v9951_v34  ;;  %v1367_v54 = vrot.slane %v8141_v43, %v9951_v34 }
 0x613   :  { %v1382_v60 = vcombine.low %v1360_v50, %v1367_v54 }
 0x614   :  { %v9503_v39 = vpop.eup %9502 }
 0x615   :  { %v1301_v41 = vcombine.high %v9503_v39, %v9503_v39  ;;  %v1308_v42 = vrot.slane %v9503_v39, %v9951_v34  ;;  %v1390_v1 = vrot.slane %v1382_v60, %v9951_v34 }
 0x617   :  { %v1315_v45 = vrot.slane %v1301_v41, %v9951_v34  ;;  %v1316_v44 = vcombine.high %v1308_v42, %v1308_v42  ;;  %v1323_v46 = vrot.slane %v1308_v42, %v9951_v34 }
 0x619   :  { %v1337_v51 = vrot.slane %v1316_v44, %v9951_v34  ;;  %v1338_v52 = vcombine.high %v1323_v46, %v1323_v46  ;;  %v1352_v53 = vcombine.low %v1291_v49, %v1323_v46  ;;  %v1330_v56 = vrot.slane %v1315_v45, %v9951_v34 }
 0x61b   :  { %v1353_v55 = vcombine.low %v1337_v51, %v1338_v52  ;;  %v1339_v57 = vcombine.high %v1337_v51, %v1337_v51  ;;  %v1374_v58 = vrot.slane %v1352_v53, %v9951_v34 }
 0x61d   :  { %v1381_v59 = vrot.slane %v1353_v55, %v9951_v34  ;;  %v1399_v61 = vcombine.low %v1339_v57, %v1330_v56 }
 0x61f   :  { %v1383_v62 = vcombine.low %v1374_v58, %v1381_v59  ;;  %v1406_v63 = vrot.slane %v1399_v61, %v9951_v34 }
 0x621   :  { %v1397_v2 = vrot.slane %v1383_v62, %v9951_v34  ;;  %v1413_v4 = vrot.slane %v1406_v63, %v9951_v34  ;;  %v1920_v63 = vld [vmem:[%s11567_s19 + $0x18] sm:$0xff] }
 0x622   :  { %8917 = vmatprep.subr.mxu1 %v1920_v63 }
 0x623   :  { %v1398_v3 = vcombine.low %v1390_v1, %v1397_v2  ;;  %v1919_v1 = vld [vmem:[%s11567_s19 + $0x10] sm:$0xff]  ;;  %v1918_v2 = vld [vmem:[%s11567_s19 + $0x8] sm:$0xff] }
 0x625   :  { %8896 = vmatprep.mubr.msk.f32.mxu0 %vm1414_vm11, %v1398_v3  ;;  %v1917_v3 = vld [vmem:[%s11567_s19] sm:$0xff] }
 0x626   :  { %8897 = vmatmul.mubr.msk.f32.vlgmr.msra.gmra.mxu0 %vm1414_vm11, %v1413_v4 }
 0x627   :  { %8909 = vmatpush3.msk.msra.mxu0 %vm1419_vm9, %v935_v5  ;;  %8914 = vmatprep.mubr.msk.f32.mxu0 %vm9614_vm6, %v9613_v0 }
 0x628   :  { %8910 = vmatprep.subr.mxu0 %v9613_v0 }
 0x629   :  { %8911 = vmatpush3.msra.mxu0 %v10083_v8  ;;  %v1299_v8 = vcombine.high %v10116_v37, %v10116_v37 }
 0x62a   :  { %8912 = vmatprep.subr.mxu0 %v9613_v0 }
 0x62b   :  { %8913 = vmatpush3.msra.mxu0 %v10074_v12 }
 0x6e6   :  { %v8898_v6 = vpop.f32.mrf.mxu0 }
 0x6e7   :  { %9504 = vrcp.f32 %v8898_v6 }
 0x6e8   :  { %v1489_v7 = vpop.f32.mrf.mxu0 }
 0x6e9   :  { %9506 = vrcp.f32 %v1489_v7 }
 0x6f4   :  { %v9505_v9 = vpop.eup %9504 }
 0x6f5   :  { %v1557_v10 = vrot.slane %v9505_v9, %v9951_v34 }
 0x6f6   :  { %v9507_v11 = vpop.eup %9506 }
 0x6f7   :  { %v1502_v13 = vcombine.high %v9507_v11, %v9507_v11  ;;  %v1509_v14 = vrot.slane %v9507_v11, %v9951_v34  ;;  %v1558_v15 = vcombine.high %v1557_v10, %v1557_v10  ;;  %v1565_v25 = vrot.slane %v1557_v10, %v9951_v34 }
 0x6f9   :  { %v1516_v16 = vrot.slane %v1502_v13, %v9951_v34  ;;  %v1517_v17 = vcombine.high %v1509_v14, %v1509_v14  ;;  %v1525_v12 = vrot.slane %v1509_v14, %v9951_v34  ;;  %v1572_v26 = vrot.slane %v1558_v15, %v9951_v34 }
 0x6fa   :  { %v1591_v43 = vmul.f32 %v1565_v25, %v1339_v57 }
 0x6fb   :  { %v1518_v18 = vcombine.high %v1516_v16, %v1516_v16  ;;  %v1532_v19 = vrot.slane %v1516_v16, %v9951_v34  ;;  %v1539_v20 = vrot.slane %v1517_v17, %v9951_v34  ;;  %v1547_v27 = vcombine.high %v1525_v12, %v1525_v12 }
 0x6fc   :  { %v1583_v28 = vmul.f32 %v1525_v12, %v10116_v37  ;;  %v1592_v50 = vmul.f32 %v1572_v26, %v1330_v56 }
 0x6fd   :  { %v1546_v29 = vrot.slane %v1518_v18, %v9951_v34  ;;  %v1548_v30 = vcombine.high %v1532_v19, %v1532_v19  ;;  %v1549_v31 = vcombine.high %v1539_v20, %v1539_v20  ;;  %v1584_v32 = vmul.f32 %v1539_v20, %v10113_v36 }
 0x6fe   :  { %v1585_v33 = vmul.f32 %v1547_v27, %v1299_v8  ;;  %v1587_v35 = vmul.f32 %v1532_v19, %v1291_v49 }
 0x6ff   :  { %v1550_v38 = vcombine.high %v1546_v29, %v1546_v29  ;;  %v1586_v39 = vmul.f32 %v1549_v31, %v1300_v21  ;;  %v1598_v40 = vcombine.low %v1583_v28, %v1584_v32  ;;  %v1588_v41 = vmul.f32 %v1546_v29, %v1323_v46 }
 0x700   :  { %v1589_v42 = vmul.f32 %v1548_v30, %v1337_v51  ;;  %v1620_v55 = vrot.slane %v1587_v35, %v9951_v34  ;;  %v1742_v46 = vrot.slane %v1592_v50, %v9951_v34 }
 0x701   :  { %v1599_v45 = vcombine.low %v1585_v33, %v1586_v39  ;;  %v1590_v44 = vmul.f32 %v1550_v38, %v1338_v52  ;;  %v1606_v37 = vrot.slane %v1598_v40, %v9951_v34 }
 0x702   :  { %v1720_v53 = vcombine.low %v1588_v41, %v1589_v42  ;;  %v1635_v52 = vrot.slane %v1620_v55, %v9951_v34  ;;  %v1757_v61 = vrot.slane %v1742_v46, %v9951_v34 }
 0x703   :  { %v1613_v54 = vrot.slane %v1599_v45, %v9951_v34  ;;  %v1721_v58 = vcombine.low %v1590_v44, %v1591_v43 }
 0x704   :  { %v1728_v49 = vrot.slane %v1720_v53, %v9951_v34  ;;  %v8152_v53 = vld [vmem:[%s11568_s20] ss:$0 sm:$0xff] }
 0x705   :  { %v1621_v36 = vcombine.low %v1606_v37, %v1613_v54  ;;  %v1735_v59 = vrot.slane %v1721_v58, %v9951_v34 }
 0x707   :  { %v1628_v51 = vrot.slane %v1621_v36, %v9951_v34  ;;  %v1743_v56 = vcombine.low %v1728_v49, %v1735_v59 }
 0x709   :  { %v1636_v57 = vcombine.low %v1628_v51, %v1635_v52  ;;  %v1750_v60 = vrot.slane %v1743_v56, %v9951_v34 }
 0x70b   :  { %8906 = vmatmul.mubr.msk.f32.vlgmr.msra.gmra.mxu1 %vm1414_vm11, %v1636_v57  ;;  %v1758_v62 = vcombine.low %v1750_v60, %v1757_v61 }
 0x70c   :  { %8918 = vmatpush3.msra.mxu1 %v1920_v63  ;;  %v2122_v63 = vld [vmem:[%s11569_s23 + $0x18] sm:$0xff] }
 0x70d   :  { %8915 = vmatmul.mubr.msk.f32.vlgmr.msra.gmra.mxu0 %vm1414_vm11, %v1758_v62  ;;  %8919 = vmatprep.subr.mxu1 %v1919_v1 }
 0x70e   :  { %8920 = vmatpush3.msra.mxu1 %v1919_v1  ;;  %v2121_v1 = vld [vmem:[%s11569_s23 + $0x10] sm:$0xff]  ;;  %8928 = vmatprep.subr.mxu0 %v2122_v63 }
 0x70f   :  { %8921 = vmatprep.subr.mxu1 %v1918_v2  ;;  %8929 = vmatpush3.msra.mxu0 %v2122_v63 }
 0x710   :  { %8922 = vmatpush3.msra.mxu1 %v1918_v2  ;;  %v2120_v2 = vld [vmem:[%s11569_s23 + $0x8] sm:$0xff]  ;;  %8930 = vmatprep.subr.mxu0 %v2121_v1 }
 0x711   :  { %8923 = vmatprep.subr.mxu1 %v1917_v3  ;;  %8931 = vmatpush3.msra.mxu0 %v2121_v1 }
 0x712   :  { %8924 = vmatpush3.msra.mxu1 %v1917_v3  ;;  %v2119_v3 = vld [vmem:[%s11569_s23] sm:$0xff]  ;;  %8932 = vmatprep.subr.mxu0 %v2120_v2 }
 0x713   :  { %8933 = vmatpush3.msra.mxu0 %v2120_v2 }
 0x714   :  { %8934 = vmatprep.subr.mxu0 %v2119_v3 }
 0x715   :  { %8935 = vmatpush3.msra.mxu0 %v2119_v3 }
 0x7cb   :  { %v1711_v4 = vpop.f32.mrf.mxu1 }
 0x7cc   :  { %v1839_v5 = vcombine.high %v1711_v4, %v1711_v4  ;;  %v1846_v6 = vrot.slane %v1711_v4, %v9951_v34  ;;  %v2236_v4 = vld [vmem:[%s11570_s25 + $0x78] sm:$0xff] }
 0x7cd   :  { %v8907_v7 = vpop.f32.mrf.mxu1  ;;  %v1833_v9 = vpop.f32.mrf.mxu0  ;;  %8939 = vmatprep.subr.mxu1 %v2236_v4 }
 0x7ce   :  { %v1853_v10 = vrot.slane %v1839_v5, %v9951_v34  ;;  %v1854_v11 = vcombine.high %v1846_v6, %v1846_v6  ;;  %v1878_v13 = vcombine.high %v1833_v9, %v1833_v9  ;;  %v1885_v14 = vrot.slane %v1833_v9, %v9951_v34  ;;  %v2235_v5 = vld [vmem:[%s11570_s25 + $0x70] sm:$0xff] }
 0x7cf   :  { %v8916_v15 = vpop.f32.mrf.mxu0  ;;  %v1861_v16 = vrot.slane %v1846_v6, %v9951_v34  ;;  %v2234_v6 = vld [vmem:[%s11570_s25 + $0x68] sm:$0xff] }
 0x7d0   :  { %v1868_v17 = vrot.slane %v1853_v10, %v9951_v34  ;;  %v1875_v8 = vrot.slane %v1854_v11, %v9951_v34  ;;  %v1892_v12 = vrot.slane %v1878_v13, %v9951_v34  ;;  %v1893_v18 = vcombine.high %v1885_v14, %v1885_v14 }
 0x7d1   :  { %v1900_v19 = vrot.slane %v1885_v14, %v9951_v34 }
 0x7d2   :  { %v1921_v20 = vcombine.low %v1861_v16, %v1875_v8  ;;  %v8149_v21 = vcombine.high %v1861_v16, %v1875_v8  ;;  %v1914_v25 = vrot.slane %v1893_v18, %v9951_v34  ;;  %v1907_v30 = vrot.slane %v1892_v12, %v9951_v34  ;;  %v8153_v16 = vld [vmem:[%s11571_s21] ss:$0 sm:$0xff] }
 0x7d3   :  { %v1915_v26 = vcombine.high %v1900_v19, %v1900_v19  ;;  %v1923_v27 = vcombine.low %v1868_v17, %v1900_v19  ;;  %v8154_v19 = vld [vmem:[%s11572_s22] ss:$0 sm:$0xff] }
 0x7d4   :  { %v1931_v28 = vrot.slane %v1921_v20, %v9951_v34  ;;  %v1938_v29 = vrot.slane %v8149_v21, %v9951_v34  ;;  %v1916_v31 = vcombine.high %v1914_v25, %v1914_v25 }
 0x7d5   :  { %v1924_v32 = vcombine.low %v1914_v25, %v1915_v26  ;;  %v1945_v35 = vrot.slane %v1923_v27, %v9951_v34  ;;  %v2233_v26 = vld [vmem:[%s11570_s25 + $0x60] sm:$0xff]  ;;  %v2232_v27 = vld [vmem:[%s11570_s25 + $0x58] sm:$0xff] }
 0x7d6   :  { %v1953_v33 = vcombine.low %v1931_v28, %v1938_v29  ;;  %v1970_v39 = vcombine.low %v1916_v31, %v1907_v30  ;;  %v2231_v28 = vld [vmem:[%s11570_s25 + $0x50] sm:$0xff]  ;;  %v2230_v29 = vld [vmem:[%s11570_s25 + $0x48] sm:$0xff]  ;;  %v2229_v30 = vld [vmem:[%s11570_s25 + $0x40] sm:$0xff] }
 0x7d7   :  { %v1952_v38 = vrot.slane %v1924_v32, %v9951_v34  ;;  %v2228_v31 = vld [vmem:[%s11570_s25 + $0x38] sm:$0xff]  ;;  %v2227_v32 = vld [vmem:[%s11570_s25 + $0x30] sm:$0xff] }
 0x7d8   :  { %v1977_v41 = vrot.slane %v1970_v39, %v9951_v34  ;;  %v1961_v42 = vrot.slane %v1953_v33, %v9951_v34  ;;  %v2226_v33 = vld [vmem:[%s11570_s25 + $0x28] sm:$0xff]  ;;  %v2223_v39 = vld [vmem:[%s11570_s25 + $0x10] sm:$0xff] }
 0x7d9   :  { %v1954_v40 = vcombine.low %v1945_v35, %v1952_v38  ;;  %v2225_v35 = vld [vmem:[%s11570_s25 + $0x20] sm:$0xff]  ;;  %v2224_v38 = vld [vmem:[%s11570_s25 + $0x18] sm:$0xff] }
 0x7da   :  { %v1984_v44 = vrot.slane %v1977_v41, %v9951_v34  ;;  %v2221_v41 = vld [vmem:[%s11570_s25] sm:$0xff] }
 0x7db   :  { %v1968_v43 = vrot.slane %v1954_v40, %v9951_v34  ;;  %v2222_v40 = vld [vmem:[%s11570_s25 + $0x8] sm:$0xff] }
 0x7dd   :  { %v1969_v45 = vcombine.low %v1961_v42, %v1968_v43  ;;  %v8155_v42 = vld [vmem:[%s11573_s24] ss:$0 sm:$0xff] }
 0x7df   :  { %8925 = vmatprep.mubr.msk.f32.mxu1 %vm394_vm4, %v1969_v45 }
 0x7e0   :  { %8926 = vmatmul.mubr.msk.f32.vlgmr.msra.gmra.mxu1 %vm394_vm4, %v1984_v44 }
 0x7e1   :  { %8940 = vmatpush3.msra.mxu1 %v2236_v4 }
 0x7e2   :  { %8941 = vmatprep.subr.mxu1 %v2235_v5 }
 0x7e3   :  { %8942 = vmatpush3.msra.mxu1 %v2235_v5 }
 0x7e4   :  { %8943 = vmatprep.subr.mxu1 %v2234_v6 }
 0x7e5   :  { %8944 = vmatpush3.msra.mxu1 %v2234_v6 }
 0x7e6   :  { %8945 = vmatprep.subr.mxu1 %v2233_v26 }
 0x7e7   :  { %8946 = vmatpush3.msra.mxu1 %v2233_v26  ;;  %v8161_v26 = vld [vmem:[%s11607_s9 + $0x1] ss:$0 sm:$0xff] }
 0x7e8   :  { %8947 = vmatprep.subr.mxu1 %v2232_v27 }
 0x7e9   :  { %8948 = vmatpush3.msra.mxu1 %v2232_v27 }
 0x7ea   :  { %8949 = vmatprep.subr.mxu1 %v2231_v28 }
 0x7eb   :  { %8950 = vmatpush3.msra.mxu1 %v2231_v28 }
 0x7ec   :  { %8951 = vmatprep.subr.mxu1 %v2230_v29 }
 0x7ed   :  { %8952 = vmatpush3.msra.mxu1 %v2230_v29 }
 0x7ee   :  { %8953 = vmatprep.subr.mxu1 %v2229_v30 }
 0x7ef   :  { %8954 = vmatpush3.msra.mxu1 %v2229_v30 }
 0x7f0   :  { %8955 = vmatprep.subr.mxu1 %v2228_v31 }
 0x7f1   :  { %8956 = vmatpush3.msra.mxu1 %v2228_v31  ;;  %v8162_v31 = vld [vmem:[%s11608_s3 + $0x1] ss:$0 sm:$0xff] }
 0x7f2   :  { %8957 = vmatprep.subr.mxu1 %v2227_v32 }
 0x7f3   :  { %8958 = vmatpush3.msra.mxu1 %v2227_v32 }
 0x7f4   :  { %8959 = vmatprep.subr.mxu1 %v2226_v33 }
 0x7f5   :  { %8960 = vmatpush3.msra.mxu1 %v2226_v33 }
 0x7f6   :  { %8961 = vmatprep.subr.mxu1 %v2225_v35 }
 0x7f7   :  { %8962 = vmatpush3.msra.mxu1 %v2225_v35 }
 0x7f8   :  { %8963 = vmatprep.subr.mxu1 %v2224_v38 }
 0x7f9   :  { %8964 = vmatpush3.msra.mxu1 %v2224_v38  ;;  %v8173_v38 = vld [vmem:[%s11606_s28 + $0x30] sm:$0xff] }
 0x7fa   :  { %8965 = vmatprep.subr.mxu1 %v2223_v39 }
 0x7fb   :  { %8966 = vmatpush3.msra.mxu1 %v2223_v39  ;;  %v8172_v39 = vld [vmem:[%s11606_s28 + $0x28] sm:$0xff] }
 0x7fc   :  { %8967 = vmatprep.subr.mxu1 %v2222_v40 }
 0x7fd   :  { %8968 = vmatpush3.msra.mxu1 %v2222_v40  ;;  %v8171_v40 = vld [vmem:[%s11606_s28 + $0x20] sm:$0xff] }
 0x7fe   :  { %8969 = vmatprep.subr.mxu1 %v2221_v41 }
 0x7ff   :  { %8970 = vmatpush3.msra.mxu1 %v2221_v41  ;;  %v8182_v41 = vld [vmem:[%s11560_s17 + $0x38] sm:$0xff] }
 0x800   :  { %9026 = vmatprep.subr.mxu1 %v9613_v0 }
 0x8a0   :  { %v8927_v50 = vpop.f32.mrf.mxu1 }
 0x8a1   :  { %v2065_v37 = vadd.f32 %v8927_v50, %v9887_v48 }
 0x8a2   :  { %v2055_v54 = vpop.f32.mrf.mxu1 }
 0x8a3   :  { %v10211_v55 = vadd.f32 %v8152_v53, %v2065_v37  ;;  %v2064_v58 = vadd.f32 %v2055_v54, %v9885_v47 }
 0x8a5   :  { %v10214_v36 = vadd.f32 %v8152_v53, %v2064_v58  ;;  %v2080_v49 = vsel %vm398_vm5, %v10211_v55, 0.0 }
 0x8a6   :  { %2081 = vadd.xlane.f32.xlu1 %v2080_v49 }
 0x8a7   :  { %v2077_v59 = vsel %vm394_vm4, %v10214_v36, 0.0 }
 0x8a8   :  { %2078 = vadd.xlane.f32.xlu0 %v2077_v59 }
 0x92f   :  { %v2082_v46 = vpop.xlane.xlu1 %2081 }
 0x930   :  { %v2084_v51 = vmul.f32 0.03125, %v2082_v46 }
 0x931   :  { %v2079_v52 = vpop.xlane.xlu0 %2078 }
 0x932   :  { %v2086_v48 = vsub.f32 %v10211_v55, %v2084_v51  ;;  %v2083_v56 = vmul.f32 0.03125, %v2079_v52 }
 0x934   :  { %v2085_v57 = vsub.f32 %v10214_v36, %v2083_v56  ;;  %v2088_v60 = vmul.f32 %v2086_v48, %v2086_v48 }
 0x936   :  { %v2092_v47 = vsel %vm398_vm5, %v2088_v60, 0.0  ;;  %v2087_v61 = vmul.f32 %v2085_v57, %v2085_v57 }
 0x937   :  { %2093 = vadd.xlane.f32.xlu1 %v2092_v47 }
 0x938   :  { %v2089_v62 = vsel %vm394_vm4, %v2087_v61, 0.0 }
 0x939   :  { %2090 = vadd.xlane.f32.xlu0 %v2089_v62 }
 0x9c0   :  { %v2094_v7 = vpop.xlane.xlu1 %2093 }
 0x9c1   :  { %v2096_v9 = vmul.f32 0.03125, %v2094_v7 }
 0x9c2   :  { %v2091_v10 = vpop.xlane.xlu0 %2090 }
 0x9c3   :  { %v2098_v11 = vadd.f32 1e-06, %v2096_v9  ;;  %v2095_v13 = vmul.f32 0.03125, %v2091_v10 }
 0x9c5   :  { %9508 = vrsqrt.f32 %v2098_v11  ;;  %v2097_v14 = vadd.f32 1e-06, %v2095_v13  ;;  %v8166_v13 = vld [vmem:[%s11605_s2 + $0x38] sm:$0xff] }
 0x9c6   :  { %8974 = vmatprep.subr.mxu0 %v8166_v13 }
 0x9c7   :  { %9510 = vrsqrt.f32 %v2097_v14  ;;  %v8165_v14 = vld [vmem:[%s11605_s2 + $0x30] sm:$0xff] }
 0x9d2   :  { %v9509_v15 = vpop.eup %9508 }
 0x9d3   :  { %v2102_v17 = vmul.f32 %v9509_v15, %v2086_v48  ;;  %v8164_v15 = vld [vmem:[%s11605_s2 + $0x28] sm:$0xff] }
 0x9d4   :  { %v9511_v8 = vpop.eup %9510 }
 0x9d5   :  { %v2101_v12 = vmul.f32 %v9511_v8, %v2085_v57  ;;  %v2110_v18 = vmul.f32 %v8153_v16, %v2102_v17  ;;  %v8158_v57 = vld [vmem:[%s11574_s26] ss:$0 sm:$0xff]  ;;  %v8174_v17 = vld [vmem:[%s11606_s28 + $0x38] sm:$0xff] }
 0x9d7   :  { %v2109_v20 = vmul.f32 %v8153_v16, %v2101_v12  ;;  %v2118_v25 = vadd.f32 %v8154_v19, %v2110_v18  ;;  %v8163_v16 = vld [vmem:[%s11605_s2 + $0x20] sm:$0xff] }
 0x9d9   :  { %v2117_v21 = vadd.f32 %v8154_v19, %v2109_v20 }
 0x9db   :  { %8936 = vmatprep.mubr.msk.f32.mxu0 %vm394_vm4, %v2117_v21 }
 0x9dc   :  { %8937 = vmatmul.mubr.msk.f32.vlgmr.msra.gmra.mxu0 %vm394_vm4, %v2118_v25 }
 0x9dd   :  { %8975 = vmatpush3.msra.mxu0 %v8166_v13 }
 0x9de   :  { %8976 = vmatprep.subr.mxu0 %v8165_v14 }
 0x9df   :  { %8977 = vmatpush3.msra.mxu0 %v8165_v14 }
 0x9e0   :  { %8978 = vmatprep.subr.mxu0 %v8164_v15 }
 0x9e1   :  { %8979 = vmatpush3.msra.mxu0 %v8164_v15 }
 0x9e2   :  { %8980 = vmatprep.subr.mxu0 %v8163_v16 }
 0x9e3   :  { %8981 = vmatpush3.msra.mxu0 %v8163_v16 }
 0x9e4   :  { %8985 = vmatprep.subr.mxu0 %v8174_v17 }
 0xa9c   :  { %v8938_v43 = vpop.f32.mrf.mxu0 }
 0xa9d   :  { %v2208_v45 = vadd.f32 %v8938_v43, %v8155_v42  ;;  %v8180_v43 = vld [vmem:[%s11560_s17 + $0x28] sm:$0xff] }
 0xa9e   :  { %v2202_v44 = vpop.f32.mrf.mxu0 }
 0xa9f   :  { %v2214_v50 = vmul.f32 0.70710677, %v2208_v45  ;;  %v2203_v53 = vadd.f32 %v8155_v42, %v2202_v44  ;;  %v2212_v51 = vmul.f32 0.5, %v2208_v45  ;;  %v8181_v42 = vld [vmem:[%s11560_s17 + $0x30] sm:$0xff]  ;;  %v8179_v45 = vld [vmem:[%s11560_s17 + $0x20] sm:$0xff] }
 0xaa0   :  { %v8168_v44 = vld [vmem:[%s11561_s14 + $0x1] ss:$0 sm:$0xff] }
 0xaa1   :  { %9512 = verf.f32 %v2214_v50  ;;  %v2213_v37 = vmul.f32 0.70710677, %v2203_v53  ;;  %v2211_v59 = vmul.f32 0.5, %v2203_v53 }
 0xaa3   :  { %9514 = verf.f32 %v2213_v37 }
 0xaae   :  { %v9513_v54 = vpop.eup %9512 }
 0xaaf   :  { %v2218_v49 = vadd.f32 1.0, %v9513_v54 }
 0xab0   :  { %v9515_v58 = vpop.eup %9514 }
 0xab1   :  { %v2217_v46 = vadd.f32 1.0, %v9515_v58  ;;  %v2220_v48 = vmul.f32 %v2218_v49, %v2212_v51 }
 0xab3   :  { %v2219_v52 = vmul.f32 %v2217_v46, %v2211_v59  ;;  %v8176_v46 = vld [vmem:[%s11562_s16 + $0x1] ss:$0 sm:$0xff] }
 0xab5   :  { %8971 = vmatprep.mubr.f32.mxu1 %v2219_v52 }
 0xab6   :  { %8972 = vmatmul.mubr.f32.vlgmr.msra.gmra.mxu1 %v2220_v48 }
 0xab7   :  { %9030 = vmatprep.mubr.msk.f32.mxu1 %vm9614_vm6, %v9613_v0 }
 0xb76   :  { %v8973_v56 = vpop.f32.mrf.mxu1 }
 0xb77   :  { %v2313_v60 = vadd.f32 %v8973_v56, %v10211_v55 }
 0xb78   :  { %v2303_v47 = vpop.f32.mrf.mxu1 }
 0xb79   :  { %v10302_v61 = vadd.f32 %v8158_v57, %v2313_v60  ;;  %v2312_v62 = vadd.f32 %v2303_v47, %v10214_v36 }
 0xb7b   :  { %2324 = vst.msk [vmem:[%s11575_s27 + $0x8] sm:$0x3] %vm398_vm5, %v10302_v61  ;;  %v10310_v63 = vadd.f32 %v8158_v57, %v2312_v62  ;;  %v2332_v1 = vsel %vm398_vm5, %v10302_v61, 0.0 }
 0xb7c   :  { %2333 = vadd.xlane.f32.xlu1 %v2332_v1 }
 0xb7d   :  { %2323 = vst.msk [vmem:[%s11575_s27] sm:$0xff] %vm394_vm4, %v10310_v63  ;;  %v2329_v55 = vsel %vm394_vm4, %v10310_v63, 0.0 }
 0xb7e   :  { %2330 = vadd.xlane.f32.xlu0 %v2329_v55 }
 0xc05   :  { %v2334_v36 = vpop.xlane.xlu1 %2333 }
 0xc06   :  { %v2336_v2 = vmul.f32 0.03125, %v2334_v36 }
 0xc07   :  { %v2331_v3 = vpop.xlane.xlu0 %2330 }
 0xc08   :  { %v2338_v4 = vsub.f32 %v10302_v61, %v2336_v2  ;;  %v2335_v5 = vmul.f32 0.03125, %v2331_v3 }
 0xc0a   :  { %v2337_v6 = vsub.f32 %v10310_v63, %v2335_v5  ;;  %v2340_v7 = vmul.f32 %v2338_v4, %v2338_v4 }
 0xc0c   :  { %v2344_v9 = vsel %vm398_vm5, %v2340_v7, 0.0  ;;  %v2339_v10 = vmul.f32 %v2337_v6, %v2337_v6 }
 0xc0d   :  { %2345 = vadd.xlane.f32.xlu1 %v2344_v9 }
 0xc0e   :  { %v2341_v11 = vsel %vm394_vm4, %v2339_v10, 0.0 }
 0xc0f   :  { %2342 = vadd.xlane.f32.xlu0 %v2341_v11 }
 0xc96   :  { %v2346_v8 = vpop.xlane.xlu1 %2345 }
 0xc97   :  { %v2348_v12 = vmul.f32 0.03125, %v2346_v8 }
 0xc98   :  { %v2343_v18 = vpop.xlane.xlu0 %2342 }
 0xc99   :  { %v2350_v19 = vadd.f32 1e-06, %v2348_v12  ;;  %v2347_v20 = vmul.f32 0.03125, %v2343_v18  ;;  %v9578_v18 = vld [vmem:[%s11563_s4 + $0x10] sm:$0xff] }
 0xc9b   :  { %9516 = vrsqrt.f32 %v2350_v19  ;;  %v2349_v21 = vadd.f32 1e-06, %v2347_v20  ;;  %v9579_v20 = vld [vmem:[%s11563_s4 + $0x18] sm:$0xff] }
 0xc9d   :  { %9518 = vrsqrt.f32 %v2349_v21  ;;  %v9580_v21 = vld [vmem:[%s11563_s4 + $0x20] sm:$0xff] }
 0xca8   :  { %v9517_v25 = vpop.eup %9516 }
 0xca9   :  { %v2354_v27 = vmul.f32 %v9517_v25, %v2338_v4  ;;  %v8184_v4 = vld [vmem:[%s11564_s18 + $0x1] ss:$0 sm:$0xff] }
 0xcaa   :  { %v9519_v28 = vpop.eup %9518 }
 0xcab   :  { %v2353_v29 = vmul.f32 %v9519_v28, %v2337_v6  ;;  %v2362_v30 = vmul.f32 %v8161_v26, %v2354_v27  ;;  %v9576_v6 = vld [vmem:[%s11563_s4] sm:$0xff] }
 0xcad   :  { %v2361_v32 = vmul.f32 %v8161_v26, %v2353_v29  ;;  %v2370_v35 = vadd.f32 %v8162_v31, %v2362_v30 }
 0xcaf   :  { %v2369_v33 = vadd.f32 %v8162_v31, %v2361_v32 }
 0xcb1   :  { %8982 = vmatprep.mubr.msk.f32.mxu0 %vm394_vm4, %v2369_v33 }
 0xcb2   :  { %8983 = vmatmul.mubr.msk.f32.vlgmr.msra.gmra.mxu0 %vm394_vm4, %v2370_v35 }
 0xcb3   :  { %8986 = vmatpush3.msra.mxu0 %v8174_v17  ;;  %8993 = vmatprep.mubr.msk.f32.mxu0 %vm394_vm4, %v2369_v33  ;;  %v9577_v17 = vld [vmem:[%s11563_s4 + $0x8] sm:$0xff] }
 0xcb4   :  { %8987 = vmatprep.subr.mxu0 %v8173_v38 }
 0xcb5   :  { %8988 = vmatpush3.msra.mxu0 %v8173_v38 }
 0xcb6   :  { %8989 = vmatprep.subr.mxu0 %v8172_v39 }
 0xcb7   :  { %8990 = vmatpush3.msra.mxu0 %v8172_v39 }
 0xcb8   :  { %8991 = vmatprep.subr.mxu0 %v8171_v40 }
 0xcb9   :  { %8992 = vmatpush3.msra.mxu0 %v8171_v40 }
 0xcba   :  { %8994 = vmatmul.mubr.msk.f32.vlgmr.msra.gmra.mxu0 %vm394_vm4, %v2370_v35  ;;  %8996 = vmatprep.subr.mxu0 %v8182_v41 }
 0xcbb   :  { %8997 = vmatpush3.msra.mxu0 %v8182_v41  ;;  %9004 = vmatprep.mubr.msk.f32.mxu0 %vm394_vm4, %v2369_v33 }
 0xcbc   :  { %8998 = vmatprep.subr.mxu0 %v8181_v42 }
 0xcbd   :  { %8999 = vmatpush3.msra.mxu0 %v8181_v42 }
 0xcbe   :  { %9000 = vmatprep.subr.mxu0 %v8180_v43 }
 0xcbf   :  { %9001 = vmatpush3.msra.mxu0 %v8180_v43 }
 0xcc0   :  { %9002 = vmatprep.subr.mxu0 %v8179_v45 }
 0xcc1   :  { %9003 = vmatpush3.msra.mxu0 %v8179_v45  ;;  %v9582_v45 = vld [vmem:[%s11565_s5] sm:$0xff] }
 0xcc2   :  { %9005 = vmatmul.mubr.msk.f32.vlgmr.msra.gmra.mxu0 %vm394_vm4, %v2370_v35  ;;  %9007 = vmatprep.subr.mxu0 %v9613_v0  ;;  %v9581_v35 = vld [vmem:[%s11565_s5 + $0x8] sm:$0xff] }
 0xcc3   :  { %9011 = vmatprep.mubr.msk.f32.mxu0 %vm9614_vm6, %v9613_v0 }
 0xd72   :  { %v8984_v50 = vpop.f32.mrf.mxu0 }
 0xd73   :  { %v2462_v53 = vadd.f32 %v8984_v50, %v8168_v44 }
 0xd74   :  { %v2456_v37 = vpop.f32.mrf.mxu0 }
 0xd75   :  { %v10379_v54 = vadd.f32 %v8168_v44, %v2456_v37  ;;  %v2914_v58 = vrot.slane %v2462_v53, %v9951_v34  ;;  %v9583_v53 = vld [vmem:[%s11565_s5 + $0x10] sm:$0xff] }
 0xd77   :  { %v2859_v49 = vcombine.high %v10379_v54, %v10379_v54  ;;  %v2915_v52 = vcombine.high %v2914_v58, %v2914_v58  ;;  %v2922_v55 = vrot.slane %v2914_v58, %v9951_v34  ;;  %v2866_v25 = vrot.slane %v10379_v54, %v9951_v34 }
 0xd79   :  { %v2873_v59 = vrot.slane %v2859_v49, %v9951_v34  ;;  %v2929_v36 = vrot.slane %v2915_v52, %v9951_v34  ;;  %v2874_v26 = vcombine.high %v2866_v25, %v2866_v25  ;;  %v2882_v29 = vrot.slane %v2866_v25, %v9951_v34 }
 0xd7a   :  { %v8995_v51 = vpop.f32.mrf.mxu0 }
 0xd7b   :  { %v2875_v48 = vcombine.high %v2873_v59, %v2873_v59  ;;  %v10389_v56 = vrot.slane %v2873_v59, %v9951_v34  ;;  %v2550_v57 = vadd.f32 %v8995_v51, %v8176_v46  ;;  %v3071_v9 = vrot.slane %v2929_v36, %v9951_v34 }
 0xd7c   :  { %v2544_v60 = vpop.f32.mrf.mxu0  ;;  %v2896_v27 = vrot.slane %v2874_v26, %v9951_v34  ;;  %v9586_v26 = vld [vmem:[%s11566_s6] sm:$0xff] }
 0xd7d   :  { %v2903_v47 = vrot.slane %v2875_v48, %v9951_v34  ;;  %v2905_v62 = vcombine.high %v10389_v56, %v10389_v56  ;;  %v2545_v1 = vadd.f32 %v8176_v46, %v2544_v60  ;;  %9008 = vmatpush3.msk.msra.mxu0 %vm719_vm7, %v2550_v57  ;;  %v3086_v8 = vrot.slane %v3071_v9, %v9951_v34 }
 0xd7e   :  { %9009 = vmatprep.subr.mxu0 %v9613_v0  ;;  %v2930_v31 = vcombine.low %v2882_v29, %v2896_v27  ;;  %v8199_v32 = vcombine.high %v2882_v29, %v2896_v27  ;;  %v2952_v57 = vrot.slane %v10389_v56, %v9951_v34  ;;  %v9585_v56 = vld [vmem:[%s11565_s5 + $0x20] sm:$0xff] }
 0xd7f   :  { %v2907_v2 = vcombine.high %v2903_v47, %v2903_v47  ;;  %v3049_v3 = vcombine.low %v2903_v47, %v2905_v62  ;;  %9010 = vmatpush3.msra.mxu0 %v2545_v1 }
 0xd80   :  { %9012 = vmatmul.mubr.msk.f32.vlgmr.msra.gmra.mxu0 %vm703_vm8, %v9576_v6  ;;  %9045 = vmatprep.subr.mxu0 %v9613_v0  ;;  %v2938_v41 = vrot.slane %v2930_v31, %v9951_v34  ;;  %v2945_v42 = vrot.slane %v8199_v32, %v9951_v34 }
 0xd81   :  { %v3050_v5 = vcombine.low %v2907_v2, %v2922_v55  ;;  %9014 = vmatprep.mubr.msk.f32.mxu0 %vm9614_vm6, %v9613_v0  ;;  %v3057_v10 = vrot.slane %v3049_v3, %v9951_v34  ;;  %v9584_v2 = vld [vmem:[%s11565_s5 + $0x18] sm:$0xff] }
 0xd82   :  { %v9006_v7 = vpop.f32.mrf.mxu0  ;;  %v2953_v59 = vcombine.low %v2938_v41, %v2945_v42 }
 0xd83   :  { %v3064_v11 = vrot.slane %v3050_v5, %v9951_v34  ;;  %v2638_v13 = vadd.f32 %v9006_v7, %v8184_v4 }
 0xd84   :  { %v2632_v14 = vpop.f32.mrf.mxu0  ;;  %9015 = vmatmul.mubr.msk.f32.gmra.mxu0 %vm703_vm8, %v9577_v17  ;;  %v2960_v62 = vrot.slane %v2953_v59, %v9951_v34 }
 0xd85   :  { %v3072_v15 = vcombine.low %v3057_v10, %v3064_v11  ;;  %v2633_v16 = vadd.f32 %v8184_v4, %v2632_v14  ;;  %9027 = vmatpush3.msk.msra.mxu1 %vm719_vm7, %v2638_v13  ;;  %9017 = vmatprep.mubr.msk.f32.mxu0 %vm9614_vm6, %v9613_v0 }
 0xd86   :  { %9028 = vmatprep.subr.mxu1 %v9613_v0 }
 0xd87   :  { %v3079_v12 = vrot.slane %v3072_v15, %v9951_v34  ;;  %9029 = vmatpush3.msra.mxu1 %v2633_v16 }
 0xd88   :  { %9031 = vmatmul.mubr.msk.f32.vlgmr.msra.gmra.mxu1 %vm703_vm8, %v9576_v6  ;;  %9054 = vmatprep.subr.mxu1 %v9613_v0  ;;  %v2967_v6 = vrot.slane %v2952_v57, %v9951_v34 }
 0xd89   :  { %9018 = vmatmul.mubr.msk.f32.gmra.mxu0 %vm703_vm8, %v9578_v18  ;;  %9033 = vmatprep.mubr.msk.f32.mxu1 %vm9614_vm6, %v9613_v0  ;;  %v10429_v19 = vcombine.low %v3079_v12, %v3086_v8 }
 0xd8a   :  { %9020 = vmatprep.mubr.msk.f32.mxu0 %vm9614_vm6, %v9613_v0  ;;  %v2968_v13 = vcombine.low %v2960_v62, %v2967_v6 }
 0xd8c   :  { %9034 = vmatmul.mubr.msk.f32.gmra.mxu1 %vm703_vm8, %v9577_v17 }
 0xd8d   :  { %9021 = vmatmul.mubr.msk.f32.gmra.mxu0 %vm703_vm8, %v9579_v20  ;;  %9036 = vmatprep.mubr.msk.f32.mxu1 %vm9614_vm6, %v9613_v0 }
 0xd8e   :  { %9023 = vmatprep.mubr.msk.f32.mxu0 %vm9614_vm6, %v9613_v0 }
 0xd90   :  { %9037 = vmatmul.mubr.msk.f32.gmra.mxu1 %vm703_vm8, %v9578_v18 }
 0xd91   :  { %9024 = vmatmul.mubr.msk.f32.gmra.mxu0 %vm703_vm8, %v9580_v21  ;;  %9039 = vmatprep.mubr.msk.f32.mxu1 %vm9614_vm6, %v9613_v0 }
 0xd92   :  { %9051 = vmatprep.mubr.msk.f32.mxu0 %vm9614_vm6, %v9613_v0 }
 0xd94   :  { %9040 = vmatmul.mubr.msk.f32.gmra.mxu1 %vm703_vm8, %v9579_v20 }
 0xd95   :  { %9042 = vmatprep.mubr.msk.f32.mxu1 %vm9614_vm6, %v9613_v0 }
 0xd98   :  { %9043 = vmatmul.mubr.msk.f32.gmra.mxu1 %vm703_vm8, %v9580_v21 }
 0xd99   :  { %9060 = vmatprep.mubr.msk.f32.mxu1 %vm9614_vm6, %v9613_v0 }
 0xe40   :  { %v2710_v28 = vpop.f32.mrf.mxu0 }
 0xe41   :  { %v2734_v44 = vmul.f32 %v9582_v45, %v2710_v28 }
 0xe42   :  { %v9013_v30 = vpop.f32.mrf.mxu0 }
 0xe43   :  { %v2744_v51 = vcombine.high %v2734_v44, %v2734_v44 }
 0xe44   :  { %v2715_v33 = vpop.f32.mrf.mxu0 }
 0xe45   :  { %v2735_v38 = vmul.f32 %v9581_v35, %v2715_v33  ;;  %v2969_v36 = vcombine.low %v2734_v44, %v2744_v51 }
 0xe46   :  { %v9016_v39 = vpop.f32.mrf.mxu0 }
 0xe47   :  { %v2745_v50 = vcombine.high %v2735_v38, %v2735_v38 }
 0xe48   :  { %v2818_v40 = vpop.f32.mrf.mxu1 }
 0xe49   :  { %v2720_v43 = vpop.f32.mrf.mxu0  ;;  %v2970_v52 = vcombine.low %v2735_v38, %v2745_v50  ;;  %v2842_v20 = vmul.f32 %v9582_v45, %v2818_v40 }
 0xe4a   :  { %v2736_v37 = vmul.f32 %v9583_v53, %v2720_v43  ;;  %v9032_v54 = vpop.f32.mrf.mxu1 }
 0xe4b   :  { %v9019_v58 = vpop.f32.mrf.mxu0 }
 0xe4c   :  { %9046 = vmatpush3.xpose.msk.msra.mxu0 %vm394_vm4, %v2736_v37  ;;  %v2823_v49 = vpop.f32.mrf.mxu1  ;;  %v2746_v18 = vcombine.high %v2736_v37, %v2736_v37 }
 0xe4d   :  { %v2725_v46 = vpop.f32.mrf.mxu0  ;;  %9047 = vmatprep.subr.mxu0 %v9613_v0  ;;  %v2843_v12 = vmul.f32 %v9581_v35, %v2823_v49 }
 0xe4e   :  { %v9035_v48 = vpop.f32.mrf.mxu1  ;;  %v2737_v3 = vmul.f32 %v9584_v2, %v2725_v46 }
 0xe4f   :  { %v9022_v60 = vpop.f32.mrf.mxu0  ;;  %v2853_v25 = vcombine.high %v2843_v12, %v2843_v12 }
 0xe50   :  { %9048 = vmatpush3.xpose.msk.msra.mxu0 %vm394_vm4, %v2970_v52  ;;  %v2828_v47 = vpop.f32.mrf.mxu1  ;;  %v2747_v15 = vcombine.high %v2737_v3, %v2737_v3  ;;  %v3088_v21 = vcombine.low %v2746_v18, %v2737_v3 }
 0xe51   :  { %v2730_v1 = vpop.f32.mrf.mxu0  ;;  %9049 = vmatprep.subr.mxu0 %v9613_v0  ;;  %v2844_v55 = vmul.f32 %v9583_v53, %v2828_v47  ;;  %v3553_v27 = vcombine.low %v2843_v12, %v2853_v25 }
 0xe52   :  { %v2738_v4 = vmul.f32 %v9585_v56, %v2730_v1  ;;  %v9038_v5 = vpop.f32.mrf.mxu1 }
 0xe53   :  { %v9025_v7 = vpop.f32.mrf.mxu0  ;;  %v2854_v9 = vcombine.high %v2844_v55, %v2844_v55 }
 0xe54   :  { %v2748_v10 = vcombine.high %v2738_v4, %v2738_v4  ;;  %9050 = vmatpush3.xpose.msk.msra.mxu0 %vm394_vm4, %v2969_v36  ;;  %v2833_v11 = vpop.f32.mrf.mxu1  ;;  %v3089_v8 = vcombine.low %v2747_v15, %v2738_v4 }
 0xe55   :  { %v2845_v14 = vmul.f32 %v9584_v2, %v2833_v11  ;;  %9063 = vmatprep.subr.msk.mxu0 %vm1419_vm9, %v10090_v22 }
 0xe56   :  { %9055 = vmatpush3.xpose.msk.msra.mxu1 %vm394_vm4, %v2748_v10  ;;  %v9041_v16 = vpop.f32.mrf.mxu1 }
 0xe57   :  { %9052 = vmatmul.mubr.msk.f32.vlgmr.msra.gmra.mxu0 %vm394_vm4, %v2968_v13  ;;  %9056 = vmatprep.subr.mxu1 %v9613_v0  ;;  %v10492_v17 = vcombine.low %v2854_v9, %v2845_v14 }
 0xe58   :  { %9064 = vmatpush3.msk.msra.mxu0 %vm1419_vm9, %v10090_v22  ;;  %v2852_v22 = vcombine.high %v2842_v20, %v2842_v20  ;;  %v2838_v28 = vpop.f32.mrf.mxu1 }
 0xe59   :  { %9065 = vmatprep.subr.mxu0 %v10095_v23  ;;  %v2846_v29 = vmul.f32 %v9585_v56, %v2838_v28 }
 0xe5a   :  { %9057 = vmatpush3.xpose.msk.msra.mxu1 %vm394_vm4, %v3089_v8  ;;  %9066 = vmatpush3.msra.mxu0 %v10095_v23  ;;  %v3552_v23 = vcombine.low %v2842_v20, %v2852_v22  ;;  %v9044_v30 = vpop.f32.mrf.mxu1 }
 0xe5b   :  { %9058 = vmatprep.subr.mxu1 %v9613_v0  ;;  %9067 = vmatprep.subr.mxu0 %v10104_v24  ;;  %v2855_v24 = vcombine.high %v2845_v14, %v2845_v14  ;;  %v2856_v18 = vcombine.high %v2846_v29, %v2846_v29 }
 0xe5c   :  { %9068 = vmatpush3.msra.mxu0 %v9586_v26 }
 0xe5d   :  { %9081 = vmatprep.subr.mxu0 %v9613_v0  ;;  %v3675_v31 = vcombine.low %v2855_v24, %v2846_v29 }
 0xe5e   :  { %9059 = vmatpush3.xpose.msk.msra.mxu1 %vm394_vm4, %v3088_v21 }
 0xe5f   :  { %9072 = vmatprep.subr.mxu1 %v9613_v0 }
 0xe61   :  { %9061 = vmatmul.mubr.msk.f32.vlgmr.msra.gmra.mxu1 %vm394_vm4, %v10429_v19 }
 0xe62   :  { %9073 = vmatpush3.msk.msra.mxu1 %vm1419_vm9, %v2844_v55  ;;  %9078 = vmatprep.mubr.msk.f32.mxu1 %vm9614_vm6, %v9613_v0 }
 0xe63   :  { %9074 = vmatprep.subr.mxu1 %v9613_v0 }
 0xe64   :  { %9075 = vmatpush3.msra.mxu1 %v3553_v27 }
 0xe65   :  { %9076 = vmatprep.subr.mxu1 %v9613_v0 }
 0xe66   :  { %9077 = vmatpush3.msra.mxu1 %v3552_v23 }
 0xf17   :  { %v3045_v32 = vpop.f32.mrf.mxu0 }
 0xf18   :  { %v3168_v19 = vsel %vm1247_vm10, %v3045_v32, -inf }
 0xf19   :  { %3169 = vmax.xlane.f32.xlu0 %v3168_v19  ;;  %v9053_v33 = vpop.f32.mrf.mxu0 }
 0xf21   :  { %v3164_v35 = vpop.f32.mrf.mxu1 }
 0xf22   :  { %v3171_v38 = vsel %vm1247_vm10, %v3164_v35, -inf }
 0xf23   :  { %3172 = vmax.xlane.f32.xlu1 %v3171_v38  ;;  %v9062_v39 = vpop.f32.mrf.mxu1 }
 0xfa2   :  { %v3170_v40 = vpop.xlane.xlu0 %3169 }
 0xfa3   :  { %v3174_v41 = vsub.f32 %v3045_v32, %v3170_v40 }
 0xfa5   :  { %v3176_v42 = vmul.f32 1.442695, %v3174_v41 }
 0xfa7   :  { %9520 = vpow2.f32 %v3176_v42 }
 0xfac   :  { %v3173_v43 = vpop.xlane.xlu1 %3172 }
 0xfad   :  { %v3175_v45 = vsub.f32 %v3164_v35, %v3173_v43 }
 0xfaf   :  { %v3178_v44 = vmul.f32 1.442695, %v3175_v45 }
 0xfb1   :  { %9522 = vpow2.f32 %v3178_v44 }
 0xfb4   :  { %v9521_v50 = vpop.eup %9520 }
 0xfb5   :  { %v3189_v53 = vrot.slane %v9521_v50, %v9951_v34  ;;  %v3182_v54 = vcombine.high %v9521_v50, %v9521_v50 }
 0xfb7   :  { %v3197_v37 = vcombine.high %v3189_v53, %v3189_v53  ;;  %v10521_v49 = vrot.slane %v3189_v53, %v9951_v34  ;;  %v3196_v59 = vrot.slane %v3182_v54, %v9951_v34 }
 0xfb9   :  { %v10518_v58 = vrot.slane %v3197_v37, %v9951_v34  ;;  %v3211_v1 = vrot.slane %v3196_v59, %v9951_v34  ;;  %v3219_v30 = vcombine.high %v10521_v49, %v10521_v49 }
 0xfbb   :  { %v3270_v51 = vcombine.low %v10521_v49, %v10518_v58  ;;  %v8208_v57 = vcombine.high %v10521_v49, %v10518_v58  ;;  %v3220_v33 = vcombine.high %v10518_v58, %v10518_v58 }
 0xfbd   :  { %v3280_v55 = vrot.slane %v3270_v51, %v9951_v34  ;;  %v3287_v56 = vrot.slane %v8208_v57, %v9951_v34 }
 0xfbe   :  { %v9523_v46 = vpop.eup %9522 }
 0xfbf   :  { %v3221_v52 = vcombine.high %v9523_v46, %v9523_v46  ;;  %v3228_v48 = vrot.slane %v9523_v46, %v9951_v34  ;;  %v3302_v10 = vcombine.low %v3280_v55, %v3287_v56 }
 0xfc1   :  { %v3235_v60 = vrot.slane %v3221_v52, %v9951_v34  ;;  %v3236_v47 = vcombine.high %v3228_v48, %v3228_v48  ;;  %v3243_v62 = vrot.slane %v3228_v48, %v9951_v34  ;;  %v3310_v15 = vrot.slane %v3302_v10, %v9951_v34  ;;  %v8219_v10 = vld [vmem:[%s11567_s19 + $0x38] sm:$0xff] }
 0xfc2   :  { %9090 = vmatprep.subr.mxu1 %v8219_v10 }
 0xfc3   :  { %v3257_v36 = vrot.slane %v3236_v47, %v9951_v34  ;;  %v3258_v2 = vcombine.high %v3243_v62, %v3243_v62  ;;  %v3272_v3 = vcombine.low %v3211_v1, %v3243_v62  ;;  %v3250_v5 = vrot.slane %v3235_v60, %v9951_v34 }
 0xfc5   :  { %v3273_v4 = vcombine.low %v3257_v36, %v3258_v2  ;;  %v3259_v6 = vcombine.high %v3257_v36, %v3257_v36  ;;  %v3294_v7 = vrot.slane %v3272_v3, %v9951_v34 }
 0xfc7   :  { %v3301_v9 = vrot.slane %v3273_v4, %v9951_v34  ;;  %v3319_v11 = vcombine.low %v3259_v6, %v3250_v5 }
 0xfc9   :  { %v3303_v13 = vcombine.low %v3294_v7, %v3301_v9  ;;  %v3326_v14 = vrot.slane %v3319_v11, %v9951_v34  ;;  %v8218_v11 = vld [vmem:[%s11567_s19 + $0x30] sm:$0xff] }
 0xfcb   :  { %v3317_v16 = vrot.slane %v3303_v13, %v9951_v34  ;;  %v3333_v12 = vrot.slane %v3326_v14, %v9951_v34  ;;  %v8217_v13 = vld [vmem:[%s11567_s19 + $0x28] sm:$0xff]  ;;  %v8216_v14 = vld [vmem:[%s11567_s19 + $0x20] sm:$0xff] }
 0xfcd   :  { %v3318_v8 = vcombine.low %v3310_v15, %v3317_v16 }
 0xfcf   :  { %9069 = vmatprep.mubr.msk.f32.mxu0 %vm1414_vm11, %v3318_v8 }
 0xfd0   :  { %9070 = vmatmul.mubr.msk.f32.vlgmr.msra.gmra.mxu0 %vm1414_vm11, %v3333_v12 }
 0xfd1   :  { %9082 = vmatpush3.msk.msra.mxu0 %vm1419_vm9, %v2856_v18  ;;  %9087 = vmatprep.mubr.msk.f32.mxu0 %vm9614_vm6, %v9613_v0 }
 0xfd2   :  { %9083 = vmatprep.subr.mxu0 %v9613_v0 }
 0xfd3   :  { %9084 = vmatpush3.msra.mxu0 %v3675_v31 }
 0xfd4   :  { %9085 = vmatprep.subr.mxu0 %v9613_v0 }
 0xfd5   :  { %9086 = vmatpush3.msra.mxu0 %v10492_v17 }
0x1090   :  { %v9071_v20 = vpop.f32.mrf.mxu0 }
0x1091   :  { %9524 = vrcp.f32 %v9071_v20 }
0x1092   :  { %v3404_v21 = vpop.f32.mrf.mxu0 }
0x1093   :  { %9526 = vrcp.f32 %v3404_v21 }
0x109e   :  { %v9525_v25 = vpop.eup %9524 }
0x109f   :  { %v3472_v26 = vrot.slane %v9525_v25, %v9951_v34 }
0x10a0   :  { %v9527_v22 = vpop.eup %9526 }
0x10a1   :  { %v3417_v27 = vcombine.high %v9527_v22, %v9527_v22  ;;  %v3424_v23 = vrot.slane %v9527_v22, %v9951_v34  ;;  %v3473_v24 = vcombine.high %v3472_v26, %v3472_v26  ;;  %v3480_v35 = vrot.slane %v3472_v26, %v9951_v34 }
0x10a3   :  { %v3431_v28 = vrot.slane %v3417_v27, %v9951_v34  ;;  %v3432_v29 = vcombine.high %v3424_v23, %v3424_v23  ;;  %v3440_v17 = vrot.slane %v3424_v23, %v9951_v34  ;;  %v3487_v38 = vrot.slane %v3473_v24, %v9951_v34 }
0x10a4   :  { %v3506_v51 = vmul.f32 %v3480_v35, %v3259_v6 }
0x10a5   :  { %v3433_v31 = vcombine.high %v3431_v28, %v3431_v28  ;;  %v3447_v32 = vrot.slane %v3431_v28, %v9951_v34  ;;  %v3454_v19 = vrot.slane %v3432_v29, %v9951_v34  ;;  %v3462_v39 = vcombine.high %v3440_v17, %v3440_v17 }
0x10a6   :  { %v3498_v40 = vmul.f32 %v3440_v17, %v10521_v49  ;;  %v3507_v57 = vmul.f32 %v3487_v38, %v3250_v5 }
0x10a7   :  { %v3461_v41 = vrot.slane %v3433_v31, %v9951_v34  ;;  %v3463_v42 = vcombine.high %v3447_v32, %v3447_v32  ;;  %v3464_v43 = vcombine.high %v3454_v19, %v3454_v19  ;;  %v3499_v45 = vmul.f32 %v3454_v19, %v10518_v58 }
0x10a8   :  { %v3500_v44 = vmul.f32 %v3462_v39, %v3219_v30  ;;  %v3502_v50 = vmul.f32 %v3447_v32, %v3211_v1 }
0x10a9   :  { %v3465_v53 = vcombine.high %v3461_v41, %v3461_v41  ;;  %v3501_v37 = vmul.f32 %v3464_v43, %v3220_v33  ;;  %v3513_v54 = vcombine.low %v3498_v40, %v3499_v45  ;;  %v3503_v59 = vmul.f32 %v3461_v41, %v3243_v62 }
0x10aa   :  { %v3504_v46 = vmul.f32 %v3463_v42, %v3257_v36  ;;  %v3535_v55 = vrot.slane %v3502_v50, %v9951_v34  ;;  %v3657_v62 = vrot.slane %v3507_v57, %v9951_v34 }
0x10ab   :  { %v3514_v52 = vcombine.low %v3500_v44, %v3501_v37  ;;  %v3505_v48 = vmul.f32 %v3465_v53, %v3258_v2  ;;  %v3521_v49 = vrot.slane %v3513_v54, %v9951_v34 }
0x10ac   :  { %v3635_v60 = vcombine.low %v3503_v59, %v3504_v46  ;;  %v3550_v2 = vrot.slane %v3535_v55, %v9951_v34  ;;  %v3672_v7 = vrot.slane %v3657_v62, %v9951_v34 }
0x10ad   :  { %v3528_v47 = vrot.slane %v3514_v52, %v9951_v34  ;;  %v3636_v3 = vcombine.low %v3505_v48, %v3506_v51  ;;  %v8224_v52 = vld [vmem:[%s11568_s20 + $0x1] ss:$0 sm:$0xff] }
0x10ae   :  { %v3643_v1 = vrot.slane %v3635_v60, %v9951_v34 }
0x10af   :  { %v3536_v58 = vcombine.low %v3521_v49, %v3528_v47  ;;  %v3650_v56 = vrot.slane %v3636_v3, %v9951_v34 }
0x10b1   :  { %v3543_v36 = vrot.slane %v3536_v58, %v9951_v34  ;;  %v3658_v4 = vcombine.low %v3643_v1, %v3650_v56 }
0x10b3   :  { %v3551_v5 = vcombine.low %v3543_v36, %v3550_v2  ;;  %v3665_v6 = vrot.slane %v3658_v4, %v9951_v34 }
0x10b5   :  { %9079 = vmatmul.mubr.msk.f32.vlgmr.msra.gmra.mxu1 %vm1414_vm11, %v3551_v5  ;;  %v3673_v9 = vcombine.low %v3665_v6, %v3672_v7  ;;  %v8232_v6 = vld [vmem:[%s11569_s23 + $0x38] sm:$0xff]  ;;  %v8231_v7 = vld [vmem:[%s11569_s23 + $0x30] sm:$0xff] }
0x10b6   :  { %9091 = vmatpush3.msra.mxu1 %v8219_v10  ;;  %9101 = vmatprep.subr.mxu0 %v8232_v6  ;;  %v8229_v10 = vld [vmem:[%s11569_s23 + $0x20] sm:$0xff] }
0x10b7   :  { %9088 = vmatmul.mubr.msk.f32.vlgmr.msra.gmra.mxu0 %vm1414_vm11, %v3673_v9  ;;  %9092 = vmatprep.subr.mxu1 %v8218_v11  ;;  %v8230_v9 = vld [vmem:[%s11569_s23 + $0x28] sm:$0xff] }
0x10b8   :  { %9093 = vmatpush3.msra.mxu1 %v8218_v11  ;;  %9102 = vmatpush3.msra.mxu0 %v8232_v6  ;;  %v8252_v11 = vld [vmem:[%s11570_s25 + $0xf8] sm:$0xff] }
0x10b9   :  { %9094 = vmatprep.subr.mxu1 %v8217_v13  ;;  %9103 = vmatprep.subr.mxu0 %v8231_v7 }
0x10ba   :  { %9095 = vmatpush3.msra.mxu1 %v8217_v13  ;;  %9104 = vmatpush3.msra.mxu0 %v8231_v7  ;;  %v8251_v13 = vld [vmem:[%s11570_s25 + $0xf0] sm:$0xff] }
0x10bb   :  { %9096 = vmatprep.subr.mxu1 %v8216_v14  ;;  %9105 = vmatprep.subr.mxu0 %v8230_v9 }
0x10bc   :  { %9097 = vmatpush3.msra.mxu1 %v8216_v14  ;;  %9106 = vmatpush3.msra.mxu0 %v8230_v9  ;;  %v8250_v14 = vld [vmem:[%s11570_s25 + $0xe8] sm:$0xff] }
0x10bd   :  { %9107 = vmatprep.subr.mxu0 %v8229_v10  ;;  %9112 = vmatprep.subr.mxu1 %v8252_v11 }
0x10be   :  { %9108 = vmatpush3.msra.mxu0 %v8229_v10 }
0x1175   :  { %v3626_v15 = vpop.f32.mrf.mxu1 }
0x1176   :  { %v3754_v16 = vcombine.high %v3626_v15, %v3626_v15  ;;  %v3761_v8 = vrot.slane %v3626_v15, %v9951_v34 }
0x1177   :  { %v9080_v12 = vpop.f32.mrf.mxu1  ;;  %v3748_v18 = vpop.f32.mrf.mxu0 }
0x1178   :  { %v3768_v20 = vrot.slane %v3754_v16, %v9951_v34  ;;  %v3769_v21 = vcombine.high %v3761_v8, %v3761_v8  ;;  %v3793_v25 = vcombine.high %v3748_v18, %v3748_v18  ;;  %v3800_v26 = vrot.slane %v3748_v18, %v9951_v34 }
0x1179   :  { %v9089_v22 = vpop.f32.mrf.mxu0  ;;  %v3776_v27 = vrot.slane %v3761_v8, %v9951_v34 }
0x117a   :  { %v3783_v23 = vrot.slane %v3768_v20, %v9951_v34  ;;  %v3790_v24 = vrot.slane %v3769_v21, %v9951_v34  ;;  %v3807_v28 = vrot.slane %v3793_v25, %v9951_v34  ;;  %v3808_v29 = vcombine.high %v3800_v26, %v3800_v26  ;;  %v8227_v25 = vld [vmem:[%s11571_s21 + $0x1] ss:$0 sm:$0xff] }
0x117b   :  { %v3815_v30 = vrot.slane %v3800_v26, %v9951_v34 }
0x117c   :  { %v3837_v17 = vcombine.low %v3776_v27, %v3790_v24  ;;  %v8220_v31 = vcombine.high %v3776_v27, %v3790_v24  ;;  %v3829_v32 = vrot.slane %v3808_v29, %v9951_v34  ;;  %v3822_v39 = vrot.slane %v3807_v28, %v9951_v34  ;;  %v8228_v24 = vld [vmem:[%s11572_s22 + $0x1] ss:$0 sm:$0xff] }
0x117d   :  { %v3830_v19 = vcombine.high %v3815_v30, %v3815_v30  ;;  %v3839_v33 = vcombine.low %v3783_v23, %v3815_v30 }
0x117e   :  { %v3847_v35 = vrot.slane %v3837_v17, %v9951_v34  ;;  %v3854_v38 = vrot.slane %v8220_v31, %v9951_v34  ;;  %v3831_v40 = vcombine.high %v3829_v32, %v3829_v32  ;;  %v8249_v17 = vld [vmem:[%s11570_s25 + $0xe0] sm:$0xff]  ;;  %v8248_v31 = vld [vmem:[%s11570_s25 + $0xd8] sm:$0xff] }
0x117f   :  { %v3840_v41 = vcombine.low %v3829_v32, %v3830_v19  ;;  %v3861_v43 = vrot.slane %v3839_v33, %v9951_v34  ;;  %v8247_v32 = vld [vmem:[%s11570_s25 + $0xd0] sm:$0xff]  ;;  %v8246_v19 = vld [vmem:[%s11570_s25 + $0xc8] sm:$0xff]  ;;  %v8245_v33 = vld [vmem:[%s11570_s25 + $0xc0] sm:$0xff] }
0x1180   :  { %v3869_v42 = vcombine.low %v3847_v35, %v3854_v38  ;;  %v3886_v44 = vcombine.low %v3831_v40, %v3822_v39  ;;  %v8244_v35 = vld [vmem:[%s11570_s25 + $0xb8] sm:$0xff]  ;;  %v8243_v38 = vld [vmem:[%s11570_s25 + $0xb0] sm:$0xff]  ;;  %v8242_v39 = vld [vmem:[%s11570_s25 + $0xa8] sm:$0xff] }
0x1181   :  { %v3868_v45 = vrot.slane %v3840_v41, %v9951_v34  ;;  %v8241_v40 = vld [vmem:[%s11570_s25 + $0xa0] sm:$0xff]  ;;  %v8240_v41 = vld [vmem:[%s11570_s25 + $0x98] sm:$0xff] }
0x1182   :  { %v3893_v53 = vrot.slane %v3886_v44, %v9951_v34  ;;  %v3877_v37 = vrot.slane %v3869_v42, %v9951_v34  ;;  %v8239_v42 = vld [vmem:[%s11570_s25 + $0x90] sm:$0xff]  ;;  %v8234_v44 = vld [vmem:[%s11573_s24 + $0x1] ss:$0 sm:$0xff] }
0x1183   :  { %v3870_v50 = vcombine.low %v3861_v43, %v3868_v45  ;;  %v8238_v43 = vld [vmem:[%s11570_s25 + $0x88] sm:$0xff]  ;;  %v8237_v45 = vld [vmem:[%s11570_s25 + $0x80] sm:$0xff] }
0x1184   :  { %v3900_v46 = vrot.slane %v3893_v53, %v9951_v34 }
0x1185   :  { %v3884_v54 = vrot.slane %v3870_v50, %v9951_v34 }
0x1187   :  { %v3885_v59 = vcombine.low %v3877_v37, %v3884_v54 }
0x1189   :  { %9098 = vmatprep.mubr.msk.f32.mxu1 %vm394_vm4, %v3885_v59 }
0x118a   :  { %9099 = vmatmul.mubr.msk.f32.vlgmr.msra.gmra.mxu1 %vm394_vm4, %v3900_v46 }
0x118b   :  { %9113 = vmatpush3.msra.mxu1 %v8252_v11 }
0x118c   :  { %9114 = vmatprep.subr.mxu1 %v8251_v13 }
0x118d   :  { %9115 = vmatpush3.msra.mxu1 %v8251_v13 }
0x118e   :  { %9116 = vmatprep.subr.mxu1 %v8250_v14 }
0x118f   :  { %9117 = vmatpush3.msra.mxu1 %v8250_v14 }
0x1190   :  { %9118 = vmatprep.subr.mxu1 %v8249_v17 }
0x1191   :  { %9119 = vmatpush3.msra.mxu1 %v8249_v17 }
0x1192   :  { %9120 = vmatprep.subr.mxu1 %v8248_v31 }
0x1193   :  { %9121 = vmatpush3.msra.mxu1 %v8248_v31 }
0x1194   :  { %9122 = vmatprep.subr.mxu1 %v8247_v32 }
0x1195   :  { %9123 = vmatpush3.msra.mxu1 %v8247_v32  ;;  %v8260_v32 = vld [vmem:[%s11608_s3 + $0x2] ss:$0 sm:$0xff] }
0x1196   :  { %9124 = vmatprep.subr.mxu1 %v8246_v19 }
0x1197   :  { %9125 = vmatpush3.msra.mxu1 %v8246_v19 }
0x1198   :  { %9126 = vmatprep.subr.mxu1 %v8245_v33 }
0x1199   :  { %9127 = vmatpush3.msra.mxu1 %v8245_v33 }
0x119a   :  { %9128 = vmatprep.subr.mxu1 %v8244_v35 }
0x119b   :  { %9129 = vmatpush3.msra.mxu1 %v8244_v35 }
0x119c   :  { %9130 = vmatprep.subr.mxu1 %v8243_v38 }
0x119d   :  { %9131 = vmatpush3.msra.mxu1 %v8243_v38  ;;  %v8271_v38 = vld [vmem:[%s11606_s28 + $0x50] sm:$0xff] }
0x119e   :  { %9132 = vmatprep.subr.mxu1 %v8242_v39 }
0x119f   :  { %9133 = vmatpush3.msra.mxu1 %v8242_v39  ;;  %v8270_v39 = vld [vmem:[%s11606_s28 + $0x48] sm:$0xff] }
0x11a0   :  { %9134 = vmatprep.subr.mxu1 %v8241_v40 }
0x11a1   :  { %9135 = vmatpush3.msra.mxu1 %v8241_v40  ;;  %v8269_v40 = vld [vmem:[%s11606_s28 + $0x40] sm:$0xff] }
0x11a2   :  { %9136 = vmatprep.subr.mxu1 %v8240_v41 }
0x11a3   :  { %9137 = vmatpush3.msra.mxu1 %v8240_v41  ;;  %v8280_v41 = vld [vmem:[%s11560_s17 + $0x58] sm:$0xff] }
0x11a4   :  { %9138 = vmatprep.subr.mxu1 %v8239_v42 }
0x11a5   :  { %9139 = vmatpush3.msra.mxu1 %v8239_v42  ;;  %v8279_v42 = vld [vmem:[%s11560_s17 + $0x50] sm:$0xff] }
0x11a6   :  { %9140 = vmatprep.subr.mxu1 %v8238_v43 }
0x11a7   :  { %9141 = vmatpush3.msra.mxu1 %v8238_v43  ;;  %v8278_v43 = vld [vmem:[%s11560_s17 + $0x48] sm:$0xff] }
0x11a8   :  { %9142 = vmatprep.subr.mxu1 %v8237_v45 }
0x11a9   :  { %9143 = vmatpush3.msra.mxu1 %v8237_v45  ;;  %v8277_v45 = vld [vmem:[%s11560_s17 + $0x40] sm:$0xff] }
0x11aa   :  { %9199 = vmatprep.subr.mxu1 %v9613_v0 }
0x124a   :  { %v9100_v51 = vpop.f32.mrf.mxu1 }
0x124b   :  { %v3981_v48 = vadd.f32 %v9100_v51, %v10302_v61 }
0x124c   :  { %v3971_v57 = vpop.f32.mrf.mxu1 }
0x124d   :  { %v10613_v60 = vadd.f32 %v8224_v52, %v3981_v48  ;;  %v3980_v49 = vadd.f32 %v3971_v57, %v10310_v63 }
0x124f   :  { %v10616_v47 = vadd.f32 %v8224_v52, %v3980_v49  ;;  %v3999_v55 = vsel %vm398_vm5, %v10613_v60, 0.0 }
0x1250   :  { %4000 = vadd.xlane.f32.xlu1 %v3999_v55 }
0x1251   :  { %v3996_v3 = vsel %vm394_vm4, %v10616_v47, 0.0 }
0x1252   :  { %3997 = vadd.xlane.f32.xlu0 %v3996_v3 }
0x12d9   :  { %v4001_v58 = vpop.xlane.xlu1 %4000 }
0x12da   :  { %v4003_v1 = vmul.f32 0.03125, %v4001_v58 }
0x12db   :  { %v3998_v56 = vpop.xlane.xlu0 %3997 }
0x12dc   :  { %v4005_v61 = vsub.f32 %v10613_v60, %v4003_v1  ;;  %v4002_v62 = vmul.f32 0.03125, %v3998_v56  ;;  %v8254_v56 = vld [vmem:[%s11574_s26 + $0x1] ss:$0 sm:$0xff] }
0x12de   :  { %v4004_v36 = vsub.f32 %v10616_v47, %v4002_v62  ;;  %v4007_v2 = vmul.f32 %v4005_v61, %v4005_v61 }
0x12e0   :  { %v4011_v63 = vsel %vm398_vm5, %v4007_v2, 0.0  ;;  %v4006_v4 = vmul.f32 %v4004_v36, %v4004_v36 }
0x12e1   :  { %4012 = vadd.xlane.f32.xlu1 %v4011_v63 }
0x12e2   :  { %v4008_v5 = vsel %vm394_vm4, %v4006_v4, 0.0 }
0x12e3   :  { %4009 = vadd.xlane.f32.xlu0 %v4008_v5 }
0x136a   :  { %v4013_v15 = vpop.xlane.xlu1 %4012 }
0x136b   :  { %v4015_v16 = vmul.f32 0.03125, %v4013_v15 }
0x136c   :  { %v4010_v8 = vpop.xlane.xlu0 %4009 }
0x136d   :  { %v4017_v12 = vadd.f32 1e-06, %v4015_v16  ;;  %v4014_v18 = vmul.f32 0.03125, %v4010_v8  ;;  %v8264_v16 = vld [vmem:[%s11605_s2 + $0x58] sm:$0xff]  ;;  %v8263_v8 = vld [vmem:[%s11605_s2 + $0x50] sm:$0xff] }
0x136e   :  { %9147 = vmatprep.subr.mxu0 %v8264_v16 }
0x136f   :  { %9528 = vrsqrt.f32 %v4017_v12  ;;  %v4016_v20 = vadd.f32 1e-06, %v4014_v18  ;;  %v8262_v12 = vld [vmem:[%s11605_s2 + $0x48] sm:$0xff]  ;;  %v8261_v18 = vld [vmem:[%s11605_s2 + $0x40] sm:$0xff] }
0x1371   :  { %9530 = vrsqrt.f32 %v4016_v20  ;;  %v8272_v20 = vld [vmem:[%s11606_s28 + $0x58] sm:$0xff] }
0x137c   :  { %v9529_v21 = vpop.eup %9528 }
0x137d   :  { %v4021_v26 = vmul.f32 %v9529_v21, %v4005_v61 }
0x137e   :  { %v9531_v22 = vpop.eup %9530 }
0x137f   :  { %v4020_v27 = vmul.f32 %v9531_v22, %v4004_v36  ;;  %v4029_v23 = vmul.f32 %v8227_v25, %v4021_v26 }
0x1381   :  { %v4028_v28 = vmul.f32 %v8227_v25, %v4020_v27  ;;  %v4037_v30 = vadd.f32 %v8228_v24, %v4029_v23 }
0x1383   :  { %v4036_v29 = vadd.f32 %v8228_v24, %v4028_v28  ;;  %v8259_v28 = vld [vmem:[%s11607_s9 + $0x2] ss:$0 sm:$0xff] }
0x1385   :  { %9109 = vmatprep.mubr.msk.f32.mxu0 %vm394_vm4, %v4036_v29 }
0x1386   :  { %9110 = vmatmul.mubr.msk.f32.vlgmr.msra.gmra.mxu0 %vm394_vm4, %v4037_v30 }
0x1387   :  { %9148 = vmatpush3.msra.mxu0 %v8264_v16 }
0x1388   :  { %9149 = vmatprep.subr.mxu0 %v8263_v8 }
0x1389   :  { %9150 = vmatpush3.msra.mxu0 %v8263_v8  ;;  %v9588_v8 = vld [vmem:[%s11563_s4 + $0x8] sm:$0xff] }
0x138a   :  { %9151 = vmatprep.subr.mxu0 %v8262_v12 }
0x138b   :  { %9152 = vmatpush3.msra.mxu0 %v8262_v12 }
0x138c   :  { %9153 = vmatprep.subr.mxu0 %v8261_v18 }
0x138d   :  { %9154 = vmatpush3.msra.mxu0 %v8261_v18 }
0x138e   :  { %9158 = vmatprep.subr.mxu0 %v8272_v20 }
0x1446   :  { %v9111_v50 = vpop.f32.mrf.mxu0 }
0x1447   :  { %v4129_v53 = vadd.f32 %v9111_v50, %v8234_v44 }
0x1448   :  { %v4123_v37 = vpop.f32.mrf.mxu0 }
0x1449   :  { %v4135_v54 = vmul.f32 0.70710677, %v4129_v53  ;;  %v4124_v59 = vadd.f32 %v8234_v44, %v4123_v37  ;;  %v4133_v55 = vmul.f32 0.5, %v4129_v53  ;;  %v8266_v44 = vld [vmem:[%s11561_s14 + $0x2] ss:$0 sm:$0xff] }
0x144b   :  { %9532 = verf.f32 %v4135_v54  ;;  %v4134_v46 = vmul.f32 0.70710677, %v4124_v59  ;;  %v4132_v57 = vmul.f32 0.5, %v4124_v59 }
0x144d   :  { %9534 = verf.f32 %v4134_v46 }
0x1458   :  { %v9533_v51 = vpop.eup %9532 }
0x1459   :  { %v4139_v48 = vadd.f32 1.0, %v9533_v51 }
0x145a   :  { %v9535_v52 = vpop.eup %9534 }
0x145b   :  { %v4138_v49 = vadd.f32 1.0, %v9535_v52  ;;  %v4141_v58 = vmul.f32 %v4139_v48, %v4133_v55  ;;  %v8274_v52 = vld [vmem:[%s11562_s16 + $0x2] ss:$0 sm:$0xff] }
0x145d   :  { %v4140_v3 = vmul.f32 %v4138_v49, %v4132_v57 }
0x145f   :  { %9144 = vmatprep.mubr.f32.mxu1 %v4140_v3 }
0x1460   :  { %9145 = vmatmul.mubr.f32.vlgmr.msra.gmra.mxu1 %v4141_v58 }
0x1461   :  { %9203 = vmatprep.mubr.msk.f32.mxu1 %vm9614_vm6, %v9613_v0 }
0x1520   :  { %v9146_v1 = vpop.f32.mrf.mxu1 }
0x1521   :  { %v4235_v61 = vadd.f32 %v9146_v1, %v10613_v60 }
0x1522   :  { %v4225_v62 = vpop.f32.mrf.mxu1 }
0x1523   :  { %v10704_v36 = vadd.f32 %v8254_v56, %v4235_v61  ;;  %v4234_v2 = vadd.f32 %v4225_v62, %v10616_v47 }
0x1525   :  { %8256 = vst.msk [vmem:[%s11575_s27 + $0x18] sm:$0x3] %vm398_vm5, %v10704_v36  ;;  %v10712_v63 = vadd.f32 %v8254_v56, %v4234_v2  ;;  %v4256_v4 = vsel %vm398_vm5, %v10704_v36, 0.0 }
0x1526   :  { %4257 = vadd.xlane.f32.xlu1 %v4256_v4 }
0x1527   :  { %8255 = vst.msk [vmem:[%s11575_s27 + $0x10] sm:$0xff] %vm394_vm4, %v10712_v63  ;;  %v4253_v60 = vsel %vm394_vm4, %v10712_v63, 0.0 }
0x1528   :  { %4254 = vadd.xlane.f32.xlu0 %v4253_v60 }
0x15af   :  { %v4258_v47 = vpop.xlane.xlu1 %4257 }
0x15b0   :  { %v4260_v5 = vmul.f32 0.03125, %v4258_v47  ;;  %v8282_v47 = vld [vmem:[%s11564_s18 + $0x2] ss:$0 sm:$0xff] }
0x15b1   :  { %v4255_v6 = vpop.xlane.xlu0 %4254 }
0x15b2   :  { %v4262_v7 = vsub.f32 %v10704_v36, %v4260_v5  ;;  %v4259_v9 = vmul.f32 0.03125, %v4255_v6  ;;  %v9587_v6 = vld [vmem:[%s11563_s4] sm:$0xff] }
0x15b4   :  { %v4261_v10 = vsub.f32 %v10712_v63, %v4259_v9  ;;  %v4264_v11 = vmul.f32 %v4262_v7, %v4262_v7 }
0x15b6   :  { %v4268_v13 = vsel %vm398_vm5, %v4264_v11, 0.0  ;;  %v4263_v14 = vmul.f32 %v4261_v10, %v4261_v10 }
0x15b7   :  { %4269 = vadd.xlane.f32.xlu1 %v4268_v13 }
0x15b8   :  { %v4265_v15 = vsel %vm394_vm4, %v4263_v14, 0.0 }
0x15b9   :  { %4266 = vadd.xlane.f32.xlu0 %v4265_v15 }
0x1640   :  { %v4270_v21 = vpop.xlane.xlu1 %4269 }
0x1641   :  { %v4272_v25 = vmul.f32 0.03125, %v4270_v21 }
0x1642   :  { %v4267_v26 = vpop.xlane.xlu0 %4266 }
0x1643   :  { %v4274_v22 = vadd.f32 1e-06, %v4272_v25  ;;  %v4271_v27 = vmul.f32 0.03125, %v4267_v26  ;;  %v9590_v25 = vld [vmem:[%s11563_s4 + $0x18] sm:$0xff]  ;;  %v9591_v26 = vld [vmem:[%s11563_s4 + $0x20] sm:$0xff] }
0x1645   :  { %9536 = vrsqrt.f32 %v4274_v22  ;;  %v4273_v23 = vadd.f32 1e-06, %v4271_v27 }
0x1647   :  { %9538 = vrsqrt.f32 %v4273_v23 }
0x1652   :  { %v9537_v24 = vpop.eup %9536 }
0x1653   :  { %v4278_v29 = vmul.f32 %v9537_v24, %v4262_v7 }
0x1654   :  { %v9539_v30 = vpop.eup %9538 }
0x1655   :  { %v4277_v17 = vmul.f32 %v9539_v30, %v4261_v10  ;;  %v4286_v31 = vmul.f32 %v8259_v28, %v4278_v29 }
0x1657   :  { %v4285_v19 = vmul.f32 %v8259_v28, %v4277_v17  ;;  %v4294_v35 = vadd.f32 %v8260_v32, %v4286_v31 }
0x1659   :  { %v4293_v33 = vadd.f32 %v8260_v32, %v4285_v19  ;;  %v9592_v32 = vld [vmem:[%s11565_s5 + $0x8] sm:$0xff] }
0x165b   :  { %9155 = vmatprep.mubr.msk.f32.mxu0 %vm394_vm4, %v4293_v33 }
0x165c   :  { %9156 = vmatmul.mubr.msk.f32.vlgmr.msra.gmra.mxu0 %vm394_vm4, %v4294_v35 }
0x165d   :  { %9159 = vmatpush3.msra.mxu0 %v8272_v20  ;;  %9166 = vmatprep.mubr.msk.f32.mxu0 %vm394_vm4, %v4293_v33  ;;  %v9589_v20 = vld [vmem:[%s11563_s4 + $0x10] sm:$0xff] }
0x165e   :  { %9160 = vmatprep.subr.mxu0 %v8271_v38 }
0x165f   :  { %9161 = vmatpush3.msra.mxu0 %v8271_v38 }
0x1660   :  { %9162 = vmatprep.subr.mxu0 %v8270_v39 }
0x1661   :  { %9163 = vmatpush3.msra.mxu0 %v8270_v39 }
0x1662   :  { %9164 = vmatprep.subr.mxu0 %v8269_v40 }
0x1663   :  { %9165 = vmatpush3.msra.mxu0 %v8269_v40 }
0x1664   :  { %9167 = vmatmul.mubr.msk.f32.vlgmr.msra.gmra.mxu0 %vm394_vm4, %v4294_v35  ;;  %9169 = vmatprep.subr.mxu0 %v8280_v41 }
0x1665   :  { %9170 = vmatpush3.msra.mxu0 %v8280_v41  ;;  %9177 = vmatprep.mubr.msk.f32.mxu0 %vm394_vm4, %v4293_v33  ;;  %v9593_v41 = vld [vmem:[%s11565_s5] sm:$0xff] }
0x1666   :  { %9171 = vmatprep.subr.mxu0 %v8279_v42 }
0x1667   :  { %9172 = vmatpush3.msra.mxu0 %v8279_v42 }
0x1668   :  { %9173 = vmatprep.subr.mxu0 %v8278_v43 }
0x1669   :  { %9174 = vmatpush3.msra.mxu0 %v8278_v43 }
0x166a   :  { %9175 = vmatprep.subr.mxu0 %v8277_v45 }
0x166b   :  { %9176 = vmatpush3.msra.mxu0 %v8277_v45  ;;  %v9594_v45 = vld [vmem:[%s11565_s5 + $0x10] sm:$0xff] }
0x166c   :  { %9178 = vmatmul.mubr.msk.f32.vlgmr.msra.gmra.mxu0 %vm394_vm4, %v4294_v35  ;;  %9180 = vmatprep.subr.mxu0 %v9613_v0 }
0x166d   :  { %9184 = vmatprep.mubr.msk.f32.mxu0 %vm9614_vm6, %v9613_v0 }
0x171c   :  { %v9157_v50 = vpop.f32.mrf.mxu0 }
0x171d   :  { %v4386_v53 = vadd.f32 %v9157_v50, %v8266_v44 }
0x171e   :  { %v4380_v37 = vpop.f32.mrf.mxu0 }
0x171f   :  { %v10781_v54 = vadd.f32 %v8266_v44, %v4380_v37  ;;  %v4838_v59 = vrot.slane %v4386_v53, %v9951_v34 }
0x1721   :  { %v4783_v46 = vcombine.high %v10781_v54, %v10781_v54  ;;  %v4839_v57 = vcombine.high %v4838_v59, %v4838_v59  ;;  %v4846_v62 = vrot.slane %v4838_v59, %v9951_v34  ;;  %v4790_v22 = vrot.slane %v10781_v54, %v9951_v34 }
0x1723   :  { %v4797_v51 = vrot.slane %v4783_v46, %v9951_v34  ;;  %v4853_v2 = vrot.slane %v4839_v57, %v9951_v34  ;;  %v4798_v27 = vcombine.high %v4790_v22, %v4790_v22  ;;  %v4806_v28 = vrot.slane %v4790_v22, %v9951_v34 }
0x1724   :  { %v9168_v48 = vpop.f32.mrf.mxu0 }
0x1725   :  { %v4799_v49 = vcombine.high %v4797_v51, %v4797_v51  ;;  %v10791_v55 = vrot.slane %v4797_v51, %v9951_v34  ;;  %v4474_v3 = vadd.f32 %v9168_v48, %v8274_v52  ;;  %v4995_v9 = vrot.slane %v4853_v2, %v9951_v34 }
0x1726   :  { %v4468_v58 = vpop.f32.mrf.mxu0  ;;  %v4820_v23 = vrot.slane %v4798_v27, %v9951_v34 }
0x1727   :  { %v4827_v1 = vrot.slane %v4799_v49, %v9951_v34  ;;  %v4829_v56 = vcombine.high %v10791_v55, %v10791_v55  ;;  %v4469_v61 = vadd.f32 %v8274_v52, %v4468_v58  ;;  %9181 = vmatpush3.msk.msra.mxu0 %vm719_vm7, %v4474_v3  ;;  %v5010_v12 = vrot.slane %v4995_v9, %v9951_v34 }
0x1728   :  { %9182 = vmatprep.subr.mxu0 %v9613_v0  ;;  %v4854_v30 = vcombine.low %v4806_v28, %v4820_v23  ;;  %v8297_v17 = vcombine.high %v4806_v28, %v4820_v23  ;;  %v4876_v48 = vrot.slane %v10791_v55, %v9951_v34  ;;  %v9596_v55 = vld [vmem:[%s11565_s5 + $0x20] sm:$0xff] }
0x1729   :  { %v4831_v4 = vcombine.high %v4827_v1, %v4827_v1  ;;  %v4973_v60 = vcombine.low %v4827_v1, %v4829_v56  ;;  %9183 = vmatpush3.msra.mxu0 %v4469_v61  ;;  %v9595_v61 = vld [vmem:[%s11565_s5 + $0x18] sm:$0xff] }
0x172a   :  { %9185 = vmatmul.mubr.msk.f32.vlgmr.msra.gmra.mxu0 %vm703_vm8, %v9587_v6  ;;  %9218 = vmatprep.subr.mxu0 %v9613_v0  ;;  %v4862_v38 = vrot.slane %v4854_v30, %v9951_v34  ;;  %v4869_v39 = vrot.slane %v8297_v17, %v9951_v34 }
0x172b   :  { %v4974_v5 = vcombine.low %v4831_v4, %v4846_v62  ;;  %9187 = vmatprep.mubr.msk.f32.mxu0 %vm9614_vm6, %v9613_v0  ;;  %v4981_v10 = vrot.slane %v4973_v60, %v9951_v34  ;;  %v4891_v60 = vrot.slane %v4876_v48, %v9951_v34 }
0x172c   :  { %v9179_v7 = vpop.f32.mrf.mxu0  ;;  %v4877_v54 = vcombine.low %v4862_v38, %v4869_v39 }
0x172d   :  { %v4988_v11 = vrot.slane %v4974_v5, %v9951_v34  ;;  %v4562_v13 = vadd.f32 %v9179_v7, %v8282_v47 }
0x172e   :  { %v4556_v14 = vpop.f32.mrf.mxu0  ;;  %9188 = vmatmul.mubr.msk.f32.gmra.mxu0 %vm703_vm8, %v9588_v8  ;;  %v4884_v3 = vrot.slane %v4877_v54, %v9951_v34 }
0x172f   :  { %v4996_v15 = vcombine.low %v4981_v10, %v4988_v11  ;;  %v4557_v16 = vadd.f32 %v8282_v47, %v4556_v14  ;;  %9200 = vmatpush3.msk.msra.mxu1 %vm719_vm7, %v4562_v13  ;;  %9190 = vmatprep.mubr.msk.f32.mxu0 %vm9614_vm6, %v9613_v0  ;;  %v9597_v11 = vld [vmem:[%s11566_s6 + $0x10] sm:$0xf] }
0x1730   :  { %9201 = vmatprep.subr.mxu1 %v9613_v0  ;;  %v4892_v9 = vcombine.low %v4884_v3, %v4891_v60 }
0x1731   :  { %v5003_v18 = vrot.slane %v4996_v15, %v9951_v34  ;;  %9202 = vmatpush3.msra.mxu1 %v4557_v16 }
0x1732   :  { %9204 = vmatmul.mubr.msk.f32.vlgmr.msra.gmra.mxu1 %vm703_vm8, %v9587_v6  ;;  %9227 = vmatprep.subr.mxu1 %v9613_v0 }
0x1733   :  { %9191 = vmatmul.mubr.msk.f32.gmra.mxu0 %vm703_vm8, %v9589_v20  ;;  %9206 = vmatprep.mubr.msk.f32.mxu1 %vm9614_vm6, %v9613_v0  ;;  %v10831_v21 = vcombine.low %v5003_v18, %v5010_v12  ;;  %v9598_v12 = vld [vmem:[%s11566_s6 + $0x8] sm:$0xff] }
0x1734   :  { %9193 = vmatprep.mubr.msk.f32.mxu0 %vm9614_vm6, %v9613_v0 }
0x1736   :  { %9207 = vmatmul.mubr.msk.f32.gmra.mxu1 %vm703_vm8, %v9588_v8 }
0x1737   :  { %9194 = vmatmul.mubr.msk.f32.gmra.mxu0 %vm703_vm8, %v9590_v25  ;;  %9209 = vmatprep.mubr.msk.f32.mxu1 %vm9614_vm6, %v9613_v0 }
0x1738   :  { %9196 = vmatprep.mubr.msk.f32.mxu0 %vm9614_vm6, %v9613_v0 }
0x173a   :  { %9210 = vmatmul.mubr.msk.f32.gmra.mxu1 %vm703_vm8, %v9589_v20 }
0x173b   :  { %9197 = vmatmul.mubr.msk.f32.gmra.mxu0 %vm703_vm8, %v9591_v26  ;;  %9212 = vmatprep.mubr.msk.f32.mxu1 %vm9614_vm6, %v9613_v0 }
0x173c   :  { %9224 = vmatprep.mubr.msk.f32.mxu0 %vm9614_vm6, %v9613_v0 }
0x173e   :  { %9213 = vmatmul.mubr.msk.f32.gmra.mxu1 %vm703_vm8, %v9590_v25  ;;  %v9599_v25 = vld [vmem:[%s11566_s6] sm:$0xff] }
0x173f   :  { %9215 = vmatprep.mubr.msk.f32.mxu1 %vm9614_vm6, %v9613_v0 }
0x1742   :  { %9216 = vmatmul.mubr.msk.f32.gmra.mxu1 %vm703_vm8, %v9591_v26 }
0x1743   :  { %9233 = vmatprep.mubr.msk.f32.mxu1 %vm9614_vm6, %v9613_v0 }
0x17ea   :  { %v4634_v24 = vpop.f32.mrf.mxu0 }
0x17eb   :  { %v4658_v42 = vmul.f32 %v9593_v41, %v4634_v24 }
0x17ec   :  { %v9186_v29 = vpop.f32.mrf.mxu0 }
0x17ed   :  { %v4668_v46 = vcombine.high %v4658_v42, %v4658_v42 }
0x17ee   :  { %v4639_v31 = vpop.f32.mrf.mxu0 }
0x17ef   :  { %v4659_v19 = vmul.f32 %v9592_v32, %v4639_v31  ;;  %v4893_v56 = vcombine.low %v4658_v42, %v4668_v46 }
0x17f0   :  { %v9189_v33 = vpop.f32.mrf.mxu0 }
0x17f1   :  { %v4669_v43 = vcombine.high %v4659_v19, %v4659_v19 }
0x17f2   :  { %v4742_v35 = vpop.f32.mrf.mxu1 }
0x17f3   :  { %v4644_v40 = vpop.f32.mrf.mxu0  ;;  %v4894_v51 = vcombine.low %v4659_v19, %v4669_v43  ;;  %v4766_v20 = vmul.f32 %v9593_v41, %v4742_v35 }
0x17f4   :  { %v4660_v44 = vmul.f32 %v9594_v45, %v4644_v40  ;;  %v9205_v50 = vpop.f32.mrf.mxu1 }
0x17f5   :  { %v9192_v53 = vpop.f32.mrf.mxu0  ;;  %v4776_v27 = vcombine.high %v4766_v20, %v4766_v20 }
0x17f6   :  { %9219 = vmatpush3.xpose.msk.msra.mxu0 %vm394_vm4, %v4660_v44  ;;  %v4747_v37 = vpop.f32.mrf.mxu1  ;;  %v4670_v18 = vcombine.high %v4660_v44, %v4660_v44 }
0x17f7   :  { %v4649_v59 = vpop.f32.mrf.mxu0  ;;  %9220 = vmatprep.subr.mxu0 %v9613_v0  ;;  %v4767_v8 = vmul.f32 %v9592_v32, %v4747_v37  ;;  %v5476_v24 = vcombine.low %v4766_v20, %v4776_v27 }
0x17f8   :  { %v9208_v52 = vpop.f32.mrf.mxu1  ;;  %v4661_v62 = vmul.f32 %v9595_v61, %v4649_v59 }
0x17f9   :  { %v9195_v57 = vpop.f32.mrf.mxu0  ;;  %v4777_v22 = vcombine.high %v4767_v8, %v4767_v8 }
0x17fa   :  { %9221 = vmatpush3.xpose.msk.msra.mxu0 %vm394_vm4, %v4894_v51  ;;  %v4752_v49 = vpop.f32.mrf.mxu1  ;;  %v4671_v13 = vcombine.high %v4661_v62, %v4661_v62  ;;  %v5012_v26 = vcombine.low %v4670_v18, %v4661_v62 }
0x17fb   :  { %v4654_v58 = vpop.f32.mrf.mxu0  ;;  %9222 = vmatprep.subr.mxu0 %v9613_v0  ;;  %v4768_v1 = vmul.f32 %v9594_v45, %v4752_v49  ;;  %v5477_v23 = vcombine.low %v4767_v8, %v4777_v22 }
0x17fc   :  { %v4662_v2 = vmul.f32 %v9596_v55, %v4654_v58  ;;  %v9211_v4 = vpop.f32.mrf.mxu1 }
0x17fd   :  { %v9198_v47 = vpop.f32.mrf.mxu0  ;;  %v4778_v5 = vcombine.high %v4768_v1, %v4768_v1 }
0x17fe   :  { %v4672_v6 = vcombine.high %v4662_v2, %v4662_v2  ;;  %9223 = vmatpush3.xpose.msk.msra.mxu0 %vm394_vm4, %v4893_v56  ;;  %v4757_v7 = vpop.f32.mrf.mxu1  ;;  %v5013_v16 = vcombine.low %v4671_v13, %v4662_v2 }
0x17ff   :  { %v4769_v10 = vmul.f32 %v9595_v61, %v4757_v7  ;;  %9236 = vmatprep.subr.msk.mxu0 %vm1419_vm9, %v9597_v11 }
0x1800   :  { %9228 = vmatpush3.xpose.msk.msra.mxu1 %vm394_vm4, %v4672_v6  ;;  %v9214_v14 = vpop.f32.mrf.mxu1 }
0x1801   :  { %9225 = vmatmul.mubr.msk.f32.vlgmr.msra.gmra.mxu0 %vm394_vm4, %v4892_v9  ;;  %9229 = vmatprep.subr.mxu1 %v9613_v0  ;;  %v10896_v15 = vcombine.low %v4778_v5, %v4769_v10  ;;  %v4779_v28 = vcombine.high %v4769_v10, %v4769_v10 }
0x1802   :  { %9237 = vmatpush3.msk.msra.mxu0 %vm1419_vm9, %v9597_v11  ;;  %v4762_v29 = vpop.f32.mrf.mxu1 }
0x1803   :  { %9238 = vmatprep.subr.mxu0 %v9598_v12  ;;  %v4770_v30 = vmul.f32 %v9596_v55, %v4762_v29 }
0x1804   :  { %9230 = vmatpush3.xpose.msk.msra.mxu1 %vm394_vm4, %v5013_v16  ;;  %9239 = vmatpush3.msra.mxu0 %v9598_v12  ;;  %v9217_v17 = vpop.f32.mrf.mxu1 }
0x1805   :  { %9231 = vmatprep.subr.mxu1 %v9613_v0  ;;  %9240 = vmatprep.subr.mxu0 %v9599_v25  ;;  %v5599_v31 = vcombine.low %v4779_v28, %v4770_v30  ;;  %v4780_v18 = vcombine.high %v4770_v30, %v4770_v30 }
0x1806   :  { %9241 = vmatpush3.msra.mxu0 %v9599_v25 }
0x1807   :  { %9254 = vmatprep.subr.mxu0 %v9613_v0 }
0x1808   :  { %9232 = vmatpush3.xpose.msk.msra.mxu1 %vm394_vm4, %v5012_v26 }
0x1809   :  { %9245 = vmatprep.subr.mxu1 %v9613_v0 }
0x180b   :  { %9234 = vmatmul.mubr.msk.f32.vlgmr.msra.gmra.mxu1 %vm394_vm4, %v10831_v21 }
0x180c   :  { %9246 = vmatpush3.msk.msra.mxu1 %vm1419_vm9, %v4768_v1  ;;  %9251 = vmatprep.mubr.msk.f32.mxu1 %vm9614_vm6, %v9613_v0 }
0x180d   :  { %9247 = vmatprep.subr.mxu1 %v9613_v0 }
0x180e   :  { %9248 = vmatpush3.msra.mxu1 %v5477_v23 }
0x180f   :  { %9249 = vmatprep.subr.mxu1 %v9613_v0 }
0x1810   :  { %9250 = vmatpush3.msra.mxu1 %v5476_v24 }
0x18c1   :  { %v4969_v32 = vpop.f32.mrf.mxu0 }
0x18c2   :  { %v5092_v21 = vsel %vm1247_vm10, %v4969_v32, -inf }
0x18c3   :  { %5093 = vmax.xlane.f32.xlu0 %v5092_v21  ;;  %v9226_v19 = vpop.f32.mrf.mxu0 }
0x18cb   :  { %v5088_v33 = vpop.f32.mrf.mxu1 }
0x18cc   :  { %v5095_v35 = vsel %vm1247_vm10, %v5088_v33, -inf }
0x18cd   :  { %5096 = vmax.xlane.f32.xlu1 %v5095_v35  ;;  %v9235_v38 = vpop.f32.mrf.mxu1 }
0x194c   :  { %v5094_v39 = vpop.xlane.xlu0 %5093 }
0x194d   :  { %v5098_v40 = vsub.f32 %v4969_v32, %v5094_v39 }
0x194f   :  { %v5100_v41 = vmul.f32 1.442695, %v5098_v40 }
0x1951   :  { %9540 = vpow2.f32 %v5100_v41 }
0x1956   :  { %v5097_v42 = vpop.xlane.xlu1 %5096 }
0x1957   :  { %v5099_v43 = vsub.f32 %v5088_v33, %v5097_v42 }
0x1959   :  { %v5102_v45 = vmul.f32 1.442695, %v5099_v43 }
0x195b   :  { %9542 = vpow2.f32 %v5102_v45 }
0x195e   :  { %v9541_v44 = vpop.eup %9540 }
0x195f   :  { %v5113_v50 = vrot.slane %v9541_v44, %v9951_v34  ;;  %v5106_v37 = vcombine.high %v9541_v44, %v9541_v44 }
0x1961   :  { %v5121_v53 = vcombine.high %v5113_v50, %v5113_v50  ;;  %v10924_v59 = vrot.slane %v5113_v50, %v9951_v34  ;;  %v5120_v46 = vrot.slane %v5106_v37, %v9951_v34 }
0x1963   :  { %v10921_v54 = vrot.slane %v5121_v53, %v9951_v34  ;;  %v5135_v56 = vrot.slane %v5120_v46, %v9951_v34  ;;  %v5143_v17 = vcombine.high %v10924_v59, %v10924_v59 }
0x1965   :  { %v5194_v52 = vcombine.low %v10924_v59, %v10921_v54  ;;  %v8306_v49 = vcombine.high %v10924_v59, %v10921_v54  ;;  %v5144_v19 = vcombine.high %v10921_v54, %v10921_v54 }
0x1967   :  { %v5204_v61 = vrot.slane %v5194_v52, %v9951_v34  ;;  %v5211_v4 = vrot.slane %v8306_v49, %v9951_v34 }
0x1968   :  { %v9543_v51 = vpop.eup %9542 }
0x1969   :  { %v5145_v48 = vcombine.high %v9543_v51, %v9543_v51  ;;  %v5152_v57 = vrot.slane %v9543_v51, %v9951_v34  ;;  %v5226_v9 = vcombine.low %v5204_v61, %v5211_v4 }
0x196b   :  { %v5159_v3 = vrot.slane %v5145_v48, %v9951_v34  ;;  %v5160_v58 = vcombine.high %v5152_v57, %v5152_v57  ;;  %v5167_v1 = vrot.slane %v5152_v57, %v9951_v34  ;;  %v5234_v14 = vrot.slane %v5226_v9, %v9951_v34  ;;  %v8317_v9 = vld [vmem:[%s11567_s19 + $0x58] sm:$0xff] }
0x196c   :  { %9263 = vmatprep.subr.mxu1 %v8317_v9 }
0x196d   :  { %v5181_v62 = vrot.slane %v5160_v58, %v9951_v34  ;;  %v5182_v55 = vcombine.high %v5167_v1, %v5167_v1  ;;  %v5196_v2 = vcombine.low %v5135_v56, %v5167_v1  ;;  %v5174_v47 = vrot.slane %v5159_v3, %v9951_v34 }
0x196f   :  { %v5197_v60 = vcombine.low %v5181_v62, %v5182_v55  ;;  %v5183_v5 = vcombine.high %v5181_v62, %v5181_v62  ;;  %v5218_v6 = vrot.slane %v5196_v2, %v9951_v34 }
0x1971   :  { %v5225_v7 = vrot.slane %v5197_v60, %v9951_v34  ;;  %v5243_v10 = vcombine.low %v5183_v5, %v5174_v47 }
0x1973   :  { %v5227_v11 = vcombine.low %v5218_v6, %v5225_v7  ;;  %v5250_v13 = vrot.slane %v5243_v10, %v9951_v34  ;;  %v8316_v10 = vld [vmem:[%s11567_s19 + $0x50] sm:$0xff] }
0x1975   :  { %v5241_v16 = vrot.slane %v5227_v11, %v9951_v34  ;;  %v5257_v12 = vrot.slane %v5250_v13, %v9951_v34  ;;  %v8315_v11 = vld [vmem:[%s11567_s19 + $0x48] sm:$0xff]  ;;  %v8314_v13 = vld [vmem:[%s11567_s19 + $0x40] sm:$0xff] }
0x1977   :  { %v5242_v8 = vcombine.low %v5234_v14, %v5241_v16 }
0x1979   :  { %9242 = vmatprep.mubr.msk.f32.mxu0 %vm1414_vm11, %v5242_v8 }
0x197a   :  { %9243 = vmatmul.mubr.msk.f32.vlgmr.msra.gmra.mxu0 %vm1414_vm11, %v5257_v12 }
0x197b   :  { %9255 = vmatpush3.msk.msra.mxu0 %vm1419_vm9, %v4780_v18  ;;  %9260 = vmatprep.mubr.msk.f32.mxu0 %vm9614_vm6, %v9613_v0 }
0x197c   :  { %9256 = vmatprep.subr.mxu0 %v9613_v0 }
0x197d   :  { %9257 = vmatpush3.msra.mxu0 %v5599_v31 }
0x197e   :  { %9258 = vmatprep.subr.mxu0 %v9613_v0 }
0x197f   :  { %9259 = vmatpush3.msra.mxu0 %v10896_v15 }
0x1a3a   :  { %v9244_v20 = vpop.f32.mrf.mxu0 }
0x1a3b   :  { %9544 = vrcp.f32 %v9244_v20 }
0x1a3c   :  { %v5328_v25 = vpop.f32.mrf.mxu0 }
0x1a3d   :  { %9546 = vrcp.f32 %v5328_v25 }
0x1a48   :  { %v9545_v26 = vpop.eup %9544 }
0x1a49   :  { %v5396_v22 = vrot.slane %v9545_v26, %v9951_v34 }
0x1a4a   :  { %v9547_v27 = vpop.eup %9546 }
0x1a4b   :  { %v5341_v23 = vcombine.high %v9547_v27, %v9547_v27  ;;  %v5348_v24 = vrot.slane %v9547_v27, %v9951_v34  ;;  %v5397_v28 = vcombine.high %v5396_v22, %v5396_v22  ;;  %v5404_v33 = vrot.slane %v5396_v22, %v9951_v34 }
0x1a4d   :  { %v5355_v29 = vrot.slane %v5341_v23, %v9951_v34  ;;  %v5356_v30 = vcombine.high %v5348_v24, %v5348_v24  ;;  %v5364_v15 = vrot.slane %v5348_v24, %v9951_v34  ;;  %v5411_v35 = vrot.slane %v5397_v28, %v9951_v34 }
0x1a4e   :  { %v5430_v52 = vmul.f32 %v5404_v33, %v5183_v5 }
0x1a4f   :  { %v5357_v31 = vcombine.high %v5355_v29, %v5355_v29  ;;  %v5371_v32 = vrot.slane %v5355_v29, %v9951_v34  ;;  %v5378_v21 = vrot.slane %v5356_v30, %v9951_v34  ;;  %v5386_v38 = vcombine.high %v5364_v15, %v5364_v15 }
0x1a50   :  { %v5422_v39 = vmul.f32 %v5364_v15, %v10924_v59  ;;  %v5431_v49 = vmul.f32 %v5411_v35, %v5174_v47 }
0x1a51   :  { %v5385_v40 = vrot.slane %v5357_v31, %v9951_v34  ;;  %v5387_v41 = vcombine.high %v5371_v32, %v5371_v32  ;;  %v5388_v42 = vcombine.high %v5378_v21, %v5378_v21  ;;  %v5423_v43 = vmul.f32 %v5378_v21, %v10921_v54 }
0x1a52   :  { %v5424_v45 = vmul.f32 %v5386_v38, %v5143_v17  ;;  %v5426_v44 = vmul.f32 %v5371_v32, %v5135_v56 }
0x1a53   :  { %v5389_v50 = vcombine.high %v5385_v40, %v5385_v40  ;;  %v5425_v53 = vmul.f32 %v5388_v42, %v5144_v19  ;;  %v5437_v37 = vcombine.low %v5422_v39, %v5423_v43  ;;  %v5427_v46 = vmul.f32 %v5385_v40, %v5167_v1 }
0x1a54   :  { %v5428_v51 = vmul.f32 %v5387_v41, %v5181_v62  ;;  %v5459_v61 = vrot.slane %v5426_v44, %v9951_v34  ;;  %v5581_v1 = vrot.slane %v5431_v49, %v9951_v34 }
0x1a55   :  { %v5438_v48 = vcombine.low %v5424_v45, %v5425_v53  ;;  %v5429_v57 = vmul.f32 %v5389_v50, %v5182_v55  ;;  %v5445_v59 = vrot.slane %v5437_v37, %v9951_v34 }
0x1a56   :  { %v5559_v3 = vcombine.low %v5427_v46, %v5428_v51  ;;  %v5474_v55 = vrot.slane %v5459_v61, %v9951_v34  ;;  %v5596_v6 = vrot.slane %v5581_v1, %v9951_v34 }
0x1a57   :  { %v5452_v58 = vrot.slane %v5438_v48, %v9951_v34  ;;  %v5560_v2 = vcombine.low %v5429_v57, %v5430_v52  ;;  %v8322_v48 = vld [vmem:[%s11568_s20 + $0x2] ss:$0 sm:$0xff] }
0x1a58   :  { %v5567_v56 = vrot.slane %v5559_v3, %v9951_v34 }
0x1a59   :  { %v5460_v54 = vcombine.low %v5445_v59, %v5452_v58  ;;  %v5574_v4 = vrot.slane %v5560_v2, %v9951_v34 }
0x1a5b   :  { %v5467_v62 = vrot.slane %v5460_v54, %v9951_v34  ;;  %v5582_v60 = vcombine.low %v5567_v56, %v5574_v4 }
0x1a5d   :  { %v5475_v47 = vcombine.low %v5467_v62, %v5474_v55  ;;  %v5589_v5 = vrot.slane %v5582_v60, %v9951_v34 }
0x1a5f   :  { %9252 = vmatmul.mubr.msk.f32.vlgmr.msra.gmra.mxu1 %vm1414_vm11, %v5475_v47  ;;  %v5597_v7 = vcombine.low %v5589_v5, %v5596_v6  ;;  %v8330_v5 = vld [vmem:[%s11569_s23 + $0x58] sm:$0xff]  ;;  %v8329_v6 = vld [vmem:[%s11569_s23 + $0x50] sm:$0xff] }
0x1a60   :  { %9264 = vmatpush3.msra.mxu1 %v8317_v9  ;;  %9274 = vmatprep.subr.mxu0 %v8330_v5  ;;  %v8327_v9 = vld [vmem:[%s11569_s23 + $0x40] sm:$0xff] }
0x1a61   :  { %9261 = vmatmul.mubr.msk.f32.vlgmr.msra.gmra.mxu0 %vm1414_vm11, %v5597_v7  ;;  %9265 = vmatprep.subr.mxu1 %v8316_v10  ;;  %v8328_v7 = vld [vmem:[%s11569_s23 + $0x48] sm:$0xff] }
0x1a62   :  { %9266 = vmatpush3.msra.mxu1 %v8316_v10  ;;  %9275 = vmatpush3.msra.mxu0 %v8330_v5  ;;  %v8350_v10 = vld [vmem:[%s11570_s25 + $0x178] sm:$0xff] }
0x1a63   :  { %9267 = vmatprep.subr.mxu1 %v8315_v11  ;;  %9276 = vmatprep.subr.mxu0 %v8329_v6 }
0x1a64   :  { %9268 = vmatpush3.msra.mxu1 %v8315_v11  ;;  %9277 = vmatpush3.msra.mxu0 %v8329_v6  ;;  %v8349_v11 = vld [vmem:[%s11570_s25 + $0x170] sm:$0xff] }
0x1a65   :  { %9269 = vmatprep.subr.mxu1 %v8314_v13  ;;  %9278 = vmatprep.subr.mxu0 %v8328_v7 }
0x1a66   :  { %9270 = vmatpush3.msra.mxu1 %v8314_v13  ;;  %9279 = vmatpush3.msra.mxu0 %v8328_v7  ;;  %v8348_v13 = vld [vmem:[%s11570_s25 + $0x168] sm:$0xff] }
0x1a67   :  { %9280 = vmatprep.subr.mxu0 %v8327_v9  ;;  %9285 = vmatprep.subr.mxu1 %v8350_v10 }
0x1a68   :  { %9281 = vmatpush3.msra.mxu0 %v8327_v9 }
0x1b1f   :  { %v5550_v14 = vpop.f32.mrf.mxu1 }
0x1b20   :  { %v5678_v16 = vcombine.high %v5550_v14, %v5550_v14  ;;  %v5685_v8 = vrot.slane %v5550_v14, %v9951_v34 }
0x1b21   :  { %v9253_v12 = vpop.f32.mrf.mxu1  ;;  %v5672_v18 = vpop.f32.mrf.mxu0 }
0x1b22   :  { %v5692_v20 = vrot.slane %v5678_v16, %v9951_v34  ;;  %v5693_v25 = vcombine.high %v5685_v8, %v5685_v8  ;;  %v5717_v26 = vcombine.high %v5672_v18, %v5672_v18  ;;  %v5724_v22 = vrot.slane %v5672_v18, %v9951_v34 }
0x1b23   :  { %v9262_v27 = vpop.f32.mrf.mxu0  ;;  %v5700_v23 = vrot.slane %v5685_v8, %v9951_v34 }
0x1b24   :  { %v5707_v24 = vrot.slane %v5692_v20, %v9951_v34  ;;  %v5714_v28 = vrot.slane %v5693_v25, %v9951_v34  ;;  %v5731_v29 = vrot.slane %v5717_v26, %v9951_v34  ;;  %v5732_v30 = vcombine.high %v5724_v22, %v5724_v22  ;;  %v8325_v26 = vld [vmem:[%s11571_s21 + $0x2] ss:$0 sm:$0xff] }
0x1b25   :  { %v5739_v17 = vrot.slane %v5724_v22, %v9951_v34 }
0x1b26   :  { %v5761_v15 = vcombine.low %v5700_v23, %v5714_v28  ;;  %v8318_v31 = vcombine.high %v5700_v23, %v5714_v28  ;;  %v5753_v32 = vrot.slane %v5732_v30, %v9951_v34  ;;  %v5746_v38 = vrot.slane %v5731_v29, %v9951_v34  ;;  %v8326_v28 = vld [vmem:[%s11572_s22 + $0x2] ss:$0 sm:$0xff] }
0x1b27   :  { %v5754_v21 = vcombine.high %v5739_v17, %v5739_v17  ;;  %v5763_v19 = vcombine.low %v5707_v24, %v5739_v17 }
0x1b28   :  { %v5771_v33 = vrot.slane %v5761_v15, %v9951_v34  ;;  %v5778_v35 = vrot.slane %v8318_v31, %v9951_v34  ;;  %v5755_v39 = vcombine.high %v5753_v32, %v5753_v32  ;;  %v8347_v15 = vld [vmem:[%s11570_s25 + $0x160] sm:$0xff]  ;;  %v8346_v31 = vld [vmem:[%s11570_s25 + $0x158] sm:$0xff] }
0x1b29   :  { %v5764_v40 = vcombine.low %v5753_v32, %v5754_v21  ;;  %v5785_v42 = vrot.slane %v5763_v19, %v9951_v34  ;;  %v8345_v32 = vld [vmem:[%s11570_s25 + $0x150] sm:$0xff]  ;;  %v8344_v21 = vld [vmem:[%s11570_s25 + $0x148] sm:$0xff]  ;;  %v8343_v19 = vld [vmem:[%s11570_s25 + $0x140] sm:$0xff] }
0x1b2a   :  { %v5793_v41 = vcombine.low %v5771_v33, %v5778_v35  ;;  %v5810_v45 = vcombine.low %v5755_v39, %v5746_v38  ;;  %v8342_v33 = vld [vmem:[%s11570_s25 + $0x138] sm:$0xff]  ;;  %v8341_v35 = vld [vmem:[%s11570_s25 + $0x130] sm:$0xff]  ;;  %v8340_v38 = vld [vmem:[%s11570_s25 + $0x128] sm:$0xff] }
0x1b2b   :  { %v5792_v43 = vrot.slane %v5764_v40, %v9951_v34  ;;  %v8339_v39 = vld [vmem:[%s11570_s25 + $0x120] sm:$0xff]  ;;  %v8338_v40 = vld [vmem:[%s11570_s25 + $0x118] sm:$0xff] }
0x1b2c   :  { %v5817_v50 = vrot.slane %v5810_v45, %v9951_v34  ;;  %v5801_v53 = vrot.slane %v5793_v41, %v9951_v34  ;;  %v8337_v41 = vld [vmem:[%s11570_s25 + $0x110] sm:$0xff]  ;;  %v8332_v45 = vld [vmem:[%s11573_s24 + $0x2] ss:$0 sm:$0xff] }
0x1b2d   :  { %v5794_v44 = vcombine.low %v5785_v42, %v5792_v43  ;;  %v8336_v42 = vld [vmem:[%s11570_s25 + $0x108] sm:$0xff]  ;;  %v8335_v43 = vld [vmem:[%s11570_s25 + $0x100] sm:$0xff] }
0x1b2e   :  { %v5824_v51 = vrot.slane %v5817_v50, %v9951_v34 }
0x1b2f   :  { %v5808_v37 = vrot.slane %v5794_v44, %v9951_v34 }
0x1b31   :  { %v5809_v46 = vcombine.low %v5801_v53, %v5808_v37 }
0x1b33   :  { %9271 = vmatprep.mubr.msk.f32.mxu1 %vm394_vm4, %v5809_v46 }
0x1b34   :  { %9272 = vmatmul.mubr.msk.f32.vlgmr.msra.gmra.mxu1 %vm394_vm4, %v5824_v51 }
0x1b35   :  { %9286 = vmatpush3.msra.mxu1 %v8350_v10 }
0x1b36   :  { %9287 = vmatprep.subr.mxu1 %v8349_v11 }
0x1b37   :  { %9288 = vmatpush3.msra.mxu1 %v8349_v11 }
0x1b38   :  { %9289 = vmatprep.subr.mxu1 %v8348_v13 }
0x1b39   :  { %9290 = vmatpush3.msra.mxu1 %v8348_v13 }
0x1b3a   :  { %9291 = vmatprep.subr.mxu1 %v8347_v15 }
0x1b3b   :  { %9292 = vmatpush3.msra.mxu1 %v8347_v15 }
0x1b3c   :  { %9293 = vmatprep.subr.mxu1 %v8346_v31 }
0x1b3d   :  { %9294 = vmatpush3.msra.mxu1 %v8346_v31 }
0x1b3e   :  { %9295 = vmatprep.subr.mxu1 %v8345_v32 }
0x1b3f   :  { %9296 = vmatpush3.msra.mxu1 %v8345_v32  ;;  %v8358_v32 = vld [vmem:[%s11608_s3 + $0x3] ss:$0 sm:$0xff] }
0x1b40   :  { %9297 = vmatprep.subr.mxu1 %v8344_v21 }
0x1b41   :  { %9298 = vmatpush3.msra.mxu1 %v8344_v21 }
0x1b42   :  { %9299 = vmatprep.subr.mxu1 %v8343_v19 }
0x1b43   :  { %9300 = vmatpush3.msra.mxu1 %v8343_v19 }
0x1b44   :  { %9301 = vmatprep.subr.mxu1 %v8342_v33 }
0x1b45   :  { %9302 = vmatpush3.msra.mxu1 %v8342_v33 }
0x1b46   :  { %9303 = vmatprep.subr.mxu1 %v8341_v35 }
0x1b47   :  { %9304 = vmatpush3.msra.mxu1 %v8341_v35  ;;  %v8369_v35 = vld [vmem:[%s11606_s28 + $0x70] sm:$0xff] }
0x1b48   :  { %9305 = vmatprep.subr.mxu1 %v8340_v38 }
0x1b49   :  { %9306 = vmatpush3.msra.mxu1 %v8340_v38  ;;  %v8368_v38 = vld [vmem:[%s11606_s28 + $0x68] sm:$0xff] }
0x1b4a   :  { %9307 = vmatprep.subr.mxu1 %v8339_v39 }
0x1b4b   :  { %9308 = vmatpush3.msra.mxu1 %v8339_v39  ;;  %v8367_v39 = vld [vmem:[%s11606_s28 + $0x60] sm:$0xff] }
0x1b4c   :  { %9309 = vmatprep.subr.mxu1 %v8338_v40 }
0x1b4d   :  { %9310 = vmatpush3.msra.mxu1 %v8338_v40  ;;  %v8378_v40 = vld [vmem:[%s11560_s17 + $0x78] sm:$0xff] }
0x1b4e   :  { %9311 = vmatprep.subr.mxu1 %v8337_v41 }
0x1b4f   :  { %9312 = vmatpush3.msra.mxu1 %v8337_v41  ;;  %v8377_v41 = vld [vmem:[%s11560_s17 + $0x70] sm:$0xff] }
0x1b50   :  { %9313 = vmatprep.subr.mxu1 %v8336_v42 }
0x1b51   :  { %9314 = vmatpush3.msra.mxu1 %v8336_v42  ;;  %v8376_v42 = vld [vmem:[%s11560_s17 + $0x68] sm:$0xff] }
0x1b52   :  { %9315 = vmatprep.subr.mxu1 %v8335_v43 }
0x1b53   :  { %9316 = vmatpush3.msra.mxu1 %v8335_v43  ;;  %v8375_v43 = vld [vmem:[%s11560_s17 + $0x60] sm:$0xff] }
0x1b54   :  { %9372 = vmatprep.subr.mxu1 %v9613_v0 }
0x1bf4   :  { %v9273_v52 = vpop.f32.mrf.mxu1 }
0x1bf5   :  { %v5905_v57 = vadd.f32 %v9273_v52, %v10704_v36 }
0x1bf6   :  { %v5895_v49 = vpop.f32.mrf.mxu1 }
0x1bf7   :  { %v11016_v3 = vadd.f32 %v8322_v48, %v5905_v57  ;;  %v5904_v59 = vadd.f32 %v5895_v49, %v10712_v63 }
0x1bf9   :  { %v11019_v58 = vadd.f32 %v8322_v48, %v5904_v59  ;;  %v5923_v61 = vsel %vm398_vm5, %v11016_v3, 0.0 }
0x1bfa   :  { %5924 = vadd.xlane.f32.xlu1 %v5923_v61 }
0x1bfb   :  { %v5920_v2 = vsel %vm394_vm4, %v11019_v58, 0.0 }
0x1bfc   :  { %5921 = vadd.xlane.f32.xlu0 %v5920_v2 }
0x1c83   :  { %v5925_v54 = vpop.xlane.xlu1 %5924 }
0x1c84   :  { %v5927_v56 = vmul.f32 0.03125, %v5925_v54 }
0x1c85   :  { %v5922_v4 = vpop.xlane.xlu0 %5921 }
0x1c86   :  { %v5929_v36 = vsub.f32 %v11016_v3, %v5927_v56  ;;  %v5926_v1 = vmul.f32 0.03125, %v5922_v4  ;;  %v8352_v4 = vld [vmem:[%s11574_s26 + $0x2] ss:$0 sm:$0xff] }
0x1c88   :  { %v5928_v62 = vsub.f32 %v11019_v58, %v5926_v1  ;;  %v5931_v55 = vmul.f32 %v5929_v36, %v5929_v36 }
0x1c8a   :  { %v5935_v63 = vsel %vm398_vm5, %v5931_v55, 0.0  ;;  %v5930_v60 = vmul.f32 %v5928_v62, %v5928_v62 }
0x1c8b   :  { %5936 = vadd.xlane.f32.xlu1 %v5935_v63 }
0x1c8c   :  { %v5932_v47 = vsel %vm394_vm4, %v5930_v60, 0.0 }
0x1c8d   :  { %5933 = vadd.xlane.f32.xlu0 %v5932_v47 }
0x1d14   :  { %v5937_v14 = vpop.xlane.xlu1 %5936 }
0x1d15   :  { %v5939_v16 = vmul.f32 0.03125, %v5937_v14 }
0x1d16   :  { %v5934_v8 = vpop.xlane.xlu0 %5933 }
0x1d17   :  { %v5941_v12 = vadd.f32 1e-06, %v5939_v16  ;;  %v5938_v18 = vmul.f32 0.03125, %v5934_v8  ;;  %v8362_v16 = vld [vmem:[%s11605_s2 + $0x78] sm:$0xff]  ;;  %v8361_v8 = vld [vmem:[%s11605_s2 + $0x70] sm:$0xff] }
0x1d18   :  { %9320 = vmatprep.subr.mxu0 %v8362_v16 }
0x1d19   :  { %9548 = vrsqrt.f32 %v5941_v12  ;;  %v5940_v20 = vadd.f32 1e-06, %v5938_v18  ;;  %v8360_v12 = vld [vmem:[%s11605_s2 + $0x68] sm:$0xff]  ;;  %v8359_v18 = vld [vmem:[%s11605_s2 + $0x60] sm:$0xff] }
0x1d1b   :  { %9550 = vrsqrt.f32 %v5940_v20  ;;  %v8370_v20 = vld [vmem:[%s11606_s28 + $0x78] sm:$0xff] }
0x1d26   :  { %v9549_v25 = vpop.eup %9548 }
0x1d27   :  { %v5945_v22 = vmul.f32 %v9549_v25, %v5929_v36 }
0x1d28   :  { %v9551_v27 = vpop.eup %9550 }
0x1d29   :  { %v5944_v23 = vmul.f32 %v9551_v27, %v5928_v62  ;;  %v5953_v24 = vmul.f32 %v8325_v26, %v5945_v22 }
0x1d2b   :  { %v5952_v29 = vmul.f32 %v8325_v26, %v5944_v23  ;;  %v5961_v17 = vadd.f32 %v8326_v28, %v5953_v24 }
0x1d2d   :  { %v5960_v30 = vadd.f32 %v8326_v28, %v5952_v29  ;;  %v8357_v29 = vld [vmem:[%s11607_s9 + $0x3] ss:$0 sm:$0xff] }
0x1d2f   :  { %9282 = vmatprep.mubr.msk.f32.mxu0 %vm394_vm4, %v5960_v30 }
0x1d30   :  { %9283 = vmatmul.mubr.msk.f32.vlgmr.msra.gmra.mxu0 %vm394_vm4, %v5961_v17 }
0x1d31   :  { %9321 = vmatpush3.msra.mxu0 %v8362_v16 }
0x1d32   :  { %9322 = vmatprep.subr.mxu0 %v8361_v8 }
0x1d33   :  { %9323 = vmatpush3.msra.mxu0 %v8361_v8  ;;  %v9601_v8 = vld [vmem:[%s11563_s4 + $0x8] sm:$0xff] }
0x1d34   :  { %9324 = vmatprep.subr.mxu0 %v8360_v12 }
0x1d35   :  { %9325 = vmatpush3.msra.mxu0 %v8360_v12 }
0x1d36   :  { %9326 = vmatprep.subr.mxu0 %v8359_v18 }
0x1d37   :  { %9327 = vmatpush3.msra.mxu0 %v8359_v18 }
0x1d38   :  { %9331 = vmatprep.subr.mxu0 %v8370_v20 }
0x1df0   :  { %v9284_v44 = vpop.f32.mrf.mxu0 }
0x1df1   :  { %v6053_v50 = vadd.f32 %v9284_v44, %v8332_v45 }
0x1df2   :  { %v6047_v53 = vpop.f32.mrf.mxu0 }
0x1df3   :  { %v6059_v37 = vmul.f32 0.70710677, %v6053_v50  ;;  %v6048_v46 = vadd.f32 %v8332_v45, %v6047_v53  ;;  %v6057_v61 = vmul.f32 0.5, %v6053_v50  ;;  %v8364_v45 = vld [vmem:[%s11561_s14 + $0x3] ss:$0 sm:$0xff] }
0x1df5   :  { %9552 = verf.f32 %v6059_v37  ;;  %v6058_v51 = vmul.f32 0.70710677, %v6048_v46  ;;  %v6056_v49 = vmul.f32 0.5, %v6048_v46 }
0x1df7   :  { %9554 = verf.f32 %v6058_v51 }
0x1e02   :  { %v9553_v52 = vpop.eup %9552 }
0x1e03   :  { %v6063_v57 = vadd.f32 1.0, %v9553_v52 }
0x1e04   :  { %v9555_v48 = vpop.eup %9554 }
0x1e05   :  { %v6062_v59 = vadd.f32 1.0, %v9555_v48  ;;  %v6065_v54 = vmul.f32 %v6063_v57, %v6057_v61  ;;  %v8372_v48 = vld [vmem:[%s11562_s16 + $0x3] ss:$0 sm:$0xff] }
0x1e07   :  { %v6064_v2 = vmul.f32 %v6062_v59, %v6056_v49 }
0x1e09   :  { %9317 = vmatprep.mubr.f32.mxu1 %v6064_v2 }
0x1e0a   :  { %9318 = vmatmul.mubr.f32.vlgmr.msra.gmra.mxu1 %v6065_v54 }
0x1e0b   :  { %9376 = vmatprep.mubr.msk.f32.mxu1 %vm9614_vm6, %v9613_v0 }
0x1eca   :  { %v9319_v56 = vpop.f32.mrf.mxu1 }
0x1ecb   :  { %v6159_v36 = vadd.f32 %v9319_v56, %v11016_v3 }
0x1ecc   :  { %v6149_v1 = vpop.f32.mrf.mxu1 }
0x1ecd   :  { %v11107_v62 = vadd.f32 %v8352_v4, %v6159_v36  ;;  %v6158_v55 = vadd.f32 %v6149_v1, %v11019_v58 }
0x1ecf   :  { %8354 = vst.msk [vmem:[%s11575_s27 + $0x28] sm:$0x3] %vm398_vm5, %v11107_v62  ;;  %v11115_v63 = vadd.f32 %v8352_v4, %v6158_v55  ;;  %v6180_v60 = vsel %vm398_vm5, %v11107_v62, 0.0 }
0x1ed0   :  { %6181 = vadd.xlane.f32.xlu1 %v6180_v60 }
0x1ed1   :  { %8353 = vst.msk [vmem:[%s11575_s27 + $0x20] sm:$0xff] %vm394_vm4, %v11115_v63  ;;  %v6177_v3 = vsel %vm394_vm4, %v11115_v63, 0.0 }
0x1ed2   :  { %6178 = vadd.xlane.f32.xlu0 %v6177_v3 }
0x1f59   :  { %v6182_v58 = vpop.xlane.xlu1 %6181 }
0x1f5a   :  { %v6184_v47 = vmul.f32 0.03125, %v6182_v58  ;;  %v8380_v58 = vld [vmem:[%s11564_s18 + $0x3] ss:$0 sm:$0xff] }
0x1f5b   :  { %v6179_v5 = vpop.xlane.xlu0 %6178 }
0x1f5c   :  { %v6186_v6 = vsub.f32 %v11107_v62, %v6184_v47  ;;  %v6183_v7 = vmul.f32 0.03125, %v6179_v5  ;;  %v9600_v5 = vld [vmem:[%s11563_s4] sm:$0xff] }
0x1f5e   :  { %v6185_v9 = vsub.f32 %v11115_v63, %v6183_v7  ;;  %v6188_v10 = vmul.f32 %v6186_v6, %v6186_v6 }
0x1f60   :  { %v6192_v11 = vsel %vm398_vm5, %v6188_v10, 0.0  ;;  %v6187_v13 = vmul.f32 %v6185_v9, %v6185_v9 }
0x1f61   :  { %6193 = vadd.xlane.f32.xlu1 %v6192_v11 }
0x1f62   :  { %v6189_v14 = vsel %vm394_vm4, %v6187_v13, 0.0 }
0x1f63   :  { %6190 = vadd.xlane.f32.xlu0 %v6189_v14 }
0x1fea   :  { %v6194_v25 = vpop.xlane.xlu1 %6193 }
0x1feb   :  { %v6196_v26 = vmul.f32 0.03125, %v6194_v25 }
0x1fec   :  { %v6191_v22 = vpop.xlane.xlu0 %6190 }
0x1fed   :  { %v6198_v27 = vadd.f32 1e-06, %v6196_v26  ;;  %v6195_v23 = vmul.f32 0.03125, %v6191_v22  ;;  %v9603_v26 = vld [vmem:[%s11563_s4 + $0x18] sm:$0xff]  ;;  %v9604_v22 = vld [vmem:[%s11563_s4 + $0x20] sm:$0xff] }
0x1fef   :  { %9556 = vrsqrt.f32 %v6198_v27  ;;  %v6197_v24 = vadd.f32 1e-06, %v6195_v23 }
0x1ff1   :  { %9558 = vrsqrt.f32 %v6197_v24 }
0x1ffc   :  { %v9557_v28 = vpop.eup %9556 }
0x1ffd   :  { %v6202_v30 = vmul.f32 %v9557_v28, %v6186_v6 }
0x1ffe   :  { %v9559_v17 = vpop.eup %9558 }
0x1fff   :  { %v6201_v15 = vmul.f32 %v9559_v17, %v6185_v9  ;;  %v6210_v31 = vmul.f32 %v8357_v29, %v6202_v30 }
0x2001   :  { %v6209_v21 = vmul.f32 %v8357_v29, %v6201_v15  ;;  %v6218_v33 = vadd.f32 %v8358_v32, %v6210_v31 }
0x2003   :  { %v6217_v19 = vadd.f32 %v8358_v32, %v6209_v21  ;;  %v11269_v32 = vld [vmem:[%s11565_s5 + $0x8] sm:$0xff] }
0x2005   :  { %9328 = vmatprep.mubr.msk.f32.mxu0 %vm394_vm4, %v6217_v19 }
0x2006   :  { %9329 = vmatmul.mubr.msk.f32.vlgmr.msra.gmra.mxu0 %vm394_vm4, %v6218_v33 }
0x2007   :  { %9332 = vmatpush3.msra.mxu0 %v8370_v20  ;;  %9339 = vmatprep.mubr.msk.f32.mxu0 %vm394_vm4, %v6217_v19  ;;  %v9602_v20 = vld [vmem:[%s11563_s4 + $0x10] sm:$0xff] }
0x2008   :  { %9333 = vmatprep.subr.mxu0 %v8369_v35 }
0x2009   :  { %9334 = vmatpush3.msra.mxu0 %v8369_v35 }
0x200a   :  { %9335 = vmatprep.subr.mxu0 %v8368_v38 }
0x200b   :  { %9336 = vmatpush3.msra.mxu0 %v8368_v38 }
0x200c   :  { %9337 = vmatprep.subr.mxu0 %v8367_v39 }
0x200d   :  { %9338 = vmatpush3.msra.mxu0 %v8367_v39 }
0x200e   :  { %9340 = vmatmul.mubr.msk.f32.vlgmr.msra.gmra.mxu0 %vm394_vm4, %v6218_v33  ;;  %9342 = vmatprep.subr.mxu0 %v8378_v40 }
0x200f   :  { %9343 = vmatpush3.msra.mxu0 %v8378_v40  ;;  %9350 = vmatprep.mubr.msk.f32.mxu0 %vm394_vm4, %v6217_v19  ;;  %v11279_v40 = vld [vmem:[%s11565_s5] sm:$0xff] }
0x2010   :  { %9344 = vmatprep.subr.mxu0 %v8377_v41 }
0x2011   :  { %9345 = vmatpush3.msra.mxu0 %v8377_v41 }
0x2012   :  { %9346 = vmatprep.subr.mxu0 %v8376_v42 }
0x2013   :  { %9347 = vmatpush3.msra.mxu0 %v8376_v42 }
0x2014   :  { %9348 = vmatprep.subr.mxu0 %v8375_v43 }
0x2015   :  { %9349 = vmatpush3.msra.mxu0 %v8375_v43  ;;  %v9607_v43 = vld [vmem:[%s11565_s5 + $0x10] sm:$0xff] }
0x2016   :  { %9351 = vmatmul.mubr.msk.f32.vlgmr.msra.gmra.mxu0 %vm394_vm4, %v6218_v33  ;;  %9353 = vmatprep.subr.mxu0 %v9613_v0 }
0x2017   :  { %9357 = vmatprep.mubr.msk.f32.mxu0 %vm9614_vm6, %v9613_v0 }
0x20c6   :  { %v9330_v44 = vpop.f32.mrf.mxu0 }
0x20c7   :  { %v6310_v50 = vadd.f32 %v9330_v44, %v8364_v45 }
0x20c8   :  { %v6304_v53 = vpop.f32.mrf.mxu0 }
0x20c9   :  { %v11184_v37 = vadd.f32 %v8364_v45, %v6304_v53  ;;  %v6762_v46 = vrot.slane %v6310_v50, %v9951_v34 }
0x20cb   :  { %v6707_v51 = vcombine.high %v11184_v37, %v11184_v37  ;;  %v6763_v49 = vcombine.high %v6762_v46, %v6762_v46  ;;  %v6770_v1 = vrot.slane %v6762_v46, %v9951_v34  ;;  %v6714_v27 = vrot.slane %v11184_v37, %v9951_v34 }
0x20cd   :  { %v6721_v52 = vrot.slane %v6707_v51, %v9951_v34  ;;  %v6777_v55 = vrot.slane %v6763_v49, %v9951_v34  ;;  %v6722_v23 = vcombine.high %v6714_v27, %v6714_v27  ;;  %v6730_v29 = vrot.slane %v6714_v27, %v9951_v34 }
0x20ce   :  { %v9341_v57 = vpop.f32.mrf.mxu0 }
0x20cf   :  { %v6723_v59 = vcombine.high %v6721_v52, %v6721_v52  ;;  %v11194_v61 = vrot.slane %v6721_v52, %v9951_v34  ;;  %v6398_v2 = vadd.f32 %v9341_v57, %v8372_v48  ;;  %v6919_v7 = vrot.slane %v6777_v55, %v9951_v34 }
0x20d0   :  { %v6392_v54 = vpop.f32.mrf.mxu0  ;;  %v6744_v24 = vrot.slane %v6722_v23, %v9951_v34 }
0x20d1   :  { %v6751_v56 = vrot.slane %v6723_v59, %v9951_v34  ;;  %v6753_v4 = vcombine.high %v11194_v61, %v11194_v61  ;;  %v6393_v36 = vadd.f32 %v8372_v48, %v6392_v54  ;;  %9354 = vmatpush3.msk.msra.mxu0 %vm719_vm7, %v6398_v2  ;;  %v6934_v12 = vrot.slane %v6919_v7, %v9951_v34 }
0x20d2   :  { %9355 = vmatprep.subr.mxu0 %v9613_v0  ;;  %v6778_v17 = vcombine.low %v6730_v29, %v6744_v24  ;;  %v8395_v15 = vcombine.high %v6730_v29, %v6744_v24  ;;  %v6800_v57 = vrot.slane %v11194_v61, %v9951_v34 }
0x20d3   :  { %v6755_v60 = vcombine.high %v6751_v56, %v6751_v56  ;;  %v6897_v3 = vcombine.low %v6751_v56, %v6753_v4  ;;  %9356 = vmatpush3.msra.mxu0 %v6393_v36  ;;  %v9608_v4 = vld [vmem:[%s11565_s5 + $0x18] sm:$0xff] }
0x20d4   :  { %9358 = vmatmul.mubr.msk.f32.vlgmr.msra.gmra.mxu0 %vm703_vm8, %v9600_v5  ;;  %9391 = vmatprep.subr.mxu0 %v9613_v0  ;;  %v6786_v35 = vrot.slane %v6778_v17, %v9951_v34  ;;  %v6793_v38 = vrot.slane %v8395_v15, %v9951_v34 }
0x20d5   :  { %v6898_v47 = vcombine.low %v6755_v60, %v6770_v1  ;;  %9360 = vmatprep.mubr.msk.f32.mxu0 %vm9614_vm6, %v9613_v0  ;;  %v6905_v9 = vrot.slane %v6897_v3, %v9951_v34  ;;  %v9609_v1 = vld [vmem:[%s11565_s5 + $0x20] sm:$0xff]  ;;  %v6815_v60 = vrot.slane %v6800_v57, %v9951_v34 }
0x20d6   :  { %v9352_v6 = vpop.f32.mrf.mxu0  ;;  %v6801_v37 = vcombine.low %v6786_v35, %v6793_v38 }
0x20d7   :  { %v6912_v10 = vrot.slane %v6898_v47, %v9951_v34  ;;  %v6486_v11 = vadd.f32 %v9352_v6, %v8380_v58 }
0x20d8   :  { %v6480_v13 = vpop.f32.mrf.mxu0  ;;  %9361 = vmatmul.mubr.msk.f32.gmra.mxu0 %vm703_vm8, %v9601_v8  ;;  %v6808_v2 = vrot.slane %v6801_v37, %v9951_v34 }
0x20d9   :  { %v6920_v14 = vcombine.low %v6905_v9, %v6912_v10  ;;  %v6481_v16 = vadd.f32 %v8380_v58, %v6480_v13  ;;  %9373 = vmatpush3.msk.msra.mxu1 %vm719_vm7, %v6486_v11  ;;  %9363 = vmatprep.mubr.msk.f32.mxu0 %vm9614_vm6, %v9613_v0  ;;  %v9611_v9 = vld [vmem:[%s11566_s6 + $0x8] sm:$0xff]  ;;  %v9612_v11 = vld [vmem:[%s11566_s6] sm:$0xff] }
0x20da   :  { %9374 = vmatprep.subr.mxu1 %v9613_v0  ;;  %v6816_v47 = vcombine.low %v6808_v2, %v6815_v60 }
0x20db   :  { %v6927_v18 = vrot.slane %v6920_v14, %v9951_v34  ;;  %9375 = vmatpush3.msra.mxu1 %v6481_v16 }
0x20dc   :  { %9377 = vmatmul.mubr.msk.f32.vlgmr.msra.gmra.mxu1 %vm703_vm8, %v9600_v5  ;;  %9400 = vmatprep.subr.mxu1 %v9613_v0  ;;  %v9610_v5 = vld [vmem:[%s11566_s6 + $0x10] sm:$0xf] }
0x20dd   :  { %9364 = vmatmul.mubr.msk.f32.gmra.mxu0 %vm703_vm8, %v9602_v20  ;;  %9379 = vmatprep.mubr.msk.f32.mxu1 %vm9614_vm6, %v9613_v0  ;;  %v11234_v25 = vcombine.low %v6927_v18, %v6934_v12 }
0x20de   :  { %9366 = vmatprep.mubr.msk.f32.mxu0 %vm9614_vm6, %v9613_v0 }
0x20e0   :  { %9380 = vmatmul.mubr.msk.f32.gmra.mxu1 %vm703_vm8, %v9601_v8 }
0x20e1   :  { %9367 = vmatmul.mubr.msk.f32.gmra.mxu0 %vm703_vm8, %v9603_v26  ;;  %9382 = vmatprep.mubr.msk.f32.mxu1 %vm9614_vm6, %v9613_v0 }
0x20e2   :  { %9369 = vmatprep.mubr.msk.f32.mxu0 %vm9614_vm6, %v9613_v0 }
0x20e4   :  { %9383 = vmatmul.mubr.msk.f32.gmra.mxu1 %vm703_vm8, %v9602_v20 }
0x20e5   :  { %9370 = vmatmul.mubr.msk.f32.gmra.mxu0 %vm703_vm8, %v9604_v22  ;;  %9385 = vmatprep.mubr.msk.f32.mxu1 %vm9614_vm6, %v9613_v0 }
0x20e6   :  { %9397 = vmatprep.mubr.msk.f32.mxu0 %vm9614_vm6, %v9613_v0 }
0x20e8   :  { %9386 = vmatmul.mubr.msk.f32.gmra.mxu1 %vm703_vm8, %v9603_v26 }
0x20e9   :  { %9388 = vmatprep.mubr.msk.f32.mxu1 %vm9614_vm6, %v9613_v0 }
0x20ec   :  { %9389 = vmatmul.mubr.msk.f32.gmra.mxu1 %vm703_vm8, %v9604_v22 }
0x20ed   :  { %9406 = vmatprep.mubr.msk.f32.mxu1 %vm9614_vm6, %v9613_v0 }
0x2194   :  { %v6558_v28 = vpop.f32.mrf.mxu0 }
0x2195   :  { %v6582_v41 = vmul.f32 %v11279_v40, %v6558_v28 }
0x2196   :  { %v9359_v30 = vpop.f32.mrf.mxu0 }
0x2197   :  { %v6592_v51 = vcombine.high %v6582_v41, %v6582_v41 }
0x2198   :  { %v6563_v31 = vpop.f32.mrf.mxu0 }
0x2199   :  { %v6583_v21 = vmul.f32 %v11269_v32, %v6563_v31  ;;  %v6817_v56 = vcombine.low %v6582_v41, %v6592_v51 }
0x219a   :  { %v9362_v19 = vpop.f32.mrf.mxu0 }
0x219b   :  { %v6593_v42 = vcombine.high %v6583_v21, %v6583_v21 }
0x219c   :  { %v11272_v33 = vpop.f32.mrf.mxu1 }
0x219d   :  { %v6568_v39 = vpop.f32.mrf.mxu0  ;;  %v6818_v52 = vcombine.low %v6583_v21, %v6593_v42 }
0x219e   :  { %v6584_v45 = vmul.f32 %v9607_v43, %v6568_v39  ;;  %v9378_v44 = vpop.f32.mrf.mxu1 }
0x219f   :  { %v9365_v50 = vpop.f32.mrf.mxu0 }
0x21a0   :  { %9392 = vmatpush3.xpose.msk.msra.mxu0 %vm394_vm4, %v6584_v45  ;;  %v11286_v53 = vpop.f32.mrf.mxu1  ;;  %v6594_v10 = vcombine.high %v6584_v45, %v6584_v45 }
0x21a1   :  { %v6573_v46 = vpop.f32.mrf.mxu0  ;;  %9393 = vmatprep.subr.mxu0 %v9613_v0 }
0x21a2   :  { %v9381_v48 = vpop.f32.mrf.mxu1  ;;  %v6585_v36 = vmul.f32 %v9608_v4, %v6573_v46 }
0x21a3   :  { %v9368_v49 = vpop.f32.mrf.mxu0 }
0x21a4   :  { %9394 = vmatpush3.xpose.msk.msra.mxu0 %vm394_vm4, %v6818_v52  ;;  %v6676_v59 = vpop.f32.mrf.mxu1  ;;  %v6595_v6 = vcombine.high %v6585_v36, %v6585_v36  ;;  %v6936_v13 = vcombine.low %v6594_v10, %v6585_v36 }
0x21a5   :  { %v6578_v54 = vpop.f32.mrf.mxu0  ;;  %9395 = vmatprep.subr.mxu0 %v9613_v0  ;;  %v11325_v16 = vmul.f32 %v9607_v43, %v6676_v59 }
0x21a6   :  { %v6586_v61 = vmul.f32 %v9609_v1, %v6578_v54  ;;  %v9384_v55 = vpop.f32.mrf.mxu1 }
0x21a7   :  { %v9371_v3 = vpop.f32.mrf.mxu0  ;;  %v6702_v18 = vcombine.high %v11325_v16, %v11325_v16 }
0x21a8   :  { %v6596_v58 = vcombine.high %v6586_v61, %v6586_v61  ;;  %9396 = vmatpush3.xpose.msk.msra.mxu0 %vm394_vm4, %v6817_v56  ;;  %v6937_v7 = vcombine.low %v6595_v6, %v6586_v61  ;;  %v6681_v14 = vpop.f32.mrf.mxu1 }
0x21a9   :  { %9409 = vmatprep.subr.msk.mxu0 %vm1419_vm9, %v9610_v5  ;;  %v6693_v20 = vmul.f32 %v9608_v4, %v6681_v14 }
0x21aa   :  { %9401 = vmatpush3.xpose.msk.msra.mxu1 %vm394_vm4, %v6596_v58  ;;  %v9387_v8 = vpop.f32.mrf.mxu1 }
0x21ab   :  { %9398 = vmatmul.mubr.msk.f32.vlgmr.msra.gmra.mxu0 %vm394_vm4, %v6816_v47  ;;  %9402 = vmatprep.subr.mxu1 %v9613_v0  ;;  %v6703_v27 = vcombine.high %v6693_v20, %v6693_v20  ;;  %v7522_v24 = vcombine.low %v6702_v18, %v6693_v20 }
0x21ac   :  { %9410 = vmatpush3.msk.msra.mxu0 %vm1419_vm9, %v9610_v5  ;;  %v6686_v12 = vpop.f32.mrf.mxu1 }
0x21ad   :  { %9411 = vmatprep.subr.mxu0 %v9611_v9  ;;  %v6694_v26 = vmul.f32 %v9609_v1, %v6686_v12 }
0x21ae   :  { %9403 = vmatpush3.xpose.msk.msra.mxu1 %vm394_vm4, %v6937_v7  ;;  %9412 = vmatpush3.msra.mxu0 %v9611_v9  ;;  %v9390_v22 = vpop.f32.mrf.mxu1  ;;  %v6691_v9 = vmul.f32 %v11269_v32, %v11286_v53 }
0x21af   :  { %9404 = vmatprep.subr.mxu1 %v9613_v0  ;;  %9413 = vmatprep.subr.mxu0 %v9612_v11  ;;  %v6704_v23 = vcombine.high %v6694_v26, %v6694_v26  ;;  %v7523_v28 = vcombine.low %v6703_v27, %v6694_v26 }
0x21b0   :  { %9414 = vmatpush3.msra.mxu0 %v9612_v11  ;;  %v6701_v12 = vcombine.high %v6691_v9, %v6691_v9 }
0x21b1   :  { %9418 = vmatprep.subr.mxu0 %v9613_v0 }
0x21b2   :  { %9405 = vmatpush3.xpose.msk.msra.mxu1 %vm394_vm4, %v6936_v13  ;;  %v6690_v13 = vmul.f32 %v11279_v40, %v11272_v33  ;;  %v7401_v32 = vcombine.low %v6691_v9, %v6701_v12 }
0x21b3   :  { %9427 = vmatprep.subr.mxu1 %v9613_v0 }
0x21b4   :  { %v6700_v26 = vcombine.high %v6690_v13, %v6690_v13 }
0x21b5   :  { %9407 = vmatmul.mubr.msk.f32.vlgmr.msra.gmra.mxu1 %vm394_vm4, %v11234_v25 }
0x21b6   :  { %9433 = vmatprep.mubr.msk.f32.mxu1 %vm9614_vm6, %v9613_v0  ;;  %9428 = vmatpush3.msk.msra.mxu1 %vm1419_vm9, %v6704_v23  ;;  %v7400_v33 = vcombine.low %v6690_v13, %v6700_v26  ;;  %v8414_v13 = vld [vmem:[%s11567_s19 + $0x70] sm:$0xff] }
0x21b7   :  { %9429 = vmatprep.subr.mxu1 %v9613_v0 }
0x21b8   :  { %9430 = vmatpush3.msra.mxu1 %v7523_v28 }
0x21b9   :  { %9431 = vmatprep.subr.mxu1 %v9613_v0 }
0x21ba   :  { %9432 = vmatpush3.msra.mxu1 %v7522_v24 }
0x226b   :  { %v6893_v25 = vpop.f32.mrf.mxu0 }
0x226c   :  { %v7016_v29 = vsel %vm1247_vm10, %v6893_v25, -inf }
0x226d   :  { %7017 = vmax.xlane.f32.xlu0 %v7016_v29  ;;  %v9399_v30 = vpop.f32.mrf.mxu0 }
0x2275   :  { %v7012_v17 = vpop.f32.mrf.mxu1 }
0x2276   :  { %v7019_v15 = vsel %vm1247_vm10, %v7012_v17, -inf }
0x2277   :  { %7020 = vmax.xlane.f32.xlu1 %v7019_v15  ;;  %v9408_v31 = vpop.f32.mrf.mxu1 }
0x22f6   :  { %v7018_v21 = vpop.xlane.xlu0 %7017 }
0x22f7   :  { %v7022_v19 = vsub.f32 %v6893_v25, %v7018_v21 }
0x22f9   :  { %v7024_v35 = vmul.f32 1.442695, %v7022_v19 }
0x22fb   :  { %9560 = vpow2.f32 %v7024_v35 }
0x2300   :  { %v7021_v38 = vpop.xlane.xlu1 %7020 }
0x2301   :  { %v7023_v39 = vsub.f32 %v7012_v17, %v7021_v38 }
0x2303   :  { %v7026_v41 = vmul.f32 1.442695, %v7023_v39 }
0x2305   :  { %9562 = vpow2.f32 %v7026_v41 }
0x2308   :  { %v9561_v42 = vpop.eup %9560 }
0x2309   :  { %v7037_v43 = vrot.slane %v9561_v42, %v9951_v34  ;;  %v7030_v44 = vcombine.high %v9561_v42, %v9561_v42 }
0x230b   :  { %v7045_v45 = vcombine.high %v7037_v43, %v7037_v43  ;;  %v11339_v37 = vrot.slane %v7037_v43, %v9951_v34  ;;  %v7044_v46 = vrot.slane %v7030_v44, %v9951_v34 }
0x230d   :  { %v11336_v50 = vrot.slane %v7045_v45, %v9951_v34  ;;  %v7059_v56 = vrot.slane %v7044_v46, %v9951_v34  ;;  %v7067_v30 = vcombine.high %v11339_v37, %v11339_v37 }
0x230f   :  { %v7118_v52 = vcombine.low %v11339_v37, %v11336_v50  ;;  %v8404_v49 = vcombine.high %v11339_v37, %v11336_v50  ;;  %v7068_v21 = vcombine.high %v11336_v50, %v11336_v50 }
0x2311   :  { %v7128_v4 = vrot.slane %v7118_v52, %v9951_v34  ;;  %v7135_v55 = vrot.slane %v8404_v49, %v9951_v34 }
0x2312   :  { %v9563_v51 = vpop.eup %9562 }
0x2313   :  { %v7069_v48 = vcombine.high %v9563_v51, %v9563_v51  ;;  %v7076_v57 = vrot.slane %v9563_v51, %v9951_v34  ;;  %v7150_v6 = vcombine.low %v7128_v4, %v7135_v55 }
0x2315   :  { %v7083_v59 = vrot.slane %v7069_v48, %v9951_v34  ;;  %v7084_v2 = vcombine.high %v7076_v57, %v7076_v57  ;;  %v11349_v54 = vrot.slane %v7076_v57, %v9951_v34  ;;  %v7158_v14 = vrot.slane %v7150_v6, %v9951_v34 }
0x2317   :  { %v11354_v36 = vrot.slane %v7084_v2, %v9951_v34  ;;  %v11358_v1 = vcombine.high %v11349_v54, %v11349_v54  ;;  %v7120_v61 = vcombine.low %v7059_v56, %v11349_v54  ;;  %v7098_v3 = vrot.slane %v7083_v59, %v9951_v34 }
0x2319   :  { %v7121_v60 = vcombine.low %v11354_v36, %v11358_v1  ;;  %v7107_v58 = vcombine.high %v11354_v36, %v11354_v36  ;;  %v7142_v47 = vrot.slane %v7120_v61, %v9951_v34 }
0x231b   :  { %v7149_v5 = vrot.slane %v7121_v60, %v9951_v34  ;;  %v7167_v7 = vcombine.low %v7107_v58, %v7098_v3 }
0x231d   :  { %v7151_v10 = vcombine.low %v7142_v47, %v7149_v5  ;;  %v7174_v11 = vrot.slane %v7167_v7, %v9951_v34 }
0x231f   :  { %v7165_v8 = vrot.slane %v7151_v10, %v9951_v34  ;;  %v7181_v20 = vrot.slane %v7174_v11, %v9951_v34  ;;  %v8415_v11 = vld [vmem:[%s11567_s19 + $0x78] sm:$0xff] }
0x2321   :  { %v7166_v18 = vcombine.low %v7158_v14, %v7165_v8  ;;  %v8413_v14 = vld [vmem:[%s11567_s19 + $0x68] sm:$0xff]  ;;  %v8412_v8 = vld [vmem:[%s11567_s19 + $0x60] sm:$0xff] }
0x2323   :  { %9415 = vmatprep.mubr.msk.f32.mxu0 %vm1414_vm11, %v7166_v18 }
0x2324   :  { %9416 = vmatmul.mubr.msk.f32.vlgmr.msra.gmra.mxu0 %vm1414_vm11, %v7181_v20 }
0x2325   :  { %9419 = vmatpush3.msk.msra.mxu0 %vm1419_vm9, %v11325_v16  ;;  %9424 = vmatprep.mubr.msk.f32.mxu0 %vm9614_vm6, %v9613_v0 }
0x2326   :  { %9420 = vmatprep.subr.mxu0 %v9613_v0 }
0x2327   :  { %9421 = vmatpush3.msra.mxu0 %v7401_v32 }
0x2328   :  { %9422 = vmatprep.subr.mxu0 %v9613_v0 }
0x2329   :  { %9423 = vmatpush3.msra.mxu0 %v7400_v33 }
0x232a   :  { %9436 = vmatprep.subr.mxu0 %v8415_v11 }
0x23e4   :  { %v9417_v40 = vpop.f32.mrf.mxu0 }
0x23e5   :  { %9564 = vrcp.f32 %v9417_v40 }
0x23e6   :  { %v7252_v53 = vpop.f32.mrf.mxu0 }
0x23e7   :  { %9566 = vrcp.f32 %v7252_v53 }
0x23f2   :  { %v9565_v22 = vpop.eup %9564 }
0x23f3   :  { %v7320_v27 = vrot.slane %v9565_v22, %v9951_v34 }
0x23f4   :  { %v9567_v23 = vpop.eup %9566 }
0x23f5   :  { %v7265_v24 = vcombine.high %v9567_v23, %v9567_v23  ;;  %v7272_v16 = vrot.slane %v9567_v23, %v9951_v34  ;;  %v7321_v28 = vcombine.high %v7320_v27, %v7320_v27  ;;  %v7328_v19 = vrot.slane %v7320_v27, %v9951_v34 }
0x23f7   :  { %v7279_v25 = vrot.slane %v7265_v24, %v9951_v34  ;;  %v7280_v29 = vcombine.high %v7272_v16, %v7272_v16  ;;  %v7288_v0 = vrot.slane %v7272_v16, %v9951_v34  ;;  %v7335_v35 = vrot.slane %v7321_v28, %v9951_v34 }
0x23f8   :  { %v7354_v59 = vmul.f32 %v7328_v19, %v7107_v58 }
0x23f9   :  { %v7281_v17 = vcombine.high %v7279_v25, %v7279_v25  ;;  %v7295_v15 = vrot.slane %v7279_v25, %v9951_v34  ;;  %v7302_v31 = vrot.slane %v7280_v29, %v9951_v34  ;;  %v7310_v38 = vcombine.high %v7288_v0, %v7288_v0 }
0x23fa   :  { %v7346_v39 = vmul.f32 %v7288_v0, %v11339_v37  ;;  %v7355_v37 = vmul.f32 %v7335_v35, %v7098_v3 }
0x23fb   :  { %v7309_v41 = vrot.slane %v7281_v17, %v9951_v34  ;;  %v7311_v42 = vcombine.high %v7295_v15, %v7295_v15  ;;  %v7312_v43 = vcombine.high %v7302_v31, %v7302_v31  ;;  %v7347_v45 = vmul.f32 %v7302_v31, %v11336_v50 }
0x23fc   :  { %v7348_v44 = vmul.f32 %v7310_v38, %v7067_v30  ;;  %v7350_v46 = vmul.f32 %v7295_v15, %v7059_v56 }
0x23fd   :  { %v7313_v51 = vcombine.high %v7309_v41, %v7309_v41  ;;  %v7349_v52 = vmul.f32 %v7312_v43, %v7068_v21  ;;  %v7361_v48 = vcombine.low %v7346_v39, %v7347_v45  ;;  %v7351_v57 = vmul.f32 %v7309_v41, %v11349_v54 }
0x23fe   :  { %v7352_v49 = vmul.f32 %v7311_v42, %v11354_v36  ;;  %v7383_v50 = vrot.slane %v7350_v46, %v9951_v34  ;;  %v7505_v36 = vrot.slane %v7355_v37, %v9951_v34 }
0x23ff   :  { %v7362_v2 = vcombine.low %v7348_v44, %v7349_v52  ;;  %v7353_v4 = vmul.f32 %v7313_v51, %v11358_v1  ;;  %v7369_v55 = vrot.slane %v7361_v48, %v9951_v34 }
0x2400   :  { %v7483_v61 = vcombine.low %v7351_v57, %v7352_v49  ;;  %v7398_v1 = vrot.slane %v7383_v50, %v9951_v34  ;;  %v7520_v9 = vrot.slane %v7505_v36, %v9951_v34 }
0x2401   :  { %v7376_v60 = vrot.slane %v7362_v2, %v9951_v34  ;;  %v7484_v56 = vcombine.low %v7353_v4, %v7354_v59  ;;  %v8420_v59 = vld [vmem:[%s11568_s20 + $0x3] ss:$0 sm:$0xff] }
0x2402   :  { %v7491_v5 = vrot.slane %v7483_v61, %v9951_v34 }
0x2403   :  { %v7384_v47 = vcombine.low %v7369_v55, %v7376_v60  ;;  %v7498_v54 = vrot.slane %v7484_v56, %v9951_v34 }
0x2405   :  { %v7391_v58 = vrot.slane %v7384_v47, %v9951_v34  ;;  %v7506_v3 = vcombine.low %v7491_v5, %v7498_v54 }
0x2407   :  { %v7399_v6 = vcombine.low %v7391_v58, %v7398_v1  ;;  %v7513_v7 = vrot.slane %v7506_v3, %v9951_v34  ;;  %v8428_v3 = vld [vmem:[%s11569_s23 + $0x78] sm:$0xff] }
0x2408   :  { %9447 = vmatprep.subr.mxu1 %v8428_v3 }
0x2409   :  { %9425 = vmatmul.mubr.msk.f32.vlgmr.msra.gmra.mxu0 %vm1414_vm11, %v7399_v6  ;;  %v7521_v10 = vcombine.low %v7513_v7, %v7520_v9  ;;  %v8427_v6 = vld [vmem:[%s11569_s23 + $0x70] sm:$0xff]  ;;  %v8426_v7 = vld [vmem:[%s11569_s23 + $0x68] sm:$0xff]  ;;  %v8425_v9 = vld [vmem:[%s11569_s23 + $0x60] sm:$0xff] }
0x240a   :  { %9437 = vmatpush3.msra.mxu0 %v8415_v11  ;;  %v8447_v11 = vld [vmem:[%s11570_s25 + $0x1f0] sm:$0xff] }
0x240b   :  { %9434 = vmatmul.mubr.msk.f32.vlgmr.msra.gmra.mxu1 %vm1414_vm11, %v7521_v10  ;;  %9438 = vmatprep.subr.mxu0 %v8414_v13  ;;  %v8448_v10 = vld [vmem:[%s11570_s25 + $0x1f8] sm:$0xff] }
0x240c   :  { %9439 = vmatpush3.msra.mxu0 %v8414_v13  ;;  %9448 = vmatpush3.msra.mxu1 %v8428_v3  ;;  %v8446_v13 = vld [vmem:[%s11570_s25 + $0x1e8] sm:$0xff] }
0x240d   :  { %9440 = vmatprep.subr.mxu0 %v8413_v14  ;;  %9449 = vmatprep.subr.mxu1 %v8427_v6 }
0x240e   :  { %9441 = vmatpush3.msra.mxu0 %v8413_v14  ;;  %9450 = vmatpush3.msra.mxu1 %v8427_v6 }
0x240f   :  { %9442 = vmatprep.subr.mxu0 %v8412_v8  ;;  %9451 = vmatprep.subr.mxu1 %v8426_v7 }
0x2410   :  { %9443 = vmatpush3.msra.mxu0 %v8412_v8  ;;  %9452 = vmatpush3.msra.mxu1 %v8426_v7 }
0x2411   :  { %9453 = vmatprep.subr.mxu1 %v8425_v9  ;;  %9458 = vmatprep.subr.mxu0 %v8448_v10 }
0x2412   :  { %9454 = vmatpush3.msra.mxu1 %v8425_v9 }
0x24c9   :  { %v7474_v12 = vpop.f32.mrf.mxu0 }
0x24ca   :  { %v7602_v18 = vcombine.high %v7474_v12, %v7474_v12  ;;  %v7609_v20 = vrot.slane %v7474_v12, %v9951_v34 }
0x24cb   :  { %v9426_v26 = vpop.f32.mrf.mxu0  ;;  %v7596_v32 = vpop.f32.mrf.mxu1 }
0x24cc   :  { %v7616_v33 = vrot.slane %v7602_v18, %v9951_v34  ;;  %v7617_v40 = vcombine.high %v7609_v20, %v7609_v20  ;;  %v7641_v53 = vcombine.high %v7596_v32, %v7596_v32  ;;  %v7648_v22 = vrot.slane %v7596_v32, %v9951_v34 }
0x24cd   :  { %v9435_v27 = vpop.f32.mrf.mxu1  ;;  %v7624_v23 = vrot.slane %v7609_v20, %v9951_v34 }
0x24ce   :  { %v7631_v24 = vrot.slane %v7616_v33, %v9951_v34  ;;  %v7638_v16 = vrot.slane %v7617_v40, %v9951_v34  ;;  %v7655_v28 = vrot.slane %v7641_v53, %v9951_v34  ;;  %v7656_v25 = vcombine.high %v7648_v22, %v7648_v22  ;;  %v8423_v33 = vld [vmem:[%s11571_s21 + $0x3] ss:$0 sm:$0xff] }
0x24cf   :  { %v7663_v29 = vrot.slane %v7648_v22, %v9951_v34 }
0x24d0   :  { %v7685_v30 = vcombine.low %v7624_v23, %v7638_v16  ;;  %v8416_v0 = vcombine.high %v7624_v23, %v7638_v16  ;;  %v7677_v17 = vrot.slane %v7656_v25, %v9951_v34  ;;  %v7670_v35 = vrot.slane %v7655_v28, %v9951_v34  ;;  %v8424_v23 = vld [vmem:[%s11572_s22 + $0x3] ss:$0 sm:$0xff] }
0x24d1   :  { %v7678_v15 = vcombine.high %v7663_v29, %v7663_v29  ;;  %v7687_v31 = vcombine.low %v7631_v24, %v7663_v29  ;;  %v8445_v25 = vld [vmem:[%s11570_s25 + $0x1e0] sm:$0xff]  ;;  %v8444_v29 = vld [vmem:[%s11570_s25 + $0x1d8] sm:$0xff] }
0x24d2   :  { %v7695_v21 = vrot.slane %v7685_v30, %v9951_v34  ;;  %v7702_v19 = vrot.slane %v8416_v0, %v9951_v34  ;;  %v7679_v38 = vcombine.high %v7677_v17, %v7677_v17  ;;  %v8443_v30 = vld [vmem:[%s11570_s25 + $0x1d0] sm:$0xff]  ;;  %v8442_v0 = vld [vmem:[%s11570_s25 + $0x1c8] sm:$0xff] }
0x24d3   :  { %v7688_v39 = vcombine.low %v7677_v17, %v7678_v15  ;;  %v7709_v42 = vrot.slane %v7687_v31, %v9951_v34  ;;  %v8441_v17 = vld [vmem:[%s11570_s25 + $0x1c0] sm:$0xff]  ;;  %v8440_v15 = vld [vmem:[%s11570_s25 + $0x1b8] sm:$0xff]  ;;  %v8439_v31 = vld [vmem:[%s11570_s25 + $0x1b0] sm:$0xff] }
0x24d4   :  { %v7717_v41 = vcombine.low %v7695_v21, %v7702_v19  ;;  %v7734_v45 = vcombine.low %v7679_v38, %v7670_v35  ;;  %v8438_v21 = vld [vmem:[%s11570_s25 + $0x1a8] sm:$0xff]  ;;  %v8437_v19 = vld [vmem:[%s11570_s25 + $0x1a0] sm:$0xff]  ;;  %v8436_v35 = vld [vmem:[%s11570_s25 + $0x198] sm:$0xff] }
0x24d5   :  { %v7716_v43 = vrot.slane %v7688_v39, %v9951_v34  ;;  %v8435_v38 = vld [vmem:[%s11570_s25 + $0x190] sm:$0xff]  ;;  %v8434_v39 = vld [vmem:[%s11570_s25 + $0x188] sm:$0xff] }
0x24d6   :  { %v7741_v46 = vrot.slane %v7734_v45, %v9951_v34  ;;  %v7725_v51 = vrot.slane %v7717_v41, %v9951_v34  ;;  %v8433_v41 = vld [vmem:[%s11570_s25 + $0x180] sm:$0xff] }
0x24d7   :  { %v7718_v44 = vcombine.low %v7709_v42, %v7716_v43  ;;  %v8430_v42 = vld [vmem:[%s11573_s24 + $0x3] ss:$0 sm:$0xff] }
0x24d8   :  { %v7748_v57 = vrot.slane %v7741_v46, %v9951_v34 }
0x24d9   :  { %v7732_v52 = vrot.slane %v7718_v44, %v9951_v34 }
0x24db   :  { %v7733_v48 = vcombine.low %v7725_v51, %v7732_v52 }
0x24dd   :  { %9444 = vmatprep.mubr.msk.f32.mxu0 %vm394_vm4, %v7733_v48 }
0x24de   :  { %9445 = vmatmul.mubr.msk.f32.vlgmr.msra.gmra.mxu0 %vm394_vm4, %v7748_v57 }
0x24df   :  { %9459 = vmatpush3.msra.mxu0 %v8448_v10 }
0x24e0   :  { %9460 = vmatprep.subr.mxu0 %v8447_v11 }
0x24e1   :  { %9461 = vmatpush3.msra.mxu0 %v8447_v11 }
0x24e2   :  { %9462 = vmatprep.subr.mxu0 %v8446_v13 }
0x24e3   :  { %9463 = vmatpush3.msra.mxu0 %v8446_v13 }
0x24e4   :  { %9464 = vmatprep.subr.mxu0 %v8445_v25 }
0x24e5   :  { %9465 = vmatpush3.msra.mxu0 %v8445_v25 }
0x24e6   :  { %9466 = vmatprep.subr.mxu0 %v8444_v29 }
0x24e7   :  { %9467 = vmatpush3.msra.mxu0 %v8444_v29 }
0x24e8   :  { %9468 = vmatprep.subr.mxu0 %v8443_v30 }
0x24e9   :  { %9469 = vmatpush3.msra.mxu0 %v8443_v30 }
0x24ea   :  { %9470 = vmatprep.subr.mxu0 %v8442_v0 }
0x24eb   :  { %9471 = vmatpush3.msra.mxu0 %v8442_v0 }
0x24ec   :  { %9472 = vmatprep.subr.mxu0 %v8441_v17 }
0x24ed   :  { %9473 = vmatpush3.msra.mxu0 %v8441_v17 }
0x24ee   :  { %9474 = vmatprep.subr.mxu0 %v8440_v15 }
0x24ef   :  { %9475 = vmatpush3.msra.mxu0 %v8440_v15 }
0x24f0   :  { %9476 = vmatprep.subr.mxu0 %v8439_v31 }
0x24f1   :  { %9477 = vmatpush3.msra.mxu0 %v8439_v31 }
0x24f2   :  { %9478 = vmatprep.subr.mxu0 %v8438_v21 }
0x24f3   :  { %9479 = vmatpush3.msra.mxu0 %v8438_v21 }
0x24f4   :  { %9480 = vmatprep.subr.mxu0 %v8437_v19 }
0x24f5   :  { %9481 = vmatpush3.msra.mxu0 %v8437_v19 }
0x24f6   :  { %9482 = vmatprep.subr.mxu0 %v8436_v35 }
0x24f7   :  { %9483 = vmatpush3.msra.mxu0 %v8436_v35 }
0x24f8   :  { %9484 = vmatprep.subr.mxu0 %v8435_v38 }
0x24f9   :  { %9485 = vmatpush3.msra.mxu0 %v8435_v38 }
0x24fa   :  { %9486 = vmatprep.subr.mxu0 %v8434_v39 }
0x24fb   :  { %9487 = vmatpush3.msra.mxu0 %v8434_v39 }
0x24fc   :  { %9488 = vmatprep.subr.mxu0 %v8433_v41 }
0x24fd   :  { %9489 = vmatpush3.msra.mxu0 %v8433_v41 }
0x259e   :  { %v9446_v49 = vpop.f32.mrf.mxu0 }
0x259f   :  { %v7829_v2 = vadd.f32 %v9446_v49, %v11107_v62 }
0x25a0   :  { %v7819_v4 = vpop.f32.mrf.mxu0 }
0x25a1   :  { %v11451_v37 = vadd.f32 %v8420_v59, %v7829_v2  ;;  %v7828_v61 = vadd.f32 %v7819_v4, %v11115_v63 }
0x25a3   :  { %v11454_v55 = vadd.f32 %v8420_v59, %v7828_v61  ;;  %v7847_v34 = vsel %vm398_vm5, %v11451_v37, 0.0 }
0x25a4   :  { %7848 = vadd.xlane.f32.xlu1 %v7847_v34 }
0x25a5   :  { %v7844_v60 = vsel %vm394_vm4, %v11454_v55, 0.0 }
0x25a6   :  { %7845 = vadd.xlane.f32.xlu0 %v7844_v60 }
0x262d   :  { %v7849_v50 = vpop.xlane.xlu1 %7848 }
0x262e   :  { %v7851_v56 = vmul.f32 0.03125, %v7849_v50  ;;  %v8450_v50 = vld [vmem:[%s11574_s26 + $0x3] ss:$0 sm:$0xff] }
0x262f   :  { %v7846_v47 = vpop.xlane.xlu0 %7845 }
0x2630   :  { %v7853_v62 = vsub.f32 %v11451_v37, %v7851_v56  ;;  %v7850_v5 = vmul.f32 0.03125, %v7846_v47 }
0x2632   :  { %v7852_v54 = vsub.f32 %v11454_v55, %v7850_v5  ;;  %v7855_v36 = vmul.f32 %v7853_v62, %v7853_v62 }
0x2634   :  { %v7859_v63 = vsel %vm398_vm5, %v7855_v36, 0.0  ;;  %v7854_v58 = vmul.f32 %v7852_v54, %v7852_v54 }
0x2635   :  { %7860 = vadd.xlane.f32.xlu1 %v7859_v63 }
0x2636   :  { %v7856_v1 = vsel %vm394_vm4, %v7854_v58, 0.0 }
0x2637   :  { %7857 = vadd.xlane.f32.xlu0 %v7856_v1 }
0x26be   :  { %v7861_v14 = vpop.xlane.xlu1 %7860 }
0x26bf   :  { %v7863_v8 = vmul.f32 0.03125, %v7861_v14 }
0x26c0   :  { %v7858_v12 = vpop.xlane.xlu0 %7857 }
0x26c1   :  { %v7865_v18 = vadd.f32 1e-06, %v7863_v8  ;;  %v7862_v20 = vmul.f32 0.03125, %v7858_v12 }
0x26c3   :  { %9568 = vrsqrt.f32 %v7865_v18  ;;  %v7864_v26 = vadd.f32 1e-06, %v7862_v20 }
0x26c5   :  { %9570 = vrsqrt.f32 %v7864_v26 }
0x26d0   :  { %v9569_v32 = vpop.eup %9568 }
0x26d1   :  { %v7869_v40 = vmul.f32 %v9569_v32, %v7853_v62 }
0x26d2   :  { %v9571_v53 = vpop.eup %9570 }
0x26d3   :  { %v7868_v22 = vmul.f32 %v9571_v53, %v7852_v54  ;;  %v7877_v27 = vmul.f32 %v8423_v33, %v7869_v40 }
0x26d5   :  { %v7876_v24 = vmul.f32 %v8423_v33, %v7868_v22  ;;  %v7885_v28 = vadd.f32 %v8424_v23, %v7877_v27 }
0x26d7   :  { %v7884_v16 = vadd.f32 %v8424_v23, %v7876_v24 }
0x26d9   :  { %9455 = vmatprep.mubr.msk.f32.mxu1 %vm394_vm4, %v7884_v16 }
0x26da   :  { %9456 = vmatmul.mubr.msk.f32.vlgmr.msra.gmra.mxu1 %vm394_vm4, %v7885_v28 }
0x279a   :  { %v9457_v43 = vpop.f32.mrf.mxu1 }
0x279b   :  { %v7977_v45 = vadd.f32 %v9457_v43, %v8430_v42 }
0x279c   :  { %v7971_v44 = vpop.f32.mrf.mxu1 }
0x279d   :  { %v7983_v46 = vmul.f32 0.70710677, %v7977_v45  ;;  %v7972_v51 = vadd.f32 %v8430_v42, %v7971_v44  ;;  %v7981_v4 = vmul.f32 0.5, %v7977_v45 }
0x279f   :  { %9572 = verf.f32 %v7983_v46  ;;  %v7982_v52 = vmul.f32 0.70710677, %v7972_v51  ;;  %v7980_v59 = vmul.f32 0.5, %v7972_v51 }
0x27a1   :  { %9574 = verf.f32 %v7982_v52 }
0x27ac   :  { %v9573_v48 = vpop.eup %9572 }
0x27ad   :  { %v7987_v49 = vadd.f32 1.0, %v9573_v48 }
0x27ae   :  { %v9575_v57 = vpop.eup %9574 }
0x27af   :  { %v7986_v2 = vadd.f32 1.0, %v9575_v57  ;;  %v7989_v34 = vmul.f32 %v7987_v49, %v7981_v4 }
0x27b1   :  { %v7988_v61 = vmul.f32 %v7986_v2, %v7980_v59 }
0x27b3   :  { %9490 = vmatprep.mubr.f32.mxu0 %v7988_v61 }
0x27b4   :  { %9491 = vmatmul.mubr.f32.vlgmr.msra.gmra.mxu0 %v7989_v34 }
0x2874   :  { %v9492_v60 = vpop.f32.mrf.mxu0 }
0x2875   :  { %v8083_v56 = vadd.f32 %v9492_v60, %v11451_v37 }
0x2876   :  { %v8073_v47 = vpop.f32.mrf.mxu0 }
0x2877   :  { %v8093_v62 = vadd.f32 %v8450_v50, %v8083_v56  ;;  %v8082_v5 = vadd.f32 %v8073_v47, %v11454_v55 }
0x2879   :  { %8452 = vst.msk [vmem:[%s11575_s27 + $0x38] sm:$0x3] %vm398_vm5, %v8093_v62  ;;  %v8092_v54 = vadd.f32 %v8450_v50, %v8082_v5 }
0x287b   :  { %8451 = vst.msk [vmem:[%s11575_s27 + $0x30] sm:$0xff] %vm394_vm4, %v8092_v54 }

</bundles_post_ra>
